<compile_context>
chip_gen: v6e
topology: v6e:2x2x1
jax: 0.10.0
libtpu: 0.0.40
codegen_flags: <defaults>
</compile_context>

<pallas_src>
from functools import partial

import jax
import jax.numpy as jnp
from jax.experimental import pallas as pl
from jax.experimental.pallas import tpu as pltpu


# ----------------------------------------------------------------------------
# Fused kernel: conv3x3+ReLU -> conv3x3 -> HardConstraint (f32) , Nb images / step.
# Layout: channel-major, images concatenated along lanes:  x (Cin, L) -> out (Cpk, L).
# ----------------------------------------------------------------------------
def fused_sr_kernel(x_ref, mask_ref, w1_ref, b1_ref, w2_ref, m_ref, rt_ref, b2_ref,
                    o_ref, xs_ref, fs_ref, *, W, G, L):
    # x_ref   : (Cin, L)  f32              mask_ref: (9, L)         bf16 {0,1} tap masks
    # w1_ref  : (9, Cmid, Cin) bf16        b1_ref  : (Cmid, 1)      f32
    # w2_ref  : (9, Cpk, Cmid) bf16        m_ref   : (Cpk, Cpk)     f32  (block-mean removal)
    # rt_ref  : (Cpk, Cin) f32             b2_ref  : (Cpk, 1)       f32  (M @ b2)
    # o_ref   : (Cpk, L)  bf16
    # xs_ref  : (Cin,  2G + L) bf16  guarded input slab
    # fs_ref  : (Cmid, 2G + L) bf16  guarded feature slab (features never touch HBM)
    cin = x_ref.shape[0]
    cmid = w1_ref.shape[1]
    cpk = w2_ref.shape[1]
    bf16 = jnp.bfloat16

    # Clear ONLY the guard lanes (not the whole slab).  Guards must be finite zeros because
    # masked-out tap reads still load them first (0 * NaN != 0 for stale VMEM bit patterns).
    xs_ref[:, pl.ds(0, G)] = jnp.zeros((cin, G), bf16)
    xs_ref[:, pl.ds(G + L, G)] = jnp.zeros((cin, G), bf16)
    fs_ref[:, pl.ds(0, G)] = jnp.zeros((cmid, G), bf16)
    fs_ref[:, pl.ds(G + L, G)] = jnp.zeros((cmid, G), bf16)

    x_f32 = x_ref[...]                                      # kept in f32 for the +x term
    xs_ref[:, pl.ds(G, L)] = x_f32.astype(bf16)             # single aligned slab store

    def conv3x3(src_slab, w_ref, cout):
        # 9 taps = 9 unaligned VMEM loads (views) + 9 small MXU matmuls, f32 accumulation.
        # Border handling: multiply the view by the precomputed {0,1} mask row (VPU); the
        # center tap (t == 4) needs no mask.  No tap slab, no roll, no masked stores.
        acc = jnp.zeros((cout, L), jnp.float32)
        for t in range(9):
            dy, dx = t // 3, t % 3
            s = (dy - 1) * W + (dx - 1)
            v = src_slab[:, pl.ds(G + s, L)]
            if t != 4:
                v = v * mask_ref[pl.ds(t, 1), :]
            acc = acc + jnp.dot(w_ref[t], v, preferred_element_type=jnp.float32)
        return acc

    # ---- conv1 + bias + ReLU; features stay in VMEM only --------------------------------
    f = jnp.maximum(conv3x3(xs_ref, w1_ref, cmid) + b1_ref[...], 0.0)
    fs_ref[:, pl.ds(G, L)] = f.astype(bf16)

    # ---- conv2 (bias folded into b2_ref = M @ b2) ----------------------------------------
    y2 = conv3x3(fs_ref, w2_ref, cpk)

    # ---- HardConstraint in f32: out = M @ (conv2) + Rt @ x + M @ b2 ----------------------
    out = (jnp.dot(m_ref[...], y2, preferred_element_type=jnp.float32)
           + jnp.dot(rt_ref[...], x_f32, preferred_element_type=jnp.float32)
           + b2_ref[...])
    o_ref[...] = out.astype(bf16)                           # bf16 writeback (half the bytes)


def fused_sr_call(xt, masks, w1t, b1c, w2t, mf, rt, b2f, *, W, nb, hw):
    cin, nhw = xt.shape
    cmid = w1t.shape[1]
    cpk = w2t.shape[1]
    L = nb * hw
    G = max(128, ((W + 1 + 127) // 128) * 128)              # guard >= W+1, lane-aligned
    grid = (nhw // L,)
    return pl.pallas_call(
        partial(fused_sr_kernel, W=W, G=G, L=L),
        out_shape=jax.ShapeDtypeStruct((cpk, nhw), jnp.bfloat16),
        grid_spec=pltpu.PrefetchScalarGridSpec(
            num_scalar_prefetch=0,
            grid=grid,
            in_specs=[
                pl.BlockSpec((cin, L), lambda g: (0, g)),           # x (lane-blocked)
                pl.BlockSpec((9, L), lambda g: (0, 0)),             # tap masks (resident)
                pl.BlockSpec((9, cmid, cin), lambda g: (0, 0, 0)),  # w1 taps
                pl.BlockSpec((cmid, 1), lambda g: (0, 0)),          # b1
                pl.BlockSpec((9, cpk, cmid), lambda g: (0, 0, 0)),  # w2 taps
                pl.BlockSpec((cpk, cpk), lambda g: (0, 0)),         # M  (f32 constraint)
                pl.BlockSpec((cpk, cin), lambda g: (0, 0)),         # Rt (f32 +x term)
                pl.BlockSpec((cpk, 1), lambda g: (0, 0)),           # M @ b2
            ],
            out_specs=pl.BlockSpec((cpk, L), lambda g: (0, g)),
            scratch_shapes=[
                pltpu.VMEM((cin, 2 * G + L), jnp.bfloat16),         # guarded input slab
                pltpu.VMEM((cmid, 2 * G + L), jnp.bfloat16),        # guarded feature slab
            ],
        ),
        compiler_params=pltpu.CompilerParams(
            dimension_semantics=("parallel",),
        ),
    )(xt, masks, w1t, b1c, w2t, mf, rt, b2f)


# ----------------------------------------------------------------------------
# Parameters and wrapper-side packing.
# ----------------------------------------------------------------------------
def init_params(key, cin=4, cmid=32, r=2):
    k1, k2, k3, k4 = jax.random.split(key, 4)
    w1 = jax.random.normal(k1, (3, 3, cin, cmid), jnp.float32) * (1.0 / (3 * 3 * cin)) ** 0.5
    b1 = jax.random.normal(k2, (cmid,), jnp.float32) * 0.01
    w2 = jax.random.normal(k3, (3, 3, cmid, cin * r * r), jnp.float32) * (1.0 / (3 * 3 * cmid)) ** 0.5
    b2 = jax.random.normal(k4, (cin * r * r,), jnp.float32) * 0.01
    return {"w1": w1, "b1": b1, "w2": w2, "b2": b2, "r": r}


def _fold_params(params, cin):
    """Per-tap weight packing + f32 HardConstraint matrices (M removes each r^2-group mean,
    Rt broadcasts x into the group).  The constraint itself is applied in f32 in-kernel."""
    r = params["r"]
    r2 = r * r
    w1, b1, w2, b2 = params["w1"], params["b1"], params["w2"], params["b2"]
    cmid = w1.shape[-1]
    cpk = cin * r2
    mf = jnp.kron(jnp.eye(cin, dtype=jnp.float32),
                  jnp.eye(r2, dtype=jnp.float32) - jnp.ones((r2, r2), jnp.float32) / r2)
    rt = jnp.kron(jnp.eye(cin, dtype=jnp.float32), jnp.ones((r2, 1), jnp.float32))
    w1t = w1.transpose(0, 1, 3, 2).reshape(9, cmid, cin).astype(jnp.bfloat16)   # (tap, O, I)
    w2t = w2.transpose(0, 1, 3, 2).reshape(9, cpk, cmid).astype(jnp.bfloat16)
    b1c = b1.reshape(cmid, 1).astype(jnp.float32)
    b2f = (mf @ b2.reshape(cpk, 1)).astype(jnp.float32)
    return w1t, b1c, w2t, mf, rt, b2f


def _build_tap_masks(H, W, nb):
    """(9, nb*H*W) bf16 {0,1}: tap (dy,dx) of output pixel (h,w) is valid iff the neighbour
    (h+dy-1, w+dx-1) lies inside the SAME image (handles row wrap and image seams)."""
    hw = H * W
    hh = jnp.arange(hw) // W
    ww = jnp.arange(hw) % W
    rows = []
    for dy in range(3):
        for dx in range(3):
            m = jnp.ones((hw,), jnp.bool_)
            if dy == 0:
                m = m & (hh > 0)
            if dy == 2:
                m = m & (hh < H - 1)
            if dx == 0:
                m = m & (ww > 0)
            if dx == 2:
                m = m & (ww < W - 1)
            rows.append(m)
    masks = jnp.stack(rows, axis=0).astype(jnp.bfloat16)        # (9, HW)
    return jnp.tile(masks, (1, nb))                              # (9, nb*HW)


def _pick_nb(n, hw, max_lanes=4096):
    """Images per grid step (lane-concatenated).  Prefer the largest divisor of n that keeps
    the lane count moderate; fall back to whole-batch-per-step if not 128-aligned."""
    best = 1
    for d in range(1, n + 1):
        if n % d == 0 and d * hw <= max_lanes:
            best = d
    if (best * hw) % 128 != 0 and best != n:
        best = n
    return best


def custom_model_forward(x_nchw, params):
    r = params["r"]
    N, cin, H, W = x_nchw.shape
    HW = H * W
    w1t, b1c, w2t, mf, rt, b2f = _fold_params(params, cin)
    nb = _pick_nb(N, HW)
    masks = _build_tap_masks(H, W, nb)

    # (N, Cin, H, W) -> (Cin, N*H*W): images concatenated along the lane axis (x is the
    # small LR tensor; the big HR output never takes an extra f32 round trip).
    xt = x_nchw.reshape(N, cin, HW).transpose(1, 0, 2).reshape(cin, N * HW)
    y = fused_sr_call(xt, masks, w1t, b1c, w2t, mf, rt, b2f, W=W, nb=nb, hw=HW)  # (Cpk, N*HW) bf16

    # PixelShuffle: packed channel c*r*r + i*r + j -> HR pixel (c, h*r+i, w*r+j).
    sr = (y.reshape(cin, r, r, N, H, W)
           .transpose(3, 0, 4, 1, 5, 2)
           .reshape(N, cin, H * r, W * r))
    return sr.astype(jnp.float32)


# ----------------------------------------------------------------------------
# Pure-JAX/XLA reference of the same CustomModel instantiation (for validation).
# ----------------------------------------------------------------------------
def reference_forward(x_nchw, params):
    r = params["r"]
    w1, b1, w2, b2 = params["w1"], params["b1"], params["w2"], params["b2"]
    dn = ("NCHW", "HWIO", "NCHW")
    f = jax.lax.conv_general_dilated(x_nchw, w1, (1, 1), "SAME", dimension_numbers=dn)
    f = jnp.maximum(f + b1.reshape(1, -1, 1, 1), 0.0)
    y = jax.lax.conv_general_dilated(f, w2, (1, 1), "SAME", dimension_numbers=dn)
    y = y + b2.reshape(1, -1, 1, 1)
    N, cpk, H, W = y.shape
    cin = cpk // (r * r)
    sr = y.reshape(N, cin, r, r, H, W).transpose(0, 1, 4, 2, 5, 3).reshape(N, cin, H * r, W * r)
    pooled = sr.reshape(N, cin, H, r, W, r).mean(axis=(3, 5))
    up = lambda t: jnp.repeat(jnp.repeat(t, r, axis=2), r, axis=3)
    return sr - up(pooled) + up(x_nchw)


if __name__ == "__main__":
    key = jax.random.PRNGKey(0)
    kx, kp = jax.random.split(key)

    N, Cin, H, W, R = 2, 4, 16, 16, 2
    x = jax.random.normal(kx, (N, Cin, H, W), jnp.float32)
    params = init_params(kp, cin=Cin, cmid=32, r=R)

    fwd = jax.jit(lambda a: custom_model_forward(a, params))
    out = jax.block_until_ready(fwd(x))
    assert out.shape == (N, Cin, H * R, W * R), out.shape

    # Correctness vs pure-JAX reference (loose tolerance: bf16 MXU operands, bf16 output).
    ref = jax.block_until_ready(reference_forward(x, params))
    err = float(jnp.max(jnp.abs(out - ref)))
    scale = float(jnp.max(jnp.abs(ref)))
    assert err <= 0.05 * scale + 0.05, (err, scale)

    # HardConstraint invariant: 2x2 block means of the SR output reproduce the LR input
    # (applied in f32 inside the kernel, so only bf16-output rounding remains).
    pooled = out.reshape(N, Cin, H, R, W, R).mean(axis=(3, 5))
    assert float(jnp.max(jnp.abs(pooled - x))) < 5e-2

    print("KERNEL_OK")
</pallas_src>

<mosaic_0001>
module attributes {stable_mosaic.version = 11 : i64} {
  func.func @fused_sr_kernel(%arg0: i32, %arg1: memref<4x512xf32, #tpu.memory_space<vmem>>, %arg2: memref<9x512xbf16, #tpu.memory_space<vmem>>, %arg3: memref<9x32x4xbf16, #tpu.memory_space<vmem>>, %arg4: memref<32x1xf32, #tpu.memory_space<vmem>>, %arg5: memref<9x16x32xbf16, #tpu.memory_space<vmem>>, %arg6: memref<16x16xf32, #tpu.memory_space<vmem>>, %arg7: memref<16x4xf32, #tpu.memory_space<vmem>>, %arg8: memref<16x1xf32, #tpu.memory_space<vmem>>, %arg9: memref<16x512xbf16, #tpu.memory_space<vmem>>, %arg10: memref<4x768xbf16, #tpu.memory_space<vmem>>, %arg11: memref<32x768xbf16, #tpu.memory_space<vmem>>) attributes {dimension_semantics = [#tpu.dimension_semantics<parallel>], iteration_bounds = array<i64: 1>, scalar_prefetch = 0 : i64, scratch_operands = 2 : i64, tpu.core_type = #tpu.core_type<tc>, window_params = [{transform_indices = @transform_0, window_bounds = array<i64: 4, 512>}, {pipeline_mode = #tpu.pipeline_mode<synchronous>, transform_indices = @transform_1, window_bounds = array<i64: 9, 512>}, {pipeline_mode = #tpu.pipeline_mode<synchronous>, transform_indices = @transform_2, window_bounds = array<i64: 9, 32, 4>}, {pipeline_mode = #tpu.pipeline_mode<synchronous>, transform_indices = @transform_3, window_bounds = array<i64: 32, 1>}, {pipeline_mode = #tpu.pipeline_mode<synchronous>, transform_indices = @transform_4, window_bounds = array<i64: 9, 16, 32>}, {pipeline_mode = #tpu.pipeline_mode<synchronous>, transform_indices = @transform_5, window_bounds = array<i64: 16, 16>}, {pipeline_mode = #tpu.pipeline_mode<synchronous>, transform_indices = @transform_6, window_bounds = array<i64: 16, 4>}, {pipeline_mode = #tpu.pipeline_mode<synchronous>, transform_indices = @transform_7, window_bounds = array<i64: 16, 1>}, {transform_indices = @transform_8, window_bounds = array<i64: 16, 512>}]} {
    %cst = arith.constant 0.000000e+00 : bf16
    %0 = vector.broadcast %cst : bf16 to vector<4x128xbf16>
    %c0 = arith.constant 0 : index
    %c0_0 = arith.constant 0 : index
    %1 = vector.load %arg10[%c0, %c0_0] : memref<4x768xbf16, #tpu.memory_space<vmem>>, vector<4x128xbf16>
    tpu.vector_store %arg10[%c0, %c0_0], %0 {strides = array<i32>} : memref<4x768xbf16, #tpu.memory_space<vmem>>, vector<4x128xbf16>,
    %cst_1 = arith.constant 0.000000e+00 : bf16
    %2 = vector.broadcast %cst_1 : bf16 to vector<4x128xbf16>
    %c0_2 = arith.constant 0 : index
    %c640 = arith.constant 640 : index
    %3 = vector.load %arg10[%c0_2, %c640] : memref<4x768xbf16, #tpu.memory_space<vmem>>, vector<4x128xbf16>
    tpu.vector_store %arg10[%c0_2, %c640], %2 {strides = array<i32>} : memref<4x768xbf16, #tpu.memory_space<vmem>>, vector<4x128xbf16>,
    %cst_3 = arith.constant 0.000000e+00 : bf16
    %4 = vector.broadcast %cst_3 : bf16 to vector<32x128xbf16>
    %c0_4 = arith.constant 0 : index
    %c0_5 = arith.constant 0 : index
    %5 = vector.load %arg11[%c0_4, %c0_5] : memref<32x768xbf16, #tpu.memory_space<vmem>>, vector<32x128xbf16>
    tpu.vector_store %arg11[%c0_4, %c0_5], %4 {strides = array<i32>} : memref<32x768xbf16, #tpu.memory_space<vmem>>, vector<32x128xbf16>,
    %cst_6 = arith.constant 0.000000e+00 : bf16
    %6 = vector.broadcast %cst_6 : bf16 to vector<32x128xbf16>
    %c0_7 = arith.constant 0 : index
    %c640_8 = arith.constant 640 : index
    %7 = vector.load %arg11[%c0_7, %c640_8] : memref<32x768xbf16, #tpu.memory_space<vmem>>, vector<32x128xbf16>
    tpu.vector_store %arg11[%c0_7, %c640_8], %6 {strides = array<i32>} : memref<32x768xbf16, #tpu.memory_space<vmem>>, vector<32x128xbf16>,
    %c0_9 = arith.constant 0 : index
    %c0_10 = arith.constant 0 : index
    %8 = vector.load %arg1[%c0_9, %c0_10] : memref<4x512xf32, #tpu.memory_space<vmem>>, vector<4x512xf32>
    %9 = arith.truncf %8 : vector<4x512xf32> to vector<4x512xbf16>
    %c0_11 = arith.constant 0 : index
    %c128 = arith.constant 128 : index
    %10 = vector.load %arg10[%c0_11, %c128] : memref<4x768xbf16, #tpu.memory_space<vmem>>, vector<4x512xbf16>
    tpu.vector_store %arg10[%c0_11, %c128], %9 {strides = array<i32>} : memref<4x768xbf16, #tpu.memory_space<vmem>>, vector<4x512xbf16>,
    %cst_12 = arith.constant 0.000000e+00 : f32
    %11 = vector.broadcast %cst_12 : f32 to vector<32x512xf32>
    %c0_13 = arith.constant 0 : index
    %c111 = arith.constant 111 : index
    %12 = vector.load %arg10[%c0_13, %c111] : memref<4x768xbf16, #tpu.memory_space<vmem>>, vector<4x512xbf16>
    %c0_14 = arith.constant 0 : index
    %c0_15 = arith.constant 0 : index
    %13 = vector.load %arg2[%c0_14, %c0_15] : memref<9x512xbf16, #tpu.memory_space<vmem>>, vector<1x512xbf16>
    %14 = vector.broadcast %13 : vector<1x512xbf16> to vector<4x512xbf16>
    %15 = arith.mulf %12, %14 : vector<4x512xbf16>
    %c0_16 = arith.constant 0 : index
    %c0_17 = arith.constant 0 : index
    %c0_18 = arith.constant 0 : index
    %16 = vector.load %arg3[%c0_16, %c0_17, %c0_18] : memref<9x32x4xbf16, #tpu.memory_space<vmem>>, vector<1x32x4xbf16>
    %17 = vector.shape_cast %16 : vector<1x32x4xbf16> to vector<32x4xbf16>
    %cst_19 = arith.constant dense<0.000000e+00> : vector<32x512xf32>
    %18 = tpu.matmul %17, %15, %cst_19 {dimension_numbers = #tpu.dot_dimension_numbers<[1], [0], [0], [1], [0, 0, 1, 1], [], []>} : vector<32x4xbf16>, vector<4x512xbf16>, vector<32x512xf32> -> vector<32x512xf32>
    %19 = arith.addf %11, %18 : vector<32x512xf32>
    %c0_20 = arith.constant 0 : index
    %c112 = arith.constant 112 : index
    %20 = vector.load %arg10[%c0_20, %c112] : memref<4x768xbf16, #tpu.memory_space<vmem>>, vector<4x512xbf16>
    %c1 = arith.constant 1 : index
    %c0_21 = arith.constant 0 : index
    %21 = vector.load %arg2[%c1, %c0_21] : memref<9x512xbf16, #tpu.memory_space<vmem>>, vector<1x512xbf16>
    %22 = vector.broadcast %21 : vector<1x512xbf16> to vector<4x512xbf16>
    %23 = arith.mulf %20, %22 : vector<4x512xbf16>
    %c1_22 = arith.constant 1 : index
    %c0_23 = arith.constant 0 : index
    %c0_24 = arith.constant 0 : index
    %24 = vector.load %arg3[%c1_22, %c0_23, %c0_24] : memref<9x32x4xbf16, #tpu.memory_space<vmem>>, vector<1x32x4xbf16>
    %25 = vector.shape_cast %24 : vector<1x32x4xbf16> to vector<32x4xbf16>
    %cst_25 = arith.constant dense<0.000000e+00> : vector<32x512xf32>
    %26 = tpu.matmul %25, %23, %cst_25 {dimension_numbers = #tpu.dot_dimension_numbers<[1], [0], [0], [1], [0, 0, 1, 1], [], []>} : vector<32x4xbf16>, vector<4x512xbf16>, vector<32x512xf32> -> vector<32x512xf32>
    %27 = arith.addf %19, %26 : vector<32x512xf32>
    %c0_26 = arith.constant 0 : index
    %c113 = arith.constant 113 : index
    %28 = vector.load %arg10[%c0_26, %c113] : memref<4x768xbf16, #tpu.memory_space<vmem>>, vector<4x512xbf16>
    %c2 = arith.constant 2 : index
    %c0_27 = arith.constant 0 : index
    %29 = vector.load %arg2[%c2, %c0_27] : memref<9x512xbf16, #tpu.memory_space<vmem>>, vector<1x512xbf16>
    %30 = vector.broadcast %29 : vector<1x512xbf16> to vector<4x512xbf16>
    %31 = arith.mulf %28, %30 : vector<4x512xbf16>
    %c2_28 = arith.constant 2 : index
    %c0_29 = arith.constant 0 : index
    %c0_30 = arith.constant 0 : index
    %32 = vector.load %arg3[%c2_28, %c0_29, %c0_30] : memref<9x32x4xbf16, #tpu.memory_space<vmem>>, vector<1x32x4xbf16>
    %33 = vector.shape_cast %32 : vector<1x32x4xbf16> to vector<32x4xbf16>
    %cst_31 = arith.constant dense<0.000000e+00> : vector<32x512xf32>
    %34 = tpu.matmul %33, %31, %cst_31 {dimension_numbers = #tpu.dot_dimension_numbers<[1], [0], [0], [1], [0, 0, 1, 1], [], []>} : vector<32x4xbf16>, vector<4x512xbf16>, vector<32x512xf32> -> vector<32x512xf32>
    %35 = arith.addf %27, %34 : vector<32x512xf32>
    %c0_32 = arith.constant 0 : index
    %c127 = arith.constant 127 : index
    %36 = vector.load %arg10[%c0_32, %c127] : memref<4x768xbf16, #tpu.memory_space<vmem>>, vector<4x512xbf16>
    %c3 = arith.constant 3 : index
    %c0_33 = arith.constant 0 : index
    %37 = vector.load %arg2[%c3, %c0_33] : memref<9x512xbf16, #tpu.memory_space<vmem>>, vector<1x512xbf16>
    %38 = vector.broadcast %37 : vector<1x512xbf16> to vector<4x512xbf16>
    %39 = arith.mulf %36, %38 : vector<4x512xbf16>
    %c3_34 = arith.constant 3 : index
    %c0_35 = arith.constant 0 : index
    %c0_36 = arith.constant 0 : index
    %40 = vector.load %arg3[%c3_34, %c0_35, %c0_36] : memref<9x32x4xbf16, #tpu.memory_space<vmem>>, vector<1x32x4xbf16>
    %41 = vector.shape_cast %40 : vector<1x32x4xbf16> to vector<32x4xbf16>
    %cst_37 = arith.constant dense<0.000000e+00> : vector<32x512xf32>
    %42 = tpu.matmul %41, %39, %cst_37 {dimension_numbers = #tpu.dot_dimension_numbers<[1], [0], [0], [1], [0, 0, 1, 1], [], []>} : vector<32x4xbf16>, vector<4x512xbf16>, vector<32x512xf32> -> vector<32x512xf32>
    %43 = arith.addf %35, %42 : vector<32x512xf32>
    %c0_38 = arith.constant 0 : index
    %c128_39 = arith.constant 128 : index
    %44 = vector.load %arg10[%c0_38, %c128_39] : memref<4x768xbf16, #tpu.memory_space<vmem>>, vector<4x512xbf16>
    %c4 = arith.constant 4 : index
    %c0_40 = arith.constant 0 : index
    %c0_41 = arith.constant 0 : index
    %45 = vector.load %arg3[%c4, %c0_40, %c0_41] : memref<9x32x4xbf16, #tpu.memory_space<vmem>>, vector<1x32x4xbf16>
    %46 = vector.shape_cast %45 : vector<1x32x4xbf16> to vector<32x4xbf16>
    %cst_42 = arith.constant dense<0.000000e+00> : vector<32x512xf32>
    %47 = tpu.matmul %46, %44, %cst_42 {dimension_numbers = #tpu.dot_dimension_numbers<[1], [0], [0], [1], [0, 0, 1, 1], [], []>} : vector<32x4xbf16>, vector<4x512xbf16>, vector<32x512xf32> -> vector<32x512xf32>
    %48 = arith.addf %43, %47 : vector<32x512xf32>
    %c0_43 = arith.constant 0 : index
    %c129 = arith.constant 129 : index
    %49 = vector.load %arg10[%c0_43, %c129] : memref<4x768xbf16, #tpu.memory_space<vmem>>, vector<4x512xbf16>
    %c5 = arith.constant 5 : index
    %c0_44 = arith.constant 0 : index
    %50 = vector.load %arg2[%c5, %c0_44] : memref<9x512xbf16, #tpu.memory_space<vmem>>, vector<1x512xbf16>
    %51 = vector.broadcast %50 : vector<1x512xbf16> to vector<4x512xbf16>
    %52 = arith.mulf %49, %51 : vector<4x512xbf16>
    %c5_45 = arith.constant 5 : index
    %c0_46 = arith.constant 0 : index
    %c0_47 = arith.constant 0 : index
    %53 = vector.load %arg3[%c5_45, %c0_46, %c0_47] : memref<9x32x4xbf16, #tpu.memory_space<vmem>>, vector<1x32x4xbf16>
    %54 = vector.shape_cast %53 : vector<1x32x4xbf16> to vector<32x4xbf16>
    %cst_48 = arith.constant dense<0.000000e+00> : vector<32x512xf32>
    %55 = tpu.matmul %54, %52, %cst_48 {dimension_numbers = #tpu.dot_dimension_numbers<[1], [0], [0], [1], [0, 0, 1, 1], [], []>} : vector<32x4xbf16>, vector<4x512xbf16>, vector<32x512xf32> -> vector<32x512xf32>
    %56 = arith.addf %48, %55 : vector<32x512xf32>
    %c0_49 = arith.constant 0 : index
    %c143 = arith.constant 143 : index
    %57 = vector.load %arg10[%c0_49, %c143] : memref<4x768xbf16, #tpu.memory_space<vmem>>, vector<4x512xbf16>
    %c6 = arith.constant 6 : index
    %c0_50 = arith.constant 0 : index
    %58 = vector.load %arg2[%c6, %c0_50] : memref<9x512xbf16, #tpu.memory_space<vmem>>, vector<1x512xbf16>
    %59 = vector.broadcast %58 : vector<1x512xbf16> to vector<4x512xbf16>
    %60 = arith.mulf %57, %59 : vector<4x512xbf16>
    %c6_51 = arith.constant 6 : index
    %c0_52 = arith.constant 0 : index
    %c0_53 = arith.constant 0 : index
    %61 = vector.load %arg3[%c6_51, %c0_52, %c0_53] : memref<9x32x4xbf16, #tpu.memory_space<vmem>>, vector<1x32x4xbf16>
    %62 = vector.shape_cast %61 : vector<1x32x4xbf16> to vector<32x4xbf16>
    %cst_54 = arith.constant dense<0.000000e+00> : vector<32x512xf32>
    %63 = tpu.matmul %62, %60, %cst_54 {dimension_numbers = #tpu.dot_dimension_numbers<[1], [0], [0], [1], [0, 0, 1, 1], [], []>} : vector<32x4xbf16>, vector<4x512xbf16>, vector<32x512xf32> -> vector<32x512xf32>
    %64 = arith.addf %56, %63 : vector<32x512xf32>
    %c0_55 = arith.constant 0 : index
    %c144 = arith.constant 144 : index
    %65 = vector.load %arg10[%c0_55, %c144] : memref<4x768xbf16, #tpu.memory_space<vmem>>, vector<4x512xbf16>
    %c7 = arith.constant 7 : index
    %c0_56 = arith.constant 0 : index
    %66 = vector.load %arg2[%c7, %c0_56] : memref<9x512xbf16, #tpu.memory_space<vmem>>, vector<1x512xbf16>
    %67 = vector.broadcast %66 : vector<1x512xbf16> to vector<4x512xbf16>
    %68 = arith.mulf %65, %67 : vector<4x512xbf16>
    %c7_57 = arith.constant 7 : index
    %c0_58 = arith.constant 0 : index
    %c0_59 = arith.constant 0 : index
    %69 = vector.load %arg3[%c7_57, %c0_58, %c0_59] : memref<9x32x4xbf16, #tpu.memory_space<vmem>>, vector<1x32x4xbf16>
    %70 = vector.shape_cast %69 : vector<1x32x4xbf16> to vector<32x4xbf16>
    %cst_60 = arith.constant dense<0.000000e+00> : vector<32x512xf32>
    %71 = tpu.matmul %70, %68, %cst_60 {dimension_numbers = #tpu.dot_dimension_numbers<[1], [0], [0], [1], [0, 0, 1, 1], [], []>} : vector<32x4xbf16>, vector<4x512xbf16>, vector<32x512xf32> -> vector<32x512xf32>
    %72 = arith.addf %64, %71 : vector<32x512xf32>
    %c0_61 = arith.constant 0 : index
    %c145 = arith.constant 145 : index
    %73 = vector.load %arg10[%c0_61, %c145] : memref<4x768xbf16, #tpu.memory_space<vmem>>, vector<4x512xbf16>
    %c8 = arith.constant 8 : index
    %c0_62 = arith.constant 0 : index
    %74 = vector.load %arg2[%c8, %c0_62] : memref<9x512xbf16, #tpu.memory_space<vmem>>, vector<1x512xbf16>
    %75 = vector.broadcast %74 : vector<1x512xbf16> to vector<4x512xbf16>
    %76 = arith.mulf %73, %75 : vector<4x512xbf16>
    %c8_63 = arith.constant 8 : index
    %c0_64 = arith.constant 0 : index
    %c0_65 = arith.constant 0 : index
    %77 = vector.load %arg3[%c8_63, %c0_64, %c0_65] : memref<9x32x4xbf16, #tpu.memory_space<vmem>>, vector<1x32x4xbf16>
    %78 = vector.shape_cast %77 : vector<1x32x4xbf16> to vector<32x4xbf16>
    %cst_66 = arith.constant dense<0.000000e+00> : vector<32x512xf32>
    %79 = tpu.matmul %78, %76, %cst_66 {dimension_numbers = #tpu.dot_dimension_numbers<[1], [0], [0], [1], [0, 0, 1, 1], [], []>} : vector<32x4xbf16>, vector<4x512xbf16>, vector<32x512xf32> -> vector<32x512xf32>
    %80 = arith.addf %72, %79 : vector<32x512xf32>
    %c0_67 = arith.constant 0 : index
    %c0_68 = arith.constant 0 : index
    %81 = vector.load %arg4[%c0_67, %c0_68] : memref<32x1xf32, #tpu.memory_space<vmem>>, vector<32x1xf32>
    %82 = vector.broadcast %81 : vector<32x1xf32> to vector<32x512xf32>
    %83 = arith.addf %80, %82 : vector<32x512xf32>
    %cst_69 = arith.constant 0.000000e+00 : f32
    %84 = vector.broadcast %cst_69 : f32 to vector<32x512xf32>
    %85 = arith.maximumf %83, %84 : vector<32x512xf32>
    %86 = arith.truncf %85 : vector<32x512xf32> to vector<32x512xbf16>
    %c0_70 = arith.constant 0 : index
    %c128_71 = arith.constant 128 : index
    %87 = vector.load %arg11[%c0_70, %c128_71] : memref<32x768xbf16, #tpu.memory_space<vmem>>, vector<32x512xbf16>
    tpu.vector_store %arg11[%c0_70, %c128_71], %86 {strides = array<i32>} : memref<32x768xbf16, #tpu.memory_space<vmem>>, vector<32x512xbf16>,
    %cst_72 = arith.constant 0.000000e+00 : f32
    %88 = vector.broadcast %cst_72 : f32 to vector<16x512xf32>
    %c0_73 = arith.constant 0 : index
    %c111_74 = arith.constant 111 : index
    %89 = vector.load %arg11[%c0_73, %c111_74] : memref<32x768xbf16, #tpu.memory_space<vmem>>, vector<32x512xbf16>
    %c0_75 = arith.constant 0 : index
    %c0_76 = arith.constant 0 : index
    %90 = vector.load %arg2[%c0_75, %c0_76] : memref<9x512xbf16, #tpu.memory_space<vmem>>, vector<1x512xbf16>
    %91 = vector.broadcast %90 : vector<1x512xbf16> to vector<32x512xbf16>
    %92 = arith.mulf %89, %91 : vector<32x512xbf16>
    %c0_77 = arith.constant 0 : index
    %c0_78 = arith.constant 0 : index
    %c0_79 = arith.constant 0 : index
    %93 = vector.load %arg5[%c0_77, %c0_78, %c0_79] : memref<9x16x32xbf16, #tpu.memory_space<vmem>>, vector<1x16x32xbf16>
    %94 = vector.shape_cast %93 : vector<1x16x32xbf16> to vector<16x32xbf16>
    %cst_80 = arith.constant dense<0.000000e+00> : vector<16x512xf32>
    %95 = tpu.matmul %94, %92, %cst_80 {dimension_numbers = #tpu.dot_dimension_numbers<[1], [0], [0], [1], [0, 0, 1, 1], [], []>} : vector<16x32xbf16>, vector<32x512xbf16>, vector<16x512xf32> -> vector<16x512xf32>
    %96 = arith.addf %88, %95 : vector<16x512xf32>
    %c0_81 = arith.constant 0 : index
    %c112_82 = arith.constant 112 : index
    %97 = vector.load %arg11[%c0_81, %c112_82] : memref<32x768xbf16, #tpu.memory_space<vmem>>, vector<32x512xbf16>
    %c1_83 = arith.constant 1 : index
    %c0_84 = arith.constant 0 : index
    %98 = vector.load %arg2[%c1_83, %c0_84] : memref<9x512xbf16, #tpu.memory_space<vmem>>, vector<1x512xbf16>
    %99 = vector.broadcast %98 : vector<1x512xbf16> to vector<32x512xbf16>
    %100 = arith.mulf %97, %99 : vector<32x512xbf16>
    %c1_85 = arith.constant 1 : index
    %c0_86 = arith.constant 0 : index
    %c0_87 = arith.constant 0 : index
    %101 = vector.load %arg5[%c1_85, %c0_86, %c0_87] : memref<9x16x32xbf16, #tpu.memory_space<vmem>>, vector<1x16x32xbf16>
    %102 = vector.shape_cast %101 : vector<1x16x32xbf16> to vector<16x32xbf16>
    %cst_88 = arith.constant dense<0.000000e+00> : vector<16x512xf32>
    %103 = tpu.matmul %102, %100, %cst_88 {dimension_numbers = #tpu.dot_dimension_numbers<[1], [0], [0], [1], [0, 0, 1, 1], [], []>} : vector<16x32xbf16>, vector<32x512xbf16>, vector<16x512xf32> -> vector<16x512xf32>
    %104 = arith.addf %96, %103 : vector<16x512xf32>
    %c0_89 = arith.constant 0 : index
    %c113_90 = arith.constant 113 : index
    %105 = vector.load %arg11[%c0_89, %c113_90] : memref<32x768xbf16, #tpu.memory_space<vmem>>, vector<32x512xbf16>
    %c2_91 = arith.constant 2 : index
    %c0_92 = arith.constant 0 : index
    %106 = vector.load %arg2[%c2_91, %c0_92] : memref<9x512xbf16, #tpu.memory_space<vmem>>, vector<1x512xbf16>
    %107 = vector.broadcast %106 : vector<1x512xbf16> to vector<32x512xbf16>
    %108 = arith.mulf %105, %107 : vector<32x512xbf16>
    %c2_93 = arith.constant 2 : index
    %c0_94 = arith.constant 0 : index
    %c0_95 = arith.constant 0 : index
    %109 = vector.load %arg5[%c2_93, %c0_94, %c0_95] : memref<9x16x32xbf16, #tpu.memory_space<vmem>>, vector<1x16x32xbf16>
    %110 = vector.shape_cast %109 : vector<1x16x32xbf16> to vector<16x32xbf16>
    %cst_96 = arith.constant dense<0.000000e+00> : vector<16x512xf32>
    %111 = tpu.matmul %110, %108, %cst_96 {dimension_numbers = #tpu.dot_dimension_numbers<[1], [0], [0], [1], [0, 0, 1, 1], [], []>} : vector<16x32xbf16>, vector<32x512xbf16>, vector<16x512xf32> -> vector<16x512xf32>
    %112 = arith.addf %104, %111 : vector<16x512xf32>
    %c0_97 = arith.constant 0 : index
    %c127_98 = arith.constant 127 : index
    %113 = vector.load %arg11[%c0_97, %c127_98] : memref<32x768xbf16, #tpu.memory_space<vmem>>, vector<32x512xbf16>
    %c3_99 = arith.constant 3 : index
    %c0_100 = arith.constant 0 : index
    %114 = vector.load %arg2[%c3_99, %c0_100] : memref<9x512xbf16, #tpu.memory_space<vmem>>, vector<1x512xbf16>
    %115 = vector.broadcast %114 : vector<1x512xbf16> to vector<32x512xbf16>
    %116 = arith.mulf %113, %115 : vector<32x512xbf16>
    %c3_101 = arith.constant 3 : index
    %c0_102 = arith.constant 0 : index
    %c0_103 = arith.constant 0 : index
    %117 = vector.load %arg5[%c3_101, %c0_102, %c0_103] : memref<9x16x32xbf16, #tpu.memory_space<vmem>>, vector<1x16x32xbf16>
    %118 = vector.shape_cast %117 : vector<1x16x32xbf16> to vector<16x32xbf16>
    %cst_104 = arith.constant dense<0.000000e+00> : vector<16x512xf32>
    %119 = tpu.matmul %118, %116, %cst_104 {dimension_numbers = #tpu.dot_dimension_numbers<[1], [0], [0], [1], [0, 0, 1, 1], [], []>} : vector<16x32xbf16>, vector<32x512xbf16>, vector<16x512xf32> -> vector<16x512xf32>
    %120 = arith.addf %112, %119 : vector<16x512xf32>
    %c0_105 = arith.constant 0 : index
    %c128_106 = arith.constant 128 : index
    %121 = vector.load %arg11[%c0_105, %c128_106] : memref<32x768xbf16, #tpu.memory_space<vmem>>, vector<32x512xbf16>
    %c4_107 = arith.constant 4 : index
    %c0_108 = arith.constant 0 : index
    %c0_109 = arith.constant 0 : index
    %122 = vector.load %arg5[%c4_107, %c0_108, %c0_109] : memref<9x16x32xbf16, #tpu.memory_space<vmem>>, vector<1x16x32xbf16>
    %123 = vector.shape_cast %122 : vector<1x16x32xbf16> to vector<16x32xbf16>
    %cst_110 = arith.constant dense<0.000000e+00> : vector<16x512xf32>
    %124 = tpu.matmul %123, %121, %cst_110 {dimension_numbers = #tpu.dot_dimension_numbers<[1], [0], [0], [1], [0, 0, 1, 1], [], []>} : vector<16x32xbf16>, vector<32x512xbf16>, vector<16x512xf32> -> vector<16x512xf32>
    %125 = arith.addf %120, %124 : vector<16x512xf32>
    %c0_111 = arith.constant 0 : index
    %c129_112 = arith.constant 129 : index
    %126 = vector.load %arg11[%c0_111, %c129_112] : memref<32x768xbf16, #tpu.memory_space<vmem>>, vector<32x512xbf16>
    %c5_113 = arith.constant 5 : index
    %c0_114 = arith.constant 0 : index
    %127 = vector.load %arg2[%c5_113, %c0_114] : memref<9x512xbf16, #tpu.memory_space<vmem>>, vector<1x512xbf16>
    %128 = vector.broadcast %127 : vector<1x512xbf16> to vector<32x512xbf16>
    %129 = arith.mulf %126, %128 : vector<32x512xbf16>
    %c5_115 = arith.constant 5 : index
    %c0_116 = arith.constant 0 : index
    %c0_117 = arith.constant 0 : index
    %130 = vector.load %arg5[%c5_115, %c0_116, %c0_117] : memref<9x16x32xbf16, #tpu.memory_space<vmem>>, vector<1x16x32xbf16>
    %131 = vector.shape_cast %130 : vector<1x16x32xbf16> to vector<16x32xbf16>
    %cst_118 = arith.constant dense<0.000000e+00> : vector<16x512xf32>
    %132 = tpu.matmul %131, %129, %cst_118 {dimension_numbers = #tpu.dot_dimension_numbers<[1], [0], [0], [1], [0, 0, 1, 1], [], []>} : vector<16x32xbf16>, vector<32x512xbf16>, vector<16x512xf32> -> vector<16x512xf32>
    %133 = arith.addf %125, %132 : vector<16x512xf32>
    %c0_119 = arith.constant 0 : index
    %c143_120 = arith.constant 143 : index
    %134 = vector.load %arg11[%c0_119, %c143_120] : memref<32x768xbf16, #tpu.memory_space<vmem>>, vector<32x512xbf16>
    %c6_121 = arith.constant 6 : index
    %c0_122 = arith.constant 0 : index
    %135 = vector.load %arg2[%c6_121, %c0_122] : memref<9x512xbf16, #tpu.memory_space<vmem>>, vector<1x512xbf16>
    %136 = vector.broadcast %135 : vector<1x512xbf16> to vector<32x512xbf16>
    %137 = arith.mulf %134, %136 : vector<32x512xbf16>
    %c6_123 = arith.constant 6 : index
    %c0_124 = arith.constant 0 : index
    %c0_125 = arith.constant 0 : index
    %138 = vector.load %arg5[%c6_123, %c0_124, %c0_125] : memref<9x16x32xbf16, #tpu.memory_space<vmem>>, vector<1x16x32xbf16>
    %139 = vector.shape_cast %138 : vector<1x16x32xbf16> to vector<16x32xbf16>
    %cst_126 = arith.constant dense<0.000000e+00> : vector<16x512xf32>
    %140 = tpu.matmul %139, %137, %cst_126 {dimension_numbers = #tpu.dot_dimension_numbers<[1], [0], [0], [1], [0, 0, 1, 1], [], []>} : vector<16x32xbf16>, vector<32x512xbf16>, vector<16x512xf32> -> vector<16x512xf32>
    %141 = arith.addf %133, %140 : vector<16x512xf32>
    %c0_127 = arith.constant 0 : index
    %c144_128 = arith.constant 144 : index
    %142 = vector.load %arg11[%c0_127, %c144_128] : memref<32x768xbf16, #tpu.memory_space<vmem>>, vector<32x512xbf16>
    %c7_129 = arith.constant 7 : index
    %c0_130 = arith.constant 0 : index
    %143 = vector.load %arg2[%c7_129, %c0_130] : memref<9x512xbf16, #tpu.memory_space<vmem>>, vector<1x512xbf16>
    %144 = vector.broadcast %143 : vector<1x512xbf16> to vector<32x512xbf16>
    %145 = arith.mulf %142, %144 : vector<32x512xbf16>
    %c7_131 = arith.constant 7 : index
    %c0_132 = arith.constant 0 : index
    %c0_133 = arith.constant 0 : index
    %146 = vector.load %arg5[%c7_131, %c0_132, %c0_133] : memref<9x16x32xbf16, #tpu.memory_space<vmem>>, vector<1x16x32xbf16>
    %147 = vector.shape_cast %146 : vector<1x16x32xbf16> to vector<16x32xbf16>
    %cst_134 = arith.constant dense<0.000000e+00> : vector<16x512xf32>
    %148 = tpu.matmul %147, %145, %cst_134 {dimension_numbers = #tpu.dot_dimension_numbers<[1], [0], [0], [1], [0, 0, 1, 1], [], []>} : vector<16x32xbf16>, vector<32x512xbf16>, vector<16x512xf32> -> vector<16x512xf32>
    %149 = arith.addf %141, %148 : vector<16x512xf32>
    %c0_135 = arith.constant 0 : index
    %c145_136 = arith.constant 145 : index
    %150 = vector.load %arg11[%c0_135, %c145_136] : memref<32x768xbf16, #tpu.memory_space<vmem>>, vector<32x512xbf16>
    %c8_137 = arith.constant 8 : index
    %c0_138 = arith.constant 0 : index
    %151 = vector.load %arg2[%c8_137, %c0_138] : memref<9x512xbf16, #tpu.memory_space<vmem>>, vector<1x512xbf16>
    %152 = vector.broadcast %151 : vector<1x512xbf16> to vector<32x512xbf16>
    %153 = arith.mulf %150, %152 : vector<32x512xbf16>
    %c8_139 = arith.constant 8 : index
    %c0_140 = arith.constant 0 : index
    %c0_141 = arith.constant 0 : index
    %154 = vector.load %arg5[%c8_139, %c0_140, %c0_141] : memref<9x16x32xbf16, #tpu.memory_space<vmem>>, vector<1x16x32xbf16>
    %155 = vector.shape_cast %154 : vector<1x16x32xbf16> to vector<16x32xbf16>
    %cst_142 = arith.constant dense<0.000000e+00> : vector<16x512xf32>
    %156 = tpu.matmul %155, %153, %cst_142 {dimension_numbers = #tpu.dot_dimension_numbers<[1], [0], [0], [1], [0, 0, 1, 1], [], []>} : vector<16x32xbf16>, vector<32x512xbf16>, vector<16x512xf32> -> vector<16x512xf32>
    %157 = arith.addf %149, %156 : vector<16x512xf32>
    %c0_143 = arith.constant 0 : index
    %c0_144 = arith.constant 0 : index
    %158 = vector.load %arg6[%c0_143, %c0_144] : memref<16x16xf32, #tpu.memory_space<vmem>>, vector<16x16xf32>
    %cst_145 = arith.constant dense<0.000000e+00> : vector<16x512xf32>
    %159 = tpu.matmul %158, %157, %cst_145 {dimension_numbers = #tpu.dot_dimension_numbers<[1], [0], [0], [1], [0, 0, 1, 1], [], []>} : vector<16x16xf32>, vector<16x512xf32>, vector<16x512xf32> -> vector<16x512xf32>
    %c0_146 = arith.constant 0 : index
    %c0_147 = arith.constant 0 : index
    %160 = vector.load %arg7[%c0_146, %c0_147] : memref<16x4xf32, #tpu.memory_space<vmem>>, vector<16x4xf32>
    %cst_148 = arith.constant dense<0.000000e+00> : vector<16x512xf32>
    %161 = tpu.matmul %160, %8, %cst_148 {dimension_numbers = #tpu.dot_dimension_numbers<[1], [0], [0], [1], [0, 0, 1, 1], [], []>} : vector<16x4xf32>, vector<4x512xf32>, vector<16x512xf32> -> vector<16x512xf32>
    %162 = arith.addf %159, %161 : vector<16x512xf32>
    %c0_149 = arith.constant 0 : index
    %c0_150 = arith.constant 0 : index
    %163 = vector.load %arg8[%c0_149, %c0_150] : memref<16x1xf32, #tpu.memory_space<vmem>>, vector<16x1xf32>
    %164 = vector.broadcast %163 : vector<16x1xf32> to vector<16x512xf32>
    %165 = arith.addf %162, %164 : vector<16x512xf32>
    %166 = arith.truncf %165 : vector<16x512xf32> to vector<16x512xbf16>
    %c0_151 = arith.constant 0 : index
    %c0_152 = arith.constant 0 : index
    %167 = vector.load %arg9[%c0_151, %c0_152] : memref<16x512xbf16, #tpu.memory_space<vmem>>, vector<16x512xbf16>
    tpu.vector_store %arg9[%c0_151, %c0_152], %166 {strides = array<i32>} : memref<16x512xbf16, #tpu.memory_space<vmem>>, vector<16x512xbf16>,
    return
  }
  func.func @transform_0(%arg0: i32) -> (i32, i32) {
    %c0_i32 = arith.constant 0 : i32
    %c0_i32_0 = arith.constant 0 : i32
    return %c0_i32, %arg0 : i32, i32
  }
  func.func @transform_1(%arg0: i32) -> (i32, i32) {
    %c0_i32 = arith.constant 0 : i32
    %c0_i32_0 = arith.constant 0 : i32
    %c0_i32_1 = arith.constant 0 : i32
    return %c0_i32, %c0_i32_0 : i32, i32
  }
  func.func @transform_2(%arg0: i32) -> (i32, i32, i32) {
    %c0_i32 = arith.constant 0 : i32
    %c0_i32_0 = arith.constant 0 : i32
    %c0_i32_1 = arith.constant 0 : i32
    %c0_i32_2 = arith.constant 0 : i32
    return %c0_i32, %c0_i32_0, %c0_i32_1 : i32, i32, i32
  }
  func.func @transform_3(%arg0: i32) -> (i32, i32) {
    %c0_i32 = arith.constant 0 : i32
    %c0_i32_0 = arith.constant 0 : i32
    %c0_i32_1 = arith.constant 0 : i32
    return %c0_i32, %c0_i32_0 : i32, i32
  }
  func.func @transform_4(%arg0: i32) -> (i32, i32, i32) {
    %c0_i32 = arith.constant 0 : i32
    %c0_i32_0 = arith.constant 0 : i32
    %c0_i32_1 = arith.constant 0 : i32
    %c0_i32_2 = arith.constant 0 : i32
    return %c0_i32, %c0_i32_0, %c0_i32_1 : i32, i32, i32
  }
  func.func @transform_5(%arg0: i32) -> (i32, i32) {
    %c0_i32 = arith.constant 0 : i32
    %c0_i32_0 = arith.constant 0 : i32
    %c0_i32_1 = arith.constant 0 : i32
    return %c0_i32, %c0_i32_0 : i32, i32
  }
  func.func @transform_6(%arg0: i32) -> (i32, i32) {
    %c0_i32 = arith.constant 0 : i32
    %c0_i32_0 = arith.constant 0 : i32
    %c0_i32_1 = arith.constant 0 : i32
    return %c0_i32, %c0_i32_0 : i32, i32
  }
  func.func @transform_7(%arg0: i32) -> (i32, i32) {
    %c0_i32 = arith.constant 0 : i32
    %c0_i32_0 = arith.constant 0 : i32
    %c0_i32_1 = arith.constant 0 : i32
    return %c0_i32, %c0_i32_0 : i32, i32
  }
  func.func @transform_8(%arg0: i32) -> (i32, i32) {
    %c0_i32 = arith.constant 0 : i32
    %c0_i32_0 = arith.constant 0 : i32
    return %c0_i32, %arg0 : i32, i32
  }
}

</mosaic_0001>

<bundles_post_ra>
// kernel: _lambda_.1
= control target key start
LH: loop header
LB: loop body
LE: loop exit
PB: predicated region body
PF: predicated region fallthrough
CT: control target
= control target key end

     0   :  { %v61_v0 = vlaneseq  ;;  %v5480_v1 = vmov 1983009808   ;;  %v7368_v6 = vmov 0   ;;  %s5482_s21 = smov 112   ;;  %s5483_s22 = smov 111   ;;  %vm203_vm0 = vcmask 916480   ;;  %s7359_s1 = inlined_call_operand.vmem [shape: bf16[9,512], index: 1, kind: input, shape index: {}]   ;;  %s7360_s0 = inlined_call_operand.vmem [shape: f32[4,512], index: 0, kind: input, shape index: {}]   ;;  %s7361_s2 = inlined_call_operand.vmem [shape: bf16[9,32,4], index: 2, kind: input, shape index: {}]   ;;  %s7362_s3 = inlined_call_operand.vmem [shape: f32[32,1], index: 3, kind: input, shape index: {}]   ;;  %s7363_s4 = inlined_call_operand.vmem [shape: bf16[9,16,32], index: 4, kind: input, shape index: {}]   ;;  %s7364_s7 = inlined_call_operand.vmem [shape: f32[16,1], index: 7, kind: input, shape index: {}]   ;;  %s7365_s6 = inlined_call_operand.vmem [shape: f32[16,4], index: 6, kind: input, shape index: {}]   ;;  %s7366_s5 = inlined_call_operand.vmem [shape: f32[16,16], index: 5, kind: input, shape index: {}]   ;;  %s7367_s8 = inlined_call_operand.vmem [shape: bf16[16,512], index: 8, kind: output, shape index: {}]  }
   0x1   :  { %v59_v2 = vunpack.c.l.s4 %v5480_v1  ;;  %v77_v3 = vld [vmem:[%s7359_s1] sm:$0x11]  ;;  %v78_v4 = vld [vmem:[%s7359_s1 + $0x8] sm:$0x11]  ;;  %v568_v5 = vld [vmem:[%s7359_s1] sm:$0x22]  ;;  %317 = vmatprep.mubr.bf16.mxu0 %v7368_v6  ;;  %370 = vmatprep.mubr.bf16.mxu1 %v7368_v6 }
   0x2   :  { %30 = vst [vmem:[#allocation2] sm:$0x3] %v7368_v6  ;;  %31 = vst [vmem:[#allocation2 + $0xa] sm:$0x3] %v7368_v6  ;;  %v5557_v7 = vshrl.u32 %v61_v0, 7  ;;  %v5038_v8 = vcombine.low %v77_v3, %v77_v3  ;;  %v5039_v9 = vcombine.high %v77_v3, %v77_v3  ;;  %v5040_v10 = vcombine.low %v78_v4, %v78_v4  ;;  %v40_v62 = vld [vmem:[%s7360_s0] sm:$0xff] }
   0x3   :  { %32 = vst [vmem:[#allocation3] sm:$0xf] %v7368_v6  ;;  %33 = vst [vmem:[#allocation3 + $0x18] sm:$0xf] %v7368_v6  ;;  %5385 = vset.pattern.permute.xlu1 %v7368_v6  ;;  %5384 = vset.pattern.permute.xlu0 %v7368_v6  ;;  %v60_v11 = vunpack.c.0.s8 %v59_v2  ;;  %v5041_v12 = vcombine.high %v78_v4, %v78_v4  ;;  %v5062_v13 = vcombine.low %v568_v5, %v568_v5  ;;  %v569_v27 = vld [vmem:[%s7359_s1 + $0x8] sm:$0x22] }
   0x4   :  { %34 = vst [vmem:[#allocation3 + $0x30] sm:$0xf] %v7368_v6  ;;  %35 = vst [vmem:[#allocation3 + $0x48] sm:$0xf] %v7368_v6  ;;  %v5063_v14 = vcombine.high %v568_v5, %v568_v5  ;;  %v5562_v15 = vsub.s32 0, %v5557_v7  ;;  %v151_v16 = vshrl.u32 %v5038_v8, 16  ;;  %v90_v21 = vpack.i.b16 %v5038_v8, %v5038_v8 }
   0x5   :  { %36 = vst [vmem:[#allocation3 + $0x14] sm:$0xf] %v7368_v6  ;;  %37 = vst [vmem:[#allocation3 + $0x2c] sm:$0xf] %v7368_v6  ;;  %v158_v17 = vshrl.u32 %v5039_v9, 16  ;;  %v165_v18 = vshrl.u32 %v5040_v10, 16  ;;  %v5565_v19 = vsub.s32 %v60_v11, %v5557_v7  ;;  %v97_v22 = vpack.i.b16 %v5039_v9, %v5039_v9 }
   0x6   :  { %38 = vst [vmem:[#allocation3 + $0x44] sm:$0xf] %v7368_v6  ;;  %39 = vst [vmem:[#allocation3 + $0x5c] sm:$0xf] %v7368_v6  ;;  %v172_v20 = vshrl.u32 %v5041_v12, 16  ;;  %v152_v23 = vpack.i.b16 %v151_v16, %v151_v16  ;;  %v104_v26 = vpack.i.b16 %v5040_v10, %v5040_v10  ;;  %v95_v29 = vrot.slane %v90_v21, %v5562_v15  ;;  %v41_v63 = vld [vmem:[%s7360_s0 + $0x8] sm:$0xff] }
   0x7   :  { %v159_v24 = vpack.i.b16 %v158_v17, %v158_v17  ;;  %v166_v25 = vpack.i.b16 %v165_v18, %v165_v18  ;;  %v102_v30 = vrot.slane %v97_v22, %v5562_v15  ;;  %v111_v31 = vpack.i.b16 %v5041_v12, %v5041_v12  ;;  %v836_v44 = vld [vmem:[%s7359_s1] sm:$0x22]  ;;  %v837_v49 = vld [vmem:[%s7359_s1 + $0x8] sm:$0x22]  ;;  %s5484_s23 = smov 113   ;;  %s5485_s24 = smov 127  }
   0x8   :  { %v173_v28 = vpack.i.b16 %v172_v20, %v172_v20  ;;  %v157_v32 = vrot.slane %v152_v23, %v5562_v15  ;;  %v109_v35 = vrot.slane %v104_v26, %v5562_v15  ;;  %v5064_v39 = vcombine.low %v569_v27, %v569_v27  ;;  %s5486_s11 = smov 16   ;;  %s5487_s16 = smov 1  }
   0x9   :  { %v164_v33 = vrot.slane %v159_v24, %v5562_v15  ;;  %v171_v34 = vrot.slane %v166_v25, %v5562_v15  ;;  %v116_v37 = vrot.slane %v111_v31, %v5562_v15  ;;  %v121_v38 = vcombine.low %v95_v29, %v102_v30  ;;  %s5488_s17 = smov 17   ;;  %s5489_s26 = smov 15  }
   0xa   :  { %v178_v36 = vrot.slane %v173_v28, %v5562_v15  ;;  %v5065_v41 = vcombine.high %v569_v27, %v569_v27  ;;  %v581_v42 = vpack.i.b16 %v5062_v13, %v5062_v13  ;;  %v5579_v43 = vsub.s32 1, %v5557_v7 }
   0xb   :  { %v183_v40 = vcombine.low %v157_v32, %v164_v33  ;;  %v122_v46 = vcombine.low %v109_v35, %v116_v37  ;;  %v129_v47 = vrot.slane %v121_v38, %v5565_v19  ;;  %v588_v48 = vpack.i.b16 %v5063_v14, %v5063_v14  ;;  %v1283_v37 = vld [vmem:[%s7359_s1 + $0x8] sm:$0x44] }
   0xc   :  { %v184_v45 = vcombine.low %v171_v34, %v178_v36  ;;  %v586_v51 = vrot.slane %v581_v42, %v5579_v43  ;;  %v595_v52 = vpack.i.b16 %v5064_v39, %v5064_v39  ;;  %v602_v53 = vpack.i.b16 %v5065_v41, %v5065_v41  ;;  %v1282_v36 = vld [vmem:[%s7359_s1] sm:$0x44] }
   0xd   :  { %v191_v50 = vrot.slane %v183_v40, %v5565_v19  ;;  %v136_v55 = vrot.slane %v122_v46, %v5565_v19  ;;  %v593_v56 = vrot.slane %v588_v48, %v5579_v43  ;;  %v5078_v57 = vcombine.low %v836_v44, %v836_v44 }
   0xe   :  { %v198_v54 = vrot.slane %v184_v45, %v5565_v19  ;;  %v600_v58 = vrot.slane %v595_v52, %v5579_v43  ;;  %v607_v59 = vrot.slane %v602_v53, %v5579_v43  ;;  %v5079_v60 = vcombine.high %v836_v44, %v836_v44  ;;  %v1552_v53 = vld [vmem:[%s7359_s1] sm:$0x88] }
   0xf   :  { %v5080_v61 = vcombine.low %v837_v49, %v837_v49  ;;  %v137_v1 = vcombine.low %v129_v47, %v136_v55  ;;  %v612_v2 = vcombine.low %v586_v51, %v593_v56  ;;  %v5081_v3 = vcombine.high %v837_v49, %v837_v49  ;;  %v1553_v56 = vld [vmem:[%s7359_s1 + $0x8] sm:$0x88] }
  0x10   :  { %v199_v0 = vcombine.low %v191_v50, %v198_v54  ;;  %v613_v4 = vcombine.low %v600_v58, %v607_v59  ;;  %v849_v5 = vshrl.u32 %v5078_v57, 16  ;;  %v857_v8 = vshrl.u32 %v5079_v60, 16 }
  0x11   :  { %v865_v9 = vshrl.u32 %v5080_v61, 16  ;;  %v620_v10 = vrot.slane %v612_v2, %v5565_v19  ;;  %v873_v11 = vshrl.u32 %v5081_v3, 16  ;;  %v5603_v12 = vcombine.high %v40_v62, %v40_v62 }
  0x12   :  { %200 = vrot.lane.b32.xlu0 %v199_v0, %s5482_s21  ;;  %v5605_v13 = vcombine.high %v41_v63, %v41_v63  ;;  %v627_v14 = vrot.slane %v613_v4, %v5565_v19  ;;  %v850_v16 = vpack.i.b16 %v849_v5, %v849_v5  ;;  %v858_v17 = vpack.i.b16 %v857_v8, %v857_v8 }
  0x13   :  { %7428 = vst [vmem:[#allocation4_spill] sm:$0xff] %v5603_v12  ;;  %v866_v18 = vpack.i.b16 %v865_v9, %v865_v9  ;;  %v874_v20 = vpack.i.b16 %v873_v11, %v873_v11  ;;  %v5036_v21 = vpack.c.bf16 %v5603_v12, %v40_v62  ;;  %v5106_v38 = vcombine.low %v1282_v36, %v1282_v36 }
  0x14   :  { %7429 = vst [vmem:[#allocation5_spill] sm:$0xff] %v5605_v13  ;;  %v5037_v22 = vpack.c.bf16 %v5605_v13, %v41_v63  ;;  %v628_v23 = vcombine.low %v620_v10, %v627_v14  ;;  %v855_v24 = vrot.slane %v850_v16, %v5579_v43  ;;  %v863_v25 = vrot.slane %v858_v17, %v5579_v43 }
  0x15   :  { %v871_v26 = vrot.slane %v866_v18, %v5579_v43  ;;  %v879_v27 = vrot.slane %v874_v20, %v5579_v43  ;;  %v64_v28 = vrot.slane %v5036_v21, %v5565_v19  ;;  %v5107_v39 = vcombine.high %v1282_v36, %v1282_v36 }
  0x16   :  { %138 = vrot.lane.b32.xlu0 %v137_v1, %s5483_s22  ;;  %v5617_v29 = vrot.slane %v5037_v22, %v5565_v19  ;;  %629 = vrot.lane.b32.xlu1 %v628_v23, %s5484_s23  ;;  %v884_v30 = vcombine.low %v855_v24, %v863_v25  ;;  %v5108_v40 = vcombine.low %v1283_v37, %v1283_v37  ;;  %v1295_v42 = vshrl.u32 %v5106_v38, 16  ;;  %v1818_v23 = vld [vmem:[%s7359_s1] sm:$0x88] }
  0x17   :  { %v885_v31 = vcombine.low %v871_v26, %v879_v27  ;;  %v5109_v41 = vcombine.high %v1283_v37, %v1283_v37  ;;  %v1303_v44 = vshrl.u32 %v5107_v39, 16  ;;  %v5634_v47 = vsub.s32 2, %v5557_v7 }
  0x18   :  { %v5621_v32 = vcombine.low %v64_v28, %v5617_v29  ;;  %v892_v33 = vrot.slane %v884_v30, %v5565_v19  ;;  %v1311_v45 = vshrl.u32 %v5108_v40, 16  ;;  %v1296_v48 = vpack.i.b16 %v1295_v42, %v1295_v42  ;;  %v1819_v30 = vld [vmem:[%s7359_s1 + $0x8] sm:$0x88] }
  0x19   :  { %v899_v34 = vrot.slane %v885_v31, %v5565_v19  ;;  %v1319_v46 = vshrl.u32 %v5109_v41, 16  ;;  %v1304_v49 = vpack.i.b16 %v1303_v44, %v1303_v44  ;;  %v5122_v62 = vcombine.low %v1552_v53, %v1552_v53 }
  0x1a   :  { %74 = vst [vmem:[#allocation2 + $0x2] sm:$0xff] %v5621_v32  ;;  %v1312_v50 = vpack.i.b16 %v1311_v45, %v1311_v45  ;;  %v1301_v57 = vrot.slane %v1296_v48, %v5634_v47  ;;  %v5123_v63 = vcombine.high %v1552_v53, %v1552_v53  ;;  %vm141_vm1 = vcmask 908288  }
  0x1b   :  { %v900_v35 = vcombine.low %v892_v33, %v899_v34  ;;  %v1320_v51 = vpack.i.b16 %v1319_v46, %v1319_v46  ;;  %v1309_v58 = vrot.slane %v1304_v49, %v5634_v47  ;;  %v5124_v2 = vcombine.low %v1553_v56, %v1553_v56 }
  0x1c   :  { %v1317_v59 = vrot.slane %v1312_v50, %v5634_v47  ;;  %v5125_v3 = vcombine.high %v1553_v56, %v1553_v56  ;;  %v5654_v5 = vsub.s32 3, %v5557_v7  ;;  %v1565_v17 = vpack.i.b16 %v5122_v62, %v5122_v62 }
  0x1d   :  { %901 = vrot.lane.b32.xlu1 %v900_v35, %s5485_s24  ;;  %v1325_v60 = vrot.slane %v1320_v51, %v5634_v47  ;;  %v1330_v11 = vcombine.low %v1301_v57, %v1309_v58  ;;  %v1572_v18 = vpack.i.b16 %v5123_v63, %v5123_v63  ;;  %v1579_v22 = vpack.i.b16 %v5124_v2, %v5124_v2 }
  0x1e   :  { %v1586_v7 = vpack.i.b16 %v5125_v3, %v5125_v3  ;;  %v1570_v31 = vrot.slane %v1565_v17, %v5654_v5  ;;  %v5138_v37 = vcombine.low %v1818_v23, %v1818_v23  ;;  %v5139_v39 = vcombine.high %v1818_v23, %v1818_v23 }
  0x1f   :  { %v1331_v14 = vcombine.low %v1317_v59, %v1325_v60  ;;  %v1338_v26 = vrot.slane %v1330_v11, %v5565_v19  ;;  %v1577_v33 = vrot.slane %v1572_v18, %v5654_v5  ;;  %v1584_v35 = vrot.slane %v1579_v22, %v5654_v5  ;;  %v2088_v18 = vld [vmem:[%s7359_s1 + $0x10] sm:$0x11] }
  0x20   :  { %v1591_v36 = vrot.slane %v1586_v7, %v5654_v5  ;;  %v5140_v40 = vcombine.low %v1819_v30, %v1819_v30  ;;  %v5141_v41 = vcombine.high %v1819_v30, %v1819_v30  ;;  %vm632_vm2 = vcmask 924672  }
  0x21   :  { %v5639_v54 = vld [vmem:[#allocation2] sm:$0xff]  ;;  %v76_v8 = vld [vmem:[#allocation2 + $0x8] sm:$0x3]  ;;  %v1345_v27 = vrot.slane %v1331_v14, %v5565_v19  ;;  %v1596_v48 = vcombine.low %v1570_v31, %v1577_v33  ;;  %v1831_v49 = vshrl.u32 %v5138_v37, 16  ;;  %v1839_v50 = vshrl.u32 %v5139_v39, 16 }
  0x22   :  { %v1847_v51 = vshrl.u32 %v5140_v40, 16  ;;  %v1597_v56 = vcombine.low %v1584_v35, %v1591_v36  ;;  %vm904_vm3 = vcmask 1039360   ;;  %v567_v22 = vld [vmem:[#allocation2 + $0x8] sm:$0x3]  ;;  %vm260_vm4 = vcmask 130048  }
  0x23   :  { %v1346_v44 = vcombine.low %v1338_v26, %v1345_v27  ;;  %v1604_v58 = vrot.slane %v1596_v48, %v5565_v19  ;;  %v1832_v59 = vpack.i.b16 %v1831_v49, %v1831_v49  ;;  %v1840_v60 = vpack.i.b16 %v1839_v50, %v1839_v50 }
  0x24   :  { %v1611_v2 = vrot.slane %v1597_v56, %v5565_v19  ;;  %vm272_vm5 = vcmask 1041408   ;;  %vm265_vm6 = vcmask 31744   ;;  %vm961_vm7 = vcmask 7168  }
  0x25   :  { %vm437_vm8 = vcmask 138240   ;;  %vm689_vm9 = vcmask 121856   ;;  %vm2533_vm10 = vcmask 1043456   ;;  %vm2701_vm11 = vcmask 261120  }
  0x84   :  { %v201_v52 = vpop.permute.xlu0 %200 }
  0x85   :  { %v202_v55 = vrot.slane %v201_v52, 6 }
  0x87   :  { %v204_v61 = vsel %vm203_vm0, %v202_v55, %v201_v52  ;;  %v208_v24 = vmul.bf16 %v202_v55, %v76_v8  ;;  %v1855_v52 = vshrl.u32 %v5141_v41, 16 }
  0x88   :  { %v207_v0 = vmul.bf16 %v204_v61, %v5639_v54  ;;  %v5650_v1 = vpop.permute.xlu0 %138  ;;  %v5668_v28 = vpop.permute.xlu1 %629  ;;  %v1848_v61 = vpack.i.b16 %v1847_v51, %v1847_v51  ;;  %v835_v51 = vld [vmem:[#allocation2 + $0x8] sm:$0x3] }
  0x89   :  { %v140_v4 = vrot.slane %v5650_v1, 6  ;;  %v631_v38 = vrot.slane %v5668_v28, 6  ;;  %v249_v42 = vrot.slane %v208_v24, %v5565_v19  ;;  %v1856_v62 = vpack.i.b16 %v1855_v52, %v1855_v52 }
  0x8a   :  { %v233_v9 = vrot.slane %v207_v0, %v5565_v19  ;;  %v226_v10 = vcombine.high %v207_v0, %v207_v0  ;;  %v1853_v11 = vrot.slane %v1848_v61, %v5654_v5  ;;  %v5154_v24 = vcombine.low %v2088_v18, %v2088_v18 }
  0x8b   :  { %v142_v16 = vsel %vm141_vm1, %v140_v4, %v5650_v1  ;;  %v633_v57 = vsel %vm632_vm2, %v631_v38, %v5668_v28  ;;  %v146_v63 = vmul.bf16 %v140_v4, %v76_v8  ;;  %v1861_v14 = vrot.slane %v1856_v62, %v5654_v5 }
  0x8c   :  { %250 = vrot.lane.b32.xlu0 %v233_v9, %s5486_s11  ;;  %v241_v20 = vcombine.high %v233_v9, %v233_v9  ;;  %v240_v21 = vrot.slane %v226_v10, %v5565_v19  ;;  %v145_v25 = vmul.bf16 %v142_v16, %v5639_v54  ;;  %v636_v0 = vmul.bf16 %v633_v57, %v5639_v54 }
  0x8d   :  { %v1837_v9 = vrot.slane %v1832_v59, %v5654_v5  ;;  %v1845_v10 = vrot.slane %v1840_v60, %v5654_v5  ;;  %v426_v4 = vrot.slane %v146_v63, %v5565_v19  ;;  %v1612_v8 = vcombine.low %v1604_v58, %v1611_v2 }
  0x8e   :  { %252 = vrot.lane.b32.xlu1 %v241_v20, %s5486_s11  ;;  %v242_v34 = vcombine.high %v240_v21, %v240_v21  ;;  %v410_v45 = vrot.slane %v145_v25, %v5565_v19  ;;  %v403_v46 = vcombine.high %v145_v25, %v145_v25  ;;  %v662_v16 = vrot.slane %v636_v0, %v5565_v19 }
  0x8f   :  { %v902_v3 = vpop.permute.xlu1 %901  ;;  %v655_v17 = vcombine.high %v636_v0, %v636_v0  ;;  %v1866_v7 = vcombine.low %v1837_v9, %v1845_v10  ;;  %v1867_v23 = vcombine.low %v1853_v11, %v1861_v14  ;;  %v5155_v25 = vcombine.high %v2088_v18, %v2088_v18  ;;  %v5416_v11 = vld [vmem:[%s7361_s2 + $0x10] sm:$0xff]  }
  0x90   :  { %254 = vrot.lane.b32.xlu0 %v240_v21, %s5486_s11  ;;  %v418_v53 = vcombine.high %v410_v45, %v410_v45  ;;  %v417_v55 = vrot.slane %v403_v46, %v5565_v19  ;;  %v903_v20 = vrot.slane %v902_v3, 6  ;;  %v2089_v21 = vld [vmem:[%s7359_s1 + $0x18] sm:$0x11]  ;;  %v670_v26 = vcombine.high %v662_v16, %v662_v16 }
  0x91   :  { %v669_v27 = vrot.slane %v655_v17, %v5565_v19  ;;  %v5156_v30 = vcombine.low %v2089_v21, %v2089_v21  ;;  %v5157_v31 = vcombine.high %v2089_v21, %v2089_v21  ;;  %v1874_v35 = vrot.slane %v1866_v7, %v5565_v19 }
  0x92   :  { %256 = vrot.lane.b32.xlu1 %v242_v34, %s5486_s11  ;;  %v419_v1 = vcombine.high %v417_v55, %v417_v55  ;;  %v905_v33 = vsel %vm904_vm3, %v903_v20, %v902_v3  ;;  %v637_v34 = vmul.bf16 %v631_v38, %v567_v22  ;;  %v1881_v36 = vrot.slane %v1867_v23, %v5565_v19  ;;  %v5417_v23 = vld [vmem:[%s7361_s2 + $0x18] sm:$0xff]  }
  0x93   :  { %v2101_v37 = vpack.i.b16 %v5154_v24, %v5154_v24  ;;  %v2108_v39 = vpack.i.b16 %v5155_v25, %v5155_v25  ;;  %v671_v40 = vcombine.high %v669_v27, %v669_v27  ;;  %v908_v41 = vmul.bf16 %v905_v33, %v5639_v54 }
  0x94   :  { %258 = vrot.lane.b32.xlu0 %v249_v42, %s5486_s11  ;;  %v2115_v42 = vpack.i.b16 %v5156_v30, %v5156_v30  ;;  %v678_v28 = vrot.slane %v637_v34, %v5565_v19  ;;  %v1882_v38 = vcombine.low %v1874_v35, %v1881_v36  ;;  %v909_v57 = vmul.bf16 %v903_v20, %v835_v51  ;;  %v1281_v30 = vld [vmem:[#allocation2 + $0xa] sm:$0x3] }
  0x95   :  { %v2113_v46 = vrot.slane %v2108_v39, %v5562_v15  ;;  %v934_v48 = vrot.slane %v908_v41, %v5565_v19  ;;  %v927_v49 = vcombine.high %v908_v41, %v908_v41 }
  0x96   :  { %1347 = vrot.lane.b32.xlu1 %v1346_v44, %s5487_s16  ;;  %v2122_v44 = vpack.i.b16 %v5157_v31, %v5157_v31  ;;  %v2120_v50 = vrot.slane %v2115_v42, %v5562_v15  ;;  %v950_v61 = vrot.slane %v909_v57, %v5565_v19 }
  0x97   :  { %v942_v52 = vcombine.high %v934_v48, %v934_v48 }
  0x98   :  { %427 = vrot.lane.b32.xlu0 %v410_v45, %s5488_s17  ;;  %v2106_v45 = vrot.slane %v2101_v37, %v5562_v15  ;;  %v2127_v54 = vrot.slane %v2122_v44, %v5562_v15 }
  0x9a   :  { %429 = vrot.lane.b32.xlu1 %v418_v53, %s5488_s17  ;;  %v941_v53 = vrot.slane %v927_v49, %v5565_v19  ;;  %v2133_v56 = vcombine.low %v2120_v50, %v2127_v54 }
  0x9c   :  { %431 = vrot.lane.b32.xlu0 %v417_v55, %s5488_s17  ;;  %v2132_v55 = vcombine.low %v2106_v45, %v2113_v46  ;;  %v943_v58 = vcombine.high %v941_v53, %v941_v53  ;;  %v2147_v60 = vrot.slane %v2133_v56, %v5565_v19  ;;  %v1551_v56 = vld [vmem:[#allocation2 + $0xa] sm:$0x3] }
  0x9e   :  { %433 = vrot.lane.b32.xlu1 %v419_v1, %s5488_s17  ;;  %v2140_v59 = vrot.slane %v2132_v55, %v5565_v19 }
  0xa0   :  { %435 = vrot.lane.b32.xlu0 %v426_v4, %s5488_s17  ;;  %v2148_v62 = vcombine.low %v2140_v59, %v2147_v60 }
  0xa2   :  { %1613 = vrot.lane.b32.xlu1 %v1612_v8, %s5489_s26 }
  0xa4   :  { %679 = vrot.lane.b32.xlu0 %v662_v16, %s5489_s26 }
  0xa6   :  { %681 = vrot.lane.b32.xlu1 %v670_v26, %s5489_s26 }
  0xa8   :  { %683 = vrot.lane.b32.xlu0 %v669_v27, %s5489_s26 }
  0xaa   :  { %685 = vrot.lane.b32.xlu1 %v671_v40, %s5489_s26 }
  0xac   :  { %687 = vrot.lane.b32.xlu0 %v678_v28, %s5489_s26  ;;  %v5418_v28 = vld [vmem:[%s7361_s2] sm:$0xff]  }
  0xae   :  { %1883 = vrot.lane.b32.xlu1 %v1882_v38, %s5486_s11 }
  0xb0   :  { %951 = vrot.lane.b32.xlu0 %v934_v48, %s5487_s16 }
  0xb2   :  { %953 = vrot.lane.b32.xlu1 %v942_v52, %s5487_s16 }
  0xb4   :  { %955 = vrot.lane.b32.xlu0 %v941_v53, %s5487_s16 }
  0xb6   :  { %957 = vrot.lane.b32.xlu1 %v943_v58, %s5487_s16 }
  0xb8   :  { %959 = vrot.lane.b32.xlu0 %v950_v61, %s5487_s16  ;;  %v5419_v61 = vld [vmem:[%s7361_s2 + $0x8] sm:$0xff]  }
  0xba   :  { %2149 = vrot.lane.b32.xlu1 %v2148_v62, %s5488_s17 }
  0xfe   :  { %v251_v63 = vpop.permute.xlu0 %250 }
 0x100   :  { %v253_v0 = vpop.permute.xlu1 %252 }
 0x101   :  { %v261_v1 = vsel %vm260_vm4, %v251_v63, %v253_v0 }
 0x102   :  { %v255_v2 = vpop.permute.xlu0 %254  ;;  %v274_v10 = vsel %vm272_vm5, %v261_v1, 0 }
 0x103   :  { %v262_v3 = vsel %vm260_vm4, %v253_v0, %v255_v2 }
 0x104   :  { %5048 = vmatprep.subr.msk.bf16.mxu0 %vm272_vm5, %v262_v3  ;;  %v257_v9 = vpop.permute.xlu1 %256 }
 0x105   :  { %300 = vmatpush1.bf16.msra.mxu0 %v274_v10  ;;  %v263_v14 = vsel %vm260_vm4, %v255_v2, %v257_v9 }
 0x106   :  { %v259_v4 = vpop.permute.xlu0 %258  ;;  %v280_v17 = vsel %vm272_vm5, %v263_v14, 0 }
 0x107   :  { %v264_v8 = vsel %vm260_vm4, %v257_v9, %v259_v4 }
 0x108   :  { %5049 = vmatmul.mubr.msk.bf16.vlgmr.msra.gmra.mxu0 %vm265_vm6, %v5416_v11  ;;  %5051 = vmatprep.subr.msk.bf16.mxu1 %vm272_vm5, %v264_v8  ;;  %v1348_v16 = vpop.permute.xlu1 %1347 }
 0x109   :  { %v1349_v18 = vrot.slane %v1348_v16, 6  ;;  %353 = vmatpush1.bf16.msra.mxu1 %v280_v17  ;;  %327 = vmatprep.mubr.bf16.mxu0 %v7368_v6  ;;  %v5475_v17 = vcombine.low %v5617_v29, %v5617_v29 }
 0x10a   :  { %v428_v20 = vpop.permute.xlu0 %427 }
 0x10b   :  { %v1350_v21 = vsel %vm961_vm7, %v1349_v18, %v1348_v16  ;;  %v1354_v37 = vmul.bf16 %v1349_v18, %v1281_v30  ;;  %v1130_v16 = vrot.slane %v5621_v32, %v5565_v19  ;;  %v1137_v30 = vrot.slane %v5475_v17, %v5565_v19 }
 0x10c   :  { %v1353_v22 = vmul.bf16 %v1350_v21, %v5621_v32  ;;  %5052 = vmatmul.mubr.msk.bf16.vlgmr.msra.gmra.mxu1 %vm265_vm6, %v5416_v11  ;;  %v430_v7 = vpop.permute.xlu1 %429  ;;  %v5420_v21 = vld [vmem:[%s7361_s2 + $0x20] sm:$0xff]  }
 0x10d   :  { %380 = vmatprep.mubr.bf16.mxu1 %v7368_v6  ;;  %v438_v24 = vsel %vm437_vm8, %v428_v20, %v430_v7  ;;  %v1395_v48 = vrot.slane %v1354_v37, %v5565_v19 }
 0x10e   :  { %v432_v25 = vpop.permute.xlu0 %431  ;;  %v1379_v26 = vrot.slane %v1353_v22, %v5565_v19  ;;  %v1372_v27 = vcombine.high %v1353_v22, %v1353_v22  ;;  %v449_v36 = vsel %vm272_vm5, %v438_v24, 0  ;;  %v1817_v22 = vld [vmem:[#allocation2 + $0xa] sm:$0x3] }
 0x10f   :  { %v439_v31 = vsel %vm437_vm8, %v430_v7, %v432_v25 }
 0x110   :  { %5050 = vmatmul.mubr.msk.bf16.gmra.mxu0 %vm265_vm6, %v5417_v23  ;;  %1396 = vrot.lane.b32.xlu0 %v1379_v26, %s5485_s24  ;;  %v434_v33 = vpop.permute.xlu1 %433  ;;  %v1387_v34 = vcombine.high %v1379_v26, %v1379_v26  ;;  %v1386_v35 = vrot.slane %v1372_v27, %v5565_v19  ;;  %v1138_v27 = vcombine.high %v1130_v16, %v1130_v16 }
 0x111   :  { %5056 = vmatprep.subr.msk.bf16.mxu0 %vm272_vm5, %v439_v31  ;;  %492 = vmatprep.mubr.bf16.mxu0 %v7368_v6  ;;  %v440_v39 = vsel %vm437_vm8, %v432_v25, %v434_v33 }
 0x112   :  { %475 = vmatpush1.bf16.msra.mxu0 %v449_v36  ;;  %v436_v40 = vpop.permute.xlu0 %435  ;;  %1398 = vrot.lane.b32.xlu1 %v1387_v34, %s5485_s24  ;;  %v1388_v44 = vcombine.high %v1386_v35, %v1386_v35  ;;  %v455_v45 = vsel %vm272_vm5, %v440_v39, 0 }
 0x113   :  { %v441_v41 = vsel %vm437_vm8, %v434_v33, %v436_v40 }
 0x114   :  { %5053 = vmatmul.mubr.msk.bf16.gmra.mxu1 %vm265_vm6, %v5417_v23  ;;  %1400 = vrot.lane.b32.xlu0 %v1386_v35, %s5485_s24  ;;  %v1614_v42 = vpop.permute.xlu1 %1613 }
 0x115   :  { %5059 = vmatprep.subr.msk.bf16.mxu1 %vm272_vm5, %v441_v41  ;;  %v1615_v38 = vrot.slane %v1614_v42, 6  ;;  %545 = vmatprep.mubr.bf16.mxu1 %v7368_v6 }
 0x116   :  { %528 = vmatpush1.bf16.msra.mxu1 %v455_v45  ;;  %v680_v46 = vpop.permute.xlu0 %679  ;;  %1402 = vrot.lane.b32.xlu1 %v1388_v44, %s5485_s24 }
 0x117   :  { %v1616_v49 = vsel %vm689_vm9, %v1615_v38, %v1614_v42  ;;  %v1620_v0 = vmul.bf16 %v1615_v38, %v1551_v56  ;;  %v1139_v42 = vcombine.high %v1137_v30, %v1137_v30  ;;  %v1147_v56 = vsel %vm272_vm5, %v1130_v16, 0 }
 0x118   :  { %v1619_v50 = vmul.bf16 %v1616_v49, %v5621_v32  ;;  %1404 = vrot.lane.b32.xlu0 %v1395_v48, %s5485_s24  ;;  %5057 = vmatmul.mubr.msk.bf16.vlgmr.msra.gmra.mxu0 %vm265_vm6, %v5418_v28  ;;  %v682_v54 = vpop.permute.xlu1 %681  ;;  %v2087_v49 = vld [vmem:[#allocation2 + $0xa] sm:$0x3] }
 0x119   :  { %v690_v51 = vsel %vm689_vm9, %v680_v46, %v682_v54  ;;  %502 = vmatprep.mubr.bf16.mxu0 %v7368_v6  ;;  %v1661_v14 = vrot.slane %v1620_v0, %v5565_v19  ;;  %v2353_v0 = vld [vmem:[%s7362_s3 + $0x8] sm:$0xff] }
 0x11a   :  { %v684_v52 = vpop.permute.xlu0 %683  ;;  %v1645_v53 = vrot.slane %v1619_v50, %v5565_v19  ;;  %v1638_v55 = vcombine.high %v1619_v50, %v1619_v50  ;;  %v701_v58 = vsel %vm272_vm5, %v690_v51, 0 }
 0x11b   :  { %v691_v57 = vsel %vm689_vm9, %v682_v54, %v684_v52 }
 0x11c   :  { %5060 = vmatmul.mubr.msk.bf16.vlgmr.msra.gmra.mxu1 %vm265_vm6, %v5418_v28  ;;  %1662 = vrot.lane.b32.xlu1 %v1645_v53, %s5484_s23  ;;  %v686_v59 = vpop.permute.xlu1 %685  ;;  %v1653_v60 = vcombine.high %v1645_v53, %v1645_v53  ;;  %v1652_v62 = vrot.slane %v1638_v55, %v5565_v19  ;;  %v5421_v28 = vld [vmem:[%s7361_s2 + $0x28] sm:$0xff]  }
 0x11d   :  { %v692_v63 = vsel %vm689_vm9, %v684_v52, %v686_v59  ;;  %5072 = vmatprep.subr.msk.bf16.mxu0 %vm272_vm5, %v691_v57  ;;  %555 = vmatprep.mubr.bf16.mxu1 %v7368_v6  ;;  %v5422_v52 = vld [vmem:[%s7361_s2 + $0x30] sm:$0xff]  }
 0x11e   :  { %v688_v1 = vpop.permute.xlu0 %687  ;;  %1664 = vrot.lane.b32.xlu0 %v1653_v60, %s5484_s23  ;;  %727 = vmatpush1.bf16.msra.mxu0 %v701_v58  ;;  %v1654_v2 = vcombine.high %v1652_v62, %v1652_v62  ;;  %v707_v9 = vsel %vm272_vm5, %v692_v63, 0  ;;  %v1153_v58 = vsel %vm272_vm5, %v1137_v30, 0  ;;  %v5425_v60 = vld [vmem:[%s7361_s2 + $0x48] sm:$0xff]   ;;  %v2352_v63 = vld [vmem:[%s7362_s3] sm:$0xff] }
 0x11f   :  { %v693_v3 = vsel %vm689_vm9, %v686_v59, %v688_v1  ;;  %v5423_v59 = vld [vmem:[%s7361_s2 + $0x38] sm:$0xff]   ;;  %v2476_v1 = vld [vmem:[%s7359_s1] sm:$0x11] }
 0x120   :  { %5058 = vmatmul.mubr.msk.bf16.gmra.mxu0 %vm265_vm6, %v5419_v61  ;;  %1666 = vrot.lane.b32.xlu1 %v1652_v62, %s5484_s23  ;;  %v1884_v10 = vpop.permute.xlu1 %1883  ;;  %v2354_v62 = vld [vmem:[%s7362_s3 + $0x10] sm:$0xff] }
 0x121   :  { %5075 = vmatprep.subr.msk.bf16.mxu1 %vm272_vm5, %v693_v3  ;;  %v1885_v11 = vrot.slane %v1884_v10, 6  ;;  %744 = vmatprep.mubr.bf16.mxu0 %v7368_v6  ;;  %v5179_v3 = vcombine.high %v2476_v1, %v2476_v1 }
 0x122   :  { %780 = vmatpush1.bf16.msra.mxu1 %v707_v9  ;;  %1668 = vrot.lane.b32.xlu0 %v1654_v2, %s5484_s23  ;;  %v952_v4 = vpop.permute.xlu0 %951  ;;  %v5178_v2 = vcombine.low %v2476_v1, %v2476_v1  ;;  %v3631_v1 = vld [vmem:[%s7359_s1 + $0x8] sm:$0x44] }
 0x123   :  { %v1886_v8 = vsel %vm260_vm4, %v1885_v11, %v1884_v10  ;;  %v1890_v31 = vmul.bf16 %v1885_v11, %v1817_v22  ;;  %v2560_v10 = vshrl.u32 %v5179_v3, 16  ;;  %v2477_v11 = vld [vmem:[%s7359_s1 + $0x8] sm:$0x11] }
 0x124   :  { %v1889_v18 = vmul.bf16 %v1886_v8, %v5621_v32  ;;  %5061 = vmatmul.mubr.msk.bf16.gmra.mxu1 %vm265_vm6, %v5419_v61  ;;  %1670 = vrot.lane.b32.xlu1 %v1661_v14, %s5484_s23  ;;  %v954_v20 = vpop.permute.xlu1 %953  ;;  %v2355_v61 = vld [vmem:[%s7362_s3 + $0x18] sm:$0xff]  ;;  %v2553_v9 = vshrl.u32 %v5178_v2, 16  ;;  %v5180_v14 = vcombine.low %v2477_v11, %v2477_v11 }
 0x125   :  { %v962_v7 = vsel %vm961_vm7, %v952_v4, %v954_v20  ;;  %797 = vmatprep.mubr.bf16.mxu1 %v7368_v6  ;;  %v1931_v38 = vrot.slane %v1890_v31, %v5565_v19  ;;  %v5181_v4 = vcombine.high %v2477_v11, %v2477_v11  ;;  %v2561_v16 = vpack.i.b16 %v2560_v10, %v2560_v10 }
 0x126   :  { %v1915_v23 = vrot.slane %v1889_v18, %v5565_v19  ;;  %v956_v24 = vpop.permute.xlu0 %955  ;;  %v1908_v29 = vcombine.high %v1889_v18, %v1889_v18  ;;  %v973_v26 = vsel %vm272_vm5, %v962_v7, 0  ;;  %v2554_v8 = vpack.i.b16 %v2553_v9, %v2553_v9 }
 0x127   :  { %v963_v25 = vsel %vm961_vm7, %v954_v20, %v956_v24  ;;  %v2567_v17 = vshrl.u32 %v5180_v14, 16  ;;  %v2574_v18 = vshrl.u32 %v5181_v4, 16  ;;  %v5267_v10 = vcombine.low %v3631_v1, %v3631_v1 }
 0x128   :  { %5073 = vmatmul.mubr.msk.bf16.vlgmr.msra.gmra.mxu0 %vm265_vm6, %v5420_v21  ;;  %1932 = vrot.lane.b32.xlu0 %v1915_v23, %s5482_s21  ;;  %v958_v33 = vpop.permute.xlu1 %957  ;;  %v1923_v34 = vcombine.high %v1915_v23, %v1915_v23  ;;  %v1922_v35 = vrot.slane %v1908_v29, %v5565_v19  ;;  %v2559_v20 = vrot.slane %v2554_v8, %v5562_v15 }
 0x129   :  { %v964_v36 = vsel %vm961_vm7, %v956_v24, %v958_v33  ;;  %5088 = vmatprep.subr.msk.bf16.mxu0 %vm272_vm5, %v963_v25  ;;  %754 = vmatprep.mubr.bf16.mxu0 %v7368_v6  ;;  %v2568_v22 = vpack.i.b16 %v2567_v17, %v2567_v17  ;;  %v2575_v7 = vpack.i.b16 %v2574_v18, %v2574_v18  ;;  %v3659_v18 = vshrl.u32 %v5267_v10, 16 }
 0x12a   :  { %1934 = vrot.lane.b32.xlu1 %v1923_v34, %s5482_s21  ;;  %v960_v37 = vpop.permute.xlu0 %959  ;;  %999 = vmatpush1.bf16.msra.mxu0 %v973_v26  ;;  %v1924_v39 = vcombine.high %v1922_v35, %v1922_v35  ;;  %v979_v41 = vsel %vm272_vm5, %v964_v36, 0  ;;  %v2489_v24 = vpack.i.b16 %v5178_v2, %v5178_v2  ;;  %v2496_v29 = vpack.i.b16 %v5179_v3, %v5179_v3 }
 0x12b   :  { %v965_v40 = vsel %vm961_vm7, %v958_v33, %v960_v37  ;;  %5100 = vmatprep.subr.msk.bf16.mxu0 %vm272_vm5, %v1138_v27  ;;  %v2573_v25 = vrot.slane %v2568_v22, %v5562_v15  ;;  %v2580_v26 = vrot.slane %v2575_v7, %v5562_v15  ;;  %v2963_v27 = vld [vmem:[%s7359_s1] sm:$0x22]  ;;  %v2503_v36 = vpack.i.b16 %v5180_v14, %v5180_v14 }
 0x12c   :  { %5076 = vmatmul.mubr.msk.bf16.vlgmr.msra.gmra.mxu1 %vm265_vm6, %v5420_v21  ;;  %1936 = vrot.lane.b32.xlu0 %v1922_v35, %s5482_s21  ;;  %v2150_v44 = vpop.permute.xlu1 %2149  ;;  %v2566_v21 = vrot.slane %v2561_v16, %v5562_v15  ;;  %v2494_v30 = vrot.slane %v2489_v24, %v5562_v15  ;;  %v2501_v31 = vrot.slane %v2496_v29, %v5562_v15 }
 0x12d   :  { %5091 = vmatprep.subr.msk.bf16.mxu1 %vm272_vm5, %v965_v40  ;;  %v2151_v45 = vrot.slane %v2150_v44, 6  ;;  %807 = vmatprep.mubr.bf16.mxu1 %v7368_v6  ;;  %v5214_v33 = vcombine.low %v2963_v27, %v2963_v27  ;;  %v5215_v34 = vcombine.high %v2963_v27, %v2963_v27  ;;  %v5185_v35 = vcombine.low %v2573_v25, %v2580_v26 }
 0x12e   :  { %1938 = vrot.lane.b32.xlu1 %v1924_v39, %s5482_s21  ;;  %1052 = vmatpush1.bf16.msra.mxu1 %v979_v41  ;;  %v5184_v23 = vcombine.low %v2559_v20, %v2566_v21  ;;  %v2510_v37 = vpack.i.b16 %v5181_v4, %v5181_v4  ;;  %v5182_v39 = vcombine.low %v2494_v30, %v2501_v31  ;;  %v3891_v20 = vld [vmem:[%s7359_s1] sm:$0x88] }
 0x12f   :  { %v2152_v46 = vsel %vm437_vm8, %v2151_v45, %v2150_v44  ;;  %5103 = vmatprep.subr.msk.bf16.mxu1 %vm272_vm5, %v1139_v42  ;;  %v2156_v51 = vmul.bf16 %v2151_v45, %v2087_v49  ;;  %v2976_v40 = vpack.i.b16 %v5214_v33, %v5214_v33  ;;  %v2983_v41 = vpack.i.b16 %v5215_v34, %v5215_v34  ;;  %v2964_v42 = vld [vmem:[%s7359_s1 + $0x8] sm:$0x22] }
 0x130   :  { %v2155_v48 = vmul.bf16 %v2152_v46, %v5621_v32  ;;  %5074 = vmatmul.mubr.msk.bf16.gmra.mxu0 %vm265_vm6, %v5421_v28  ;;  %1940 = vrot.lane.b32.xlu0 %v1931_v38, %s5482_s21  ;;  %v2508_v44 = vrot.slane %v2503_v36, %v5562_v15  ;;  %v5216_v38 = vcombine.low %v2964_v42, %v2964_v42  ;;  %v3220_v49 = vshrl.u32 %v5214_v33, 16  ;;  %v3892_v33 = vld [vmem:[%s7359_s1 + $0x8] sm:$0x88] }
 0x131   :  { %1016 = vmatprep.mubr.bf16.mxu0 %v7368_v6  ;;  %v2197_v57 = vrot.slane %v2156_v51, %v5565_v19  ;;  %v5217_v45 = vcombine.high %v2964_v42, %v2964_v42  ;;  %v2981_v46 = vrot.slane %v2976_v40, %v5579_v43  ;;  %v5268_v8 = vcombine.high %v3631_v1, %v3631_v1 }
 0x132   :  { %v2181_v50 = vrot.slane %v2155_v48, %v5565_v19  ;;  %v2174_v54 = vcombine.high %v2155_v48, %v2155_v48  ;;  %v2988_v48 = vrot.slane %v2983_v41, %v5579_v43  ;;  %v2990_v51 = vpack.i.b16 %v5216_v38, %v5216_v38 }
 0x133   :  { %v5286_v24 = vcombine.low %v3891_v20, %v3891_v20  ;;  %v3660_v25 = vpack.i.b16 %v3659_v18, %v3659_v18  ;;  %v5287_v26 = vcombine.high %v3891_v20, %v3891_v20 }
 0x134   :  { %5077 = vmatmul.mubr.msk.bf16.gmra.mxu1 %vm265_vm6, %v5421_v28  ;;  %2198 = vrot.lane.b32.xlu1 %v2181_v50, %s5483_s22  ;;  %v2189_v32 = vcombine.high %v2181_v50, %v2181_v50  ;;  %v2188_v53 = vrot.slane %v2174_v54, %v5565_v19  ;;  %v5424_v19 = vld [vmem:[%s7361_s2 + $0x40] sm:$0xff]   ;;  %v2515_v28 = vrot.slane %v2510_v37, %v5562_v15  ;;  %v3227_v50 = vshrl.u32 %v5215_v34, 16 }
 0x135   :  { %1069 = vmatprep.mubr.bf16.mxu1 %v7368_v6  ;;  %v3904_v31 = vpack.i.b16 %v5286_v24, %v5286_v24  ;;  %v3911_v36 = vpack.i.b16 %v5287_v26, %v5287_v26  ;;  %v5288_v37 = vcombine.low %v3892_v33, %v3892_v33 }
 0x136   :  { %2200 = vrot.lane.b32.xlu0 %v2189_v32, %s5483_s22  ;;  %v2190_v55 = vcombine.high %v2188_v53, %v2188_v53  ;;  %v5183_v54 = vcombine.low %v2508_v44, %v2515_v28  ;;  %v3630_v32 = vld [vmem:[%s7359_s1] sm:$0x44] }
 0x137   :  { %v3909_v42 = vrot.slane %v3904_v31, %v5654_v5  ;;  %v3916_v28 = vrot.slane %v3911_v36, %v5654_v5 }
 0x138   :  { %5089 = vmatmul.mubr.msk.bf16.vlgmr.msra.gmra.mxu0 %vm265_vm6, %v5422_v52  ;;  %2202 = vrot.lane.b32.xlu1 %v2188_v53, %s5483_s22  ;;  %v5218_v53 = vcombine.low %v2981_v46, %v2988_v48 }
 0x139   :  { %1026 = vmatprep.mubr.bf16.mxu0 %v7368_v6  ;;  %1173 = vmatpush1.bf16.msra.mxu0 %v1147_v56  ;;  %v3228_v56 = vpack.i.b16 %v3227_v50, %v3227_v50  ;;  %v4148_v50 = vshrl.u32 %v5286_v24, 16 }
 0x13a   :  { %2204 = vrot.lane.b32.xlu0 %v2190_v55, %s5483_s22  ;;  %v3221_v55 = vpack.i.b16 %v3220_v49, %v3220_v49  ;;  %v5426_v49 = vld [vmem:[%s7361_s2 + $0x50] sm:$0xff]  }
 0x13c   :  { %5092 = vmatmul.mubr.msk.bf16.vlgmr.msra.gmra.mxu1 %vm265_vm6, %v5422_v52  ;;  %2206 = vrot.lane.b32.xlu1 %v2197_v57, %s5483_s22  ;;  %v2997_v52 = vpack.i.b16 %v5217_v45, %v5217_v45  ;;  %v5265_v57 = vcombine.low %v3630_v32, %v3630_v32 }
 0x13d   :  { %1079 = vmatprep.mubr.bf16.mxu1 %v7368_v6  ;;  %1226 = vmatpush1.bf16.msra.mxu1 %v1153_v58  ;;  %v2995_v58 = vrot.slane %v2990_v51, %v5579_v43 }
 0x13e   :  { %2368 = vperm.xlu0 %5384, %v2354_v62   ;;  %v3233_v62 = vrot.slane %v3228_v56, %v5579_v43  ;;  %v5290_v56 = vcombine.low %v3909_v42, %v3916_v28 }
 0x140   :  { %5090 = vmatmul.mubr.msk.bf16.gmra.mxu0 %vm265_vm6, %v5423_v59  ;;  %2373 = vperm.xlu1 %5385, %v2355_v61   ;;  %v3226_v61 = vrot.slane %v3221_v55, %v5579_v43 }
 0x141   :  { %1190 = vmatprep.mubr.bf16.mxu0 %v7368_v6 }
 0x142   :  { %2363 = vperm.xlu0 %5384, %v2353_v0   ;;  %v3643_v0 = vshrl.u32 %v5265_v57, 16  ;;  %v5235_v11 = vcombine.low %v3226_v61, %v3233_v62  ;;  %v4149_v57 = vpack.i.b16 %v4148_v50, %v4148_v50 }
 0x144   :  { %5093 = vmatmul.mubr.msk.bf16.gmra.mxu1 %vm265_vm6, %v5423_v59  ;;  %2358 = vperm.xlu1 %5385, %v2352_v63   ;;  %v3002_v59 = vrot.slane %v2997_v52, %v5579_v43  ;;  %v5266_v63 = vcombine.high %v3630_v32, %v3630_v32  ;;  %v3644_v14 = vpack.i.b16 %v3643_v0, %v3643_v0 }
 0x145   :  { %1243 = vmatprep.mubr.bf16.mxu1 %v7368_v6  ;;  %v4154_v0 = vrot.slane %v4149_v57, %v5654_v5 }
 0x146   :  { %2593 = vrot.lane.b32.xlu0 %v5185_v35, %s5482_s21  ;;  %v5219_v2 = vcombine.low %v2995_v58, %v3002_v59  ;;  %v3651_v4 = vshrl.u32 %v5266_v63, 16  ;;  %v3649_v22 = vrot.slane %v3644_v14, %v5634_v47  ;;  %v3665_v35 = vrot.slane %v3660_v25, %v5634_v47 }
 0x147   :  { %v4162_v59 = vshrl.u32 %v5288_v37, 16 }
 0x148   :  { %5101 = vmatmul.mubr.msk.bf16.vlgmr.msra.gmra.mxu0 %vm265_vm6, %v5424_v19  ;;  %2591 = vrot.lane.b32.xlu1 %v5184_v23, %s5482_s21  ;;  %v3652_v7 = vpack.i.b16 %v3651_v4, %v3651_v4  ;;  %v3667_v23 = vshrl.u32 %v5268_v8, 16 }
 0x149   :  { %1200 = vmatprep.mubr.bf16.mxu0 %v7368_v6 }
 0x14a   :  { %2528 = vrot.lane.b32.xlu0 %v5183_v54, %s5483_s22  ;;  %v3657_v30 = vrot.slane %v3652_v7, %v5634_v47  ;;  %v4155_v54 = vshrl.u32 %v5287_v26, 16  ;;  %v5427_v7 = vld [vmem:[%s7361_s2 + $0x58] sm:$0xff]  }
 0x14c   :  { %5104 = vmatmul.mubr.msk.bf16.vlgmr.msra.gmra.mxu1 %vm265_vm6, %v5424_v19  ;;  %2526 = vrot.lane.b32.xlu1 %v5182_v39, %s5483_s22  ;;  %v3234_v19 = vshrl.u32 %v5216_v38, 16  ;;  %v5269_v40 = vcombine.low %v3649_v22, %v3657_v30  ;;  %v5289_v38 = vcombine.high %v3892_v33, %v3892_v33  ;;  %v4156_v58 = vpack.i.b16 %v4155_v54, %v4155_v54 }
 0x14d   :  { %1253 = vmatprep.mubr.bf16.mxu1 %v7368_v6 }
 0x14e   :  { %v3235_v3 = vpack.i.b16 %v3234_v19, %v3234_v19  ;;  %3015 = vrot.lane.b32.xlu0 %v5219_v2, %s5484_s23  ;;  %v3925_v32 = vpack.i.b16 %v5289_v38, %v5289_v38  ;;  %v4169_v61 = vshrl.u32 %v5289_v38, 16  ;;  %v4161_v1 = vrot.slane %v4156_v58, %v5654_v5 }
 0x14f   :  { %v4163_v2 = vpack.i.b16 %v4162_v59, %v4162_v59 }
 0x150   :  { %5102 = vmatmul.mubr.msk.bf16.gmra.mxu0 %vm265_vm6, %v5425_v60  ;;  %3013 = vrot.lane.b32.xlu1 %v5218_v53, %s5484_s23  ;;  %v3240_v16 = vrot.slane %v3235_v3, %v5579_v43  ;;  %v4393_v53 = vld [vmem:[%s7359_s1 + $0x10] sm:$0x11]  ;;  %v4394_v3 = vld [vmem:[%s7359_s1 + $0x18] sm:$0x11]  ;;  %v4170_v10 = vpack.i.b16 %v4169_v61, %v4169_v61  ;;  %v5307_v4 = vcombine.low %v4154_v0, %v4161_v1  ;;  %v5432_v0 = vld [vmem:[%s7361_s2 + $0x80] sm:$0xff]  }
 0x151   :  { %1460 = vmatprep.mubr.bf16.mxu0 %v7368_v6  ;;  %v5324_v62 = vcombine.low %v4393_v53, %v4393_v53  ;;  %v4168_v8 = vrot.slane %v4163_v2, %v5654_v5  ;;  %v5433_v1 = vld [vmem:[%s7361_s2 + $0x88] sm:$0xff]  }
 0x152   :  { %v4175_v18 = vrot.slane %v4170_v10, %v5654_v5 }
 0x154   :  { %5105 = vmatmul.mubr.msk.bf16.gmra.mxu1 %vm265_vm6, %v5425_v60  ;;  %v3241_v60 = vshrl.u32 %v5217_v45, 16  ;;  %3258 = vrot.lane.b32.xlu1 %v5235_v11, %s5485_s24  ;;  %v3918_v45 = vpack.i.b16 %v5288_v37, %v5288_v37  ;;  %v5325_v11 = vcombine.high %v4393_v53, %v4393_v53  ;;  %v5308_v25 = vcombine.low %v4168_v8, %v4175_v18 }
 0x155   :  { %1513 = vmatprep.mubr.bf16.mxu1 %v7368_v6 }
 0x156   :  { %v3242_v9 = vpack.i.b16 %v3241_v60, %v3241_v60  ;;  %v3923_v52 = vrot.slane %v3918_v45, %v5654_v5  ;;  %v3930_v60 = vrot.slane %v3925_v32, %v5654_v5  ;;  %v4413_v20 = vpack.i.b16 %v5325_v11, %v5325_v11  ;;  %v5430_v32 = vld [vmem:[%s7361_s2 + $0x70] sm:$0xff]  }
 0x158   :  { %v3247_v17 = vrot.slane %v3242_v9, %v5579_v43  ;;  %v3668_v43 = vpack.i.b16 %v3667_v23, %v3667_v23  ;;  %3684 = vrot.lane.b32.xlu1 %v5269_v40, %s5487_s16  ;;  %v5291_v9 = vcombine.low %v3923_v52, %v3930_v60  ;;  %v4418_v26 = vrot.slane %v4413_v20, %v5562_v15 }
 0x15a   :  { %v5236_v29 = vcombine.low %v3240_v16, %v3247_v17  ;;  %v3673_v41 = vrot.slane %v3668_v43, %v5634_v47  ;;  %v4406_v16 = vpack.i.b16 %v5324_v62, %v5324_v62  ;;  %v5326_v17 = vcombine.low %v4394_v3, %v4394_v3 }
 0x15c   :  { %3260 = vrot.lane.b32.xlu0 %v5236_v29, %s5485_s24  ;;  %v5270_v47 = vcombine.low %v3665_v35, %v3673_v41  ;;  %3941 = vrot.lane.b32.xlu1 %v5290_v56, %s5489_s26  ;;  %v4411_v23 = vrot.slane %v4406_v16, %v5562_v15  ;;  %v4420_v24 = vpack.i.b16 %v5326_v17, %v5326_v17  ;;  %v5428_v41 = vld [vmem:[%s7361_s2 + $0x60] sm:$0xff]  }
 0x15e   :  { %v4425_v30 = vrot.slane %v4420_v24, %v5562_v15  ;;  %v5328_v31 = vcombine.low %v4411_v23, %v4418_v26 }
 0x160   :  { %3686 = vrot.lane.b32.xlu0 %v5270_v47, %s5487_s16  ;;  %4186 = vrot.lane.b32.xlu1 %v5307_v4, %s5486_s11 }
 0x164   :  { %3943 = vrot.lane.b32.xlu0 %v5291_v9, %s5489_s26  ;;  %4443 = vrot.lane.b32.xlu1 %v5328_v31, %s5488_s17 }
 0x168   :  { %4188 = vrot.lane.b32.xlu0 %v5308_v25, %s5486_s11 }
 0x182   :  { %v1397_v21 = vpop.permute.xlu0 %1396 }
 0x184   :  { %v1399_v27 = vpop.permute.xlu1 %1398 }
 0x185   :  { %v1406_v34 = vsel %vm904_vm3, %v1397_v21, %v1399_v27  ;;  %v5327_v21 = vcombine.high %v4394_v3, %v4394_v3 }
 0x186   :  { %v1401_v39 = vpop.permute.xlu0 %1400  ;;  %v1417_v48 = vsel %vm272_vm5, %v1406_v34, 0 }
 0x187   :  { %v1407_v44 = vsel %vm904_vm3, %v1399_v27, %v1401_v39  ;;  %v4427_v5 = vpack.i.b16 %v5327_v21, %v5327_v21 }
 0x188   :  { %5116 = vmatprep.subr.msk.bf16.mxu0 %vm272_vm5, %v1407_v44  ;;  %v1403_v46 = vpop.permute.xlu1 %1402 }
 0x189   :  { %v1408_v51 = vsel %vm904_vm3, %v1401_v39, %v1403_v46  ;;  %1443 = vmatpush1.bf16.msra.mxu0 %v1417_v48  ;;  %v4432_v33 = vrot.slane %v4427_v5, %v5562_v15 }
 0x18a   :  { %v1405_v55 = vpop.permute.xlu0 %1404  ;;  %v1423_v63 = vsel %vm272_vm5, %v1408_v51, 0 }
 0x18b   :  { %v1409_v19 = vsel %vm904_vm3, %v1403_v46, %v1405_v55  ;;  %v5329_v37 = vcombine.low %v4425_v30, %v4432_v33 }
 0x18c   :  { %5117 = vmatmul.mubr.msk.bf16.vlgmr.msra.gmra.mxu0 %vm265_vm6, %v5426_v49  ;;  %5119 = vmatprep.subr.msk.bf16.mxu1 %vm272_vm5, %v1409_v19 }
 0x18d   :  { %1496 = vmatpush1.bf16.msra.mxu1 %v1423_v63  ;;  %1470 = vmatprep.mubr.bf16.mxu0 %v7368_v6  ;;  %v5431_v63 = vld [vmem:[%s7361_s2 + $0x78] sm:$0xff]  }
 0x18e   :  { %v1663_v14 = vpop.permute.xlu1 %1662  ;;  %4445 = vrot.lane.b32.xlu0 %v5329_v37, %s5488_s17 }
 0x190   :  { %v1665_v22 = vpop.permute.xlu0 %1664  ;;  %5120 = vmatmul.mubr.msk.bf16.vlgmr.msra.gmra.mxu1 %vm265_vm6, %v5426_v49  ;;  %v5429_v49 = vld [vmem:[%s7361_s2 + $0x68] sm:$0xff]  }
 0x191   :  { %v1672_v29 = vsel %vm632_vm2, %v1663_v14, %v1665_v22  ;;  %1523 = vmatprep.mubr.bf16.mxu1 %v7368_v6 }
 0x192   :  { %v1667_v27 = vpop.permute.xlu1 %1666  ;;  %v1683_v35 = vsel %vm272_vm5, %v1672_v29, 0 }
 0x193   :  { %v1673_v43 = vsel %vm632_vm2, %v1665_v22, %v1667_v27 }
 0x194   :  { %v1669_v34 = vpop.permute.xlu0 %1668  ;;  %5118 = vmatmul.mubr.msk.bf16.gmra.mxu0 %vm265_vm6, %v5427_v7  ;;  %5132 = vmatprep.subr.msk.bf16.mxu0 %vm272_vm5, %v1673_v43 }
 0x195   :  { %v1674_v36 = vsel %vm632_vm2, %v1667_v27, %v1669_v34  ;;  %1709 = vmatpush1.bf16.msra.mxu0 %v1683_v35  ;;  %1726 = vmatprep.mubr.bf16.mxu0 %v7368_v6 }
 0x196   :  { %v1671_v39 = vpop.permute.xlu1 %1670  ;;  %v1689_v15 = vsel %vm272_vm5, %v1674_v36, 0 }
 0x197   :  { %v1675_v40 = vsel %vm632_vm2, %v1669_v34, %v1671_v39 }
 0x198   :  { %5121 = vmatmul.mubr.msk.bf16.gmra.mxu1 %vm265_vm6, %v5427_v7  ;;  %5135 = vmatprep.subr.msk.bf16.mxu1 %vm272_vm5, %v1675_v40 }
 0x199   :  { %1762 = vmatpush1.bf16.msra.mxu1 %v1689_v15  ;;  %1779 = vmatprep.mubr.bf16.mxu1 %v7368_v6 }
 0x19a   :  { %v1933_v42 = vpop.permute.xlu0 %1932 }
 0x19c   :  { %5133 = vmatmul.mubr.msk.bf16.vlgmr.msra.gmra.mxu0 %vm265_vm6, %v5428_v41  ;;  %v1935_v44 = vpop.permute.xlu1 %1934 }
 0x19d   :  { %v1942_v28 = vsel %vm203_vm0, %v1933_v42, %v1935_v44  ;;  %1736 = vmatprep.mubr.bf16.mxu0 %v7368_v6 }
 0x19e   :  { %v1937_v38 = vpop.permute.xlu0 %1936  ;;  %v1953_v45 = vsel %vm272_vm5, %v1942_v28, 0 }
 0x19f   :  { %v1943_v46 = vsel %vm203_vm0, %v1935_v44, %v1937_v38 }
 0x1a0   :  { %5136 = vmatmul.mubr.msk.bf16.vlgmr.msra.gmra.mxu1 %vm265_vm6, %v5428_v41  ;;  %5148 = vmatprep.subr.msk.bf16.mxu0 %vm272_vm5, %v1943_v46  ;;  %v1939_v48 = vpop.permute.xlu1 %1938 }
 0x1a1   :  { %v1944_v47 = vsel %vm203_vm0, %v1937_v38, %v1939_v48  ;;  %1979 = vmatpush1.bf16.msra.mxu0 %v1953_v45  ;;  %1789 = vmatprep.mubr.bf16.mxu1 %v7368_v6 }
 0x1a2   :  { %v1941_v50 = vpop.permute.xlu0 %1940  ;;  %v1959_v54 = vsel %vm272_vm5, %v1944_v47, 0 }
 0x1a3   :  { %v1945_v51 = vsel %vm203_vm0, %v1939_v48, %v1941_v50 }
 0x1a4   :  { %5134 = vmatmul.mubr.msk.bf16.gmra.mxu0 %vm265_vm6, %v5429_v49  ;;  %5151 = vmatprep.subr.msk.bf16.mxu1 %vm272_vm5, %v1945_v51 }
 0x1a5   :  { %2032 = vmatpush1.bf16.msra.mxu1 %v1959_v54  ;;  %1996 = vmatprep.mubr.bf16.mxu0 %v7368_v6 }
 0x1a6   :  { %v2199_v52 = vpop.permute.xlu1 %2198 }
 0x1a8   :  { %5137 = vmatmul.mubr.msk.bf16.gmra.mxu1 %vm265_vm6, %v5429_v49  ;;  %v2201_v53 = vpop.permute.xlu0 %2200 }
 0x1a9   :  { %v2208_v55 = vsel %vm141_vm1, %v2199_v52, %v2201_v53  ;;  %2049 = vmatprep.mubr.bf16.mxu1 %v7368_v6 }
 0x1aa   :  { %v2203_v56 = vpop.permute.xlu1 %2202  ;;  %v2219_v57 = vsel %vm272_vm5, %v2208_v55, 0 }
 0x1ab   :  { %v2209_v58 = vsel %vm141_vm1, %v2201_v53, %v2203_v56 }
 0x1ac   :  { %5149 = vmatmul.mubr.msk.bf16.vlgmr.msra.gmra.mxu0 %vm265_vm6, %v5430_v32  ;;  %v2205_v59 = vpop.permute.xlu0 %2204  ;;  %5164 = vmatprep.subr.msk.bf16.mxu0 %vm272_vm5, %v2209_v58 }
 0x1ad   :  { %v2210_v19 = vsel %vm141_vm1, %v2203_v56, %v2205_v59  ;;  %2006 = vmatprep.mubr.bf16.mxu0 %v7368_v6  ;;  %2245 = vmatpush1.bf16.msra.mxu0 %v2219_v57 }
 0x1ae   :  { %v2207_v60 = vpop.permute.xlu1 %2206  ;;  %v2225_v61 = vsel %vm272_vm5, %v2210_v19, 0 }
 0x1af   :  { %v2211_v62 = vsel %vm141_vm1, %v2205_v59, %v2207_v60 }
 0x1b0   :  { %5152 = vmatmul.mubr.msk.bf16.vlgmr.msra.gmra.mxu1 %vm265_vm6, %v5430_v32  ;;  %5167 = vmatprep.subr.msk.bf16.mxu1 %vm272_vm5, %v2211_v62 }
 0x1b1   :  { %2298 = vmatpush1.bf16.msra.mxu1 %v2225_v61  ;;  %2059 = vmatprep.mubr.bf16.mxu1 %v7368_v6 }
 0x1b4   :  { %5150 = vmatmul.mubr.msk.bf16.gmra.mxu0 %vm265_vm6, %v5431_v63 }
 0x1b5   :  { %2262 = vmatprep.mubr.bf16.mxu0 %v7368_v6 }
 0x1b8   :  { %5153 = vmatmul.mubr.msk.bf16.gmra.mxu1 %vm265_vm6, %v5431_v63 }
 0x1b9   :  { %2315 = vmatprep.mubr.bf16.mxu1 %v7368_v6  ;;  %v6070_v41 = vpop.permute.xlu0 %2368 }
 0x1ba   :  { %7431 = vst [vmem:[#allocation7_spill] sm:$0xff] %v6070_v41 }
 0x1bb   :  { %v6068_v37 = vpop.permute.xlu1 %2373 }
 0x1bc   :  { %5165 = vmatmul.mubr.msk.bf16.vlgmr.msra.gmra.mxu0 %vm265_vm6, %v5432_v0  ;;  %7430 = vst [vmem:[#allocation6_spill] sm:$0xff] %v6068_v37 }
 0x1bd   :  { %2272 = vmatprep.mubr.bf16.mxu0 %v7368_v6  ;;  %v6074_v54 = vpop.permute.xlu0 %2363 }
 0x1be   :  { %7433 = vst [vmem:[#allocation9_spill] sm:$0xff] %v6074_v54 }
 0x1bf   :  { %v6072_v45 = vpop.permute.xlu1 %2358 }
 0x1c0   :  { %5168 = vmatmul.mubr.msk.bf16.vlgmr.msra.gmra.mxu1 %vm265_vm6, %v5432_v0  ;;  %7432 = vst [vmem:[#allocation8_spill] sm:$0xff] %v6072_v45 }
 0x1c1   :  { %2325 = vmatprep.mubr.bf16.mxu1 %v7368_v6  ;;  %v6078_v61 = vpop.permute.xlu0 %2593 }
 0x1c2   :  { %7434 = vst [vmem:[#allocation10_spill] sm:$0xff] %v6078_v61 }
 0x1c3   :  { %v6076_v55 = vpop.permute.xlu1 %2591 }
 0x1c4   :  { %5166 = vmatmul.mubr.msk.bf16.gmra.mxu0 %vm265_vm6, %v5433_v1 }
 0x1c5   :  { %2737 = vmatprep.mubr.bf16.mxu0 %v7368_v6 }
 0x1c8   :  { %v319_v2 = vpop.f32.mrf.mxu0  ;;  %5169 = vmatmul.mubr.msk.bf16.gmra.mxu1 %vm265_vm6, %v5433_v1 }
 0x1c9   :  { %2780 = vmatprep.mubr.bf16.mxu1 %v7368_v6 }
 0x1ca   :  { %v321_v3 = vpop.f32.mrf.mxu0 }
 0x1cc   :  { %v323_v9 = vpop.f32.mrf.mxu0  ;;  %v372_v10 = vpop.f32.mrf.mxu1 }
 0x1ce   :  { %v325_v11 = vpop.f32.mrf.mxu0  ;;  %v374_v14 = vpop.f32.mrf.mxu1 }
 0x1d0   :  { %v329_v4 = vpop.f32.mrf.mxu0  ;;  %v376_v8 = vpop.f32.mrf.mxu1 }
 0x1d2   :  { %v331_v16 = vpop.f32.mrf.mxu0  ;;  %v378_v17 = vpop.f32.mrf.mxu1 }
 0x1d4   :  { %v333_v18 = vpop.f32.mrf.mxu0  ;;  %v382_v20 = vpop.f32.mrf.mxu1 }
 0x1d6   :  { %v335_v21 = vpop.f32.mrf.mxu0  ;;  %v384_v22 = vpop.f32.mrf.mxu1 }
 0x1d8   :  { %v386_v7 = vpop.f32.mrf.mxu1  ;;  %v494_v23 = vpop.f32.mrf.mxu0 }
 0x1d9   :  { %v495_v24 = vadd.f32 %v494_v23, %v319_v2 }
 0x1da   :  { %v388_v29 = vpop.f32.mrf.mxu1  ;;  %v496_v25 = vpop.f32.mrf.mxu0 }
 0x1db   :  { %v497_v49 = vadd.f32 %v496_v25, %v321_v3 }
 0x1dc   :  { %v498_v26 = vpop.f32.mrf.mxu0  ;;  %v547_v5 = vpop.f32.mrf.mxu1 }
 0x1dd   :  { %v499_v27 = vadd.f32 %v498_v26, %v323_v9  ;;  %v548_v30 = vadd.f32 %v547_v5, %v372_v10 }
 0x1de   :  { %v500_v43 = vpop.f32.mrf.mxu0  ;;  %v549_v31 = vpop.f32.mrf.mxu1 }
 0x1df   :  { %v501_v58 = vadd.f32 %v500_v43, %v325_v11  ;;  %v550_v59 = vadd.f32 %v549_v31, %v374_v14 }
 0x1e0   :  { %v504_v33 = vpop.f32.mrf.mxu0  ;;  %v551_v34 = vpop.f32.mrf.mxu1 }
 0x1e1   :  { %v505_v35 = vadd.f32 %v504_v33, %v329_v4  ;;  %v552_v36 = vadd.f32 %v551_v34, %v376_v8  ;;  %v6080_v8 = vpop.permute.xlu1 %2526 }
 0x1e2   :  { %v506_v39 = vpop.f32.mrf.mxu0  ;;  %v553_v40 = vpop.f32.mrf.mxu1  ;;  %7435 = vst [vmem:[#allocation11_spill] sm:$0xff] %v6080_v8 }
 0x1e3   :  { %v507_v15 = vadd.f32 %v506_v39, %v331_v16  ;;  %v554_v9 = vadd.f32 %v553_v40, %v378_v17  ;;  %v6082_v16 = vpop.permute.xlu0 %2528 }
 0x1e4   :  { %v508_v42 = vpop.f32.mrf.mxu0  ;;  %v557_v44 = vpop.f32.mrf.mxu1  ;;  %7436 = vst [vmem:[#allocation12_spill] sm:$0xff] %v6082_v16 }
 0x1e5   :  { %v509_v28 = vadd.f32 %v508_v42, %v333_v18  ;;  %v558_v38 = vadd.f32 %v557_v44, %v382_v20  ;;  %v6084_v5 = vpop.permute.xlu1 %3013 }
 0x1e6   :  { %v510_v46 = vpop.f32.mrf.mxu0  ;;  %v559_v48 = vpop.f32.mrf.mxu1  ;;  %7437 = vst [vmem:[#allocation13_spill] sm:$0xff] %v6084_v5 }
 0x1e7   :  { %v511_v47 = vadd.f32 %v510_v46, %v335_v21  ;;  %v560_v50 = vadd.f32 %v559_v48, %v384_v22  ;;  %v6086_v17 = vpop.permute.xlu0 %3015 }
 0x1e8   :  { %v561_v51 = vpop.f32.mrf.mxu1  ;;  %v746_v52 = vpop.f32.mrf.mxu0  ;;  %7438 = vst [vmem:[#allocation14_spill] sm:$0xff] %v6086_v17 }
 0x1e9   :  { %v562_v32 = vadd.f32 %v561_v51, %v386_v7  ;;  %v818_v53 = vadd.f32 %v746_v52, %v495_v24  ;;  %v6092_v44 = vpop.permute.xlu1 %3258 }
 0x1ea   :  { %v563_v56 = vpop.f32.mrf.mxu1  ;;  %v748_v57 = vpop.f32.mrf.mxu0  ;;  %7439 = vst [vmem:[#allocation15_spill] sm:$0xff] %v6092_v44 }
 0x1eb   :  { %v564_v19 = vadd.f32 %v563_v56, %v388_v29  ;;  %v819_v60 = vadd.f32 %v748_v57, %v497_v49 }
 0x1ec   :  { %v750_v62 = vpop.f32.mrf.mxu0  ;;  %v799_v63 = vpop.f32.mrf.mxu1 }
 0x1ed   :  { %v822_v0 = vadd.f32 %v750_v62, %v499_v27  ;;  %v820_v1 = vadd.f32 %v799_v63, %v548_v30 }
 0x1ee   :  { %v752_v2 = vpop.f32.mrf.mxu0  ;;  %v801_v3 = vpop.f32.mrf.mxu1 }
 0x1ef   :  { %v823_v10 = vadd.f32 %v752_v2, %v501_v58  ;;  %v821_v4 = vadd.f32 %v801_v3, %v550_v59  ;;  %v6108_v58 = vpop.permute.xlu1 %3684 }
 0x1f0   :  { %v756_v18 = vpop.f32.mrf.mxu0  ;;  %v803_v11 = vpop.f32.mrf.mxu1  ;;  %7441 = vst [vmem:[#allocation17_spill] sm:$0xff] %v6108_v58 }
 0x1f1   :  { %v826_v14 = vadd.f32 %v756_v18, %v505_v35  ;;  %v824_v20 = vadd.f32 %v803_v11, %v552_v36  ;;  %v7371_v11 = vrot.slane %v6108_v58, 4 }
 0x1f2   :  { %v758_v21 = vpop.f32.mrf.mxu0  ;;  %v805_v22 = vpop.f32.mrf.mxu1 }
 0x1f3   :  { %v827_v7 = vadd.f32 %v758_v21, %v507_v15  ;;  %v825_v23 = vadd.f32 %v805_v22, %v554_v9 }
 0x1f4   :  { %v760_v24 = vpop.f32.mrf.mxu0  ;;  %v809_v29 = vpop.f32.mrf.mxu1 }
 0x1f5   :  { %v830_v25 = vadd.f32 %v760_v24, %v509_v28  ;;  %v828_v26 = vadd.f32 %v809_v29, %v558_v38  ;;  %v6094_v28 = vpop.permute.xlu0 %3260 }
 0x1f6   :  { %v762_v27 = vpop.f32.mrf.mxu0  ;;  %v811_v30 = vpop.f32.mrf.mxu1  ;;  %7440 = vst [vmem:[#allocation16_spill] sm:$0xff] %v6094_v28 }
 0x1f7   :  { %v831_v43 = vadd.f32 %v762_v27, %v511_v47  ;;  %v829_v31 = vadd.f32 %v811_v30, %v560_v50 }
 0x1f8   :  { %v813_v33 = vpop.f32.mrf.mxu1  ;;  %v1018_v34 = vpop.f32.mrf.mxu0 }
 0x1f9   :  { %v832_v35 = vadd.f32 %v813_v33, %v562_v32  ;;  %v6088_v36 = vadd.f32 %v1018_v34, %v818_v53  ;;  %v3687_v59 = vpop.permute.xlu0 %3686  ;;  %v6147_v33 = vld [vmem:[#allocation3 + $0x5c] sm:$0xf] }
 0x1fa   :  { %v815_v39 = vpop.f32.mrf.mxu1  ;;  %v1020_v40 = vpop.f32.mrf.mxu0  ;;  %7447 = vst [vmem:[#allocation23_spill] sm:$0xff] %v6147_v33 }
 0x1fb   :  { %v833_v15 = vadd.f32 %v815_v39, %v564_v19  ;;  %v6090_v42 = vadd.f32 %v1020_v40, %v819_v60 }
 0x1fc   :  { %v1022_v38 = vpop.f32.mrf.mxu0  ;;  %v1071_v46 = vpop.f32.mrf.mxu1 }
 0x1fd   :  { %v6096_v48 = vadd.f32 %v1022_v38, %v822_v0  ;;  %v6098_v49 = vadd.f32 %v1071_v46, %v820_v1  ;;  %v3944_v21 = vpop.permute.xlu0 %3943  ;;  %v6156_v46 = vld [vmem:[#allocation3 + $0x14] sm:$0xf] }
 0x1fe   :  { %v1024_v47 = vpop.f32.mrf.mxu0  ;;  %v1073_v50 = vpop.f32.mrf.mxu1  ;;  %7448 = vst [vmem:[#allocation24_spill] sm:$0xff] %v6156_v46 }
 0x1ff   :  { %v6100_v51 = vadd.f32 %v1024_v47, %v823_v10  ;;  %v6102_v52 = vadd.f32 %v1073_v50, %v821_v4  ;;  %v6158_v47 = vld [vmem:[#allocation3 + $0x2c] sm:$0xf] }
 0x200   :  { %v1028_v32 = vpop.f32.mrf.mxu0  ;;  %v1075_v53 = vpop.f32.mrf.mxu1  ;;  %7449 = vst [vmem:[#allocation25_spill] sm:$0xff] %v6158_v47 }
 0x201   :  { %v6104_v56 = vadd.f32 %v1028_v32, %v826_v14  ;;  %v6106_v57 = vadd.f32 %v1075_v53, %v824_v20  ;;  %v3689_v14 = vrot.slane %v3687_v59, 4  ;;  %v6123_v20 = vpop.permute.xlu1 %3941 }
 0x202   :  { %v1030_v19 = vpop.f32.mrf.mxu0  ;;  %v1077_v60 = vpop.f32.mrf.mxu1  ;;  %7442 = vst [vmem:[#allocation18_spill] sm:$0xff] %v6123_v20 }
 0x203   :  { %v6110_v62 = vadd.f32 %v1030_v19, %v827_v7  ;;  %v6112_v63 = vadd.f32 %v1077_v60, %v825_v23  ;;  %v7370_v7 = vrot.slane %v6123_v20, 4  ;;  %v6126_v23 = vrot.slane %v3944_v21, 4 }
 0x204   :  { %v1032_v0 = vpop.f32.mrf.mxu0  ;;  %v1081_v1 = vpop.f32.mrf.mxu1  ;;  %v3691_v29 = vsel %vm2533_vm10, %v7371_v11, %v3689_v14  ;;  %v3698_v50 = vmul.bf16 %v3689_v14, %v6156_v46  ;;  %v3701_v32 = vmul.bf16 %v3689_v14, %v6158_v47 }
 0x205   :  { %v6114_v2 = vadd.f32 %v1032_v0, %v830_v25  ;;  %v6116_v3 = vadd.f32 %v1081_v1, %v828_v26  ;;  %7443 = vst [vmem:[#allocation19_spill] sm:$0xff] %v6126_v23  ;;  %v6134_v26 = vsel %vm961_vm7, %v3691_v29, %v3687_v59  ;;  %v3948_v27 = vsel %vm2533_vm10, %v7370_v7, %v6126_v23 }
 0x206   :  { %v1034_v9 = vpop.f32.mrf.mxu0  ;;  %v1083_v10 = vpop.f32.mrf.mxu1  ;;  %7444 = vst [vmem:[#allocation20_spill] sm:$0xff] %v6134_v26  ;;  %v5278_v53 = vcombine.low %v3698_v50, %v3701_v32 }
 0x207   :  { %v6118_v4 = vadd.f32 %v1034_v9, %v831_v43  ;;  %v6120_v18 = vadd.f32 %v1083_v10, %v829_v31  ;;  %v6143_v43 = vsel %vm689_vm9, %v3948_v27, %v3944_v21  ;;  %v6145_v31 = vld [vmem:[#allocation3 + $0x44] sm:$0xf] }
 0x208   :  { %v1085_v22 = vpop.f32.mrf.mxu1  ;;  %7445 = vst [vmem:[#allocation21_spill] sm:$0xff] %v6143_v43  ;;  %7446 = vst [vmem:[#allocation22_spill] sm:$0xff] %v6145_v31  ;;  %v3704_v34 = vmul.bf16 %v3689_v14, %v6145_v31  ;;  %v3961_v40 = vmul.bf16 %v6126_v23, %v6145_v31  ;;  %3766 = vrot.lane.b32.xlu1 %v5278_v53, %s5485_s24  ;;  %v1192_v59 = vpop.f32.mrf.mxu0 }
 0x209   :  { %v6128_v24 = vadd.f32 %v1085_v22, %v832_v35  ;;  %v3707_v35 = vmul.bf16 %v3689_v14, %v6147_v33 }
 0x20a   :  { %v1087_v25 = vpop.f32.mrf.mxu1  ;;  %v1194_v19 = vpop.f32.mrf.mxu0 }
 0x20b   :  { %v6140_v30 = vadd.f32 %v1087_v25, %v833_v15  ;;  %v5283_v39 = vcombine.low %v3704_v34, %v3707_v35  ;;  %v3964_v15 = vmul.bf16 %v6126_v23, %v6147_v33 }
 0x20c   :  { %v1245_v60 = vpop.f32.mrf.mxu1  ;;  %v1196_v0 = vpop.f32.mrf.mxu0 }
 0x20d   :  { %3776 = vrot.lane.b32.xlu0 %v5283_v39, %s5485_s24  ;;  %v5304_v38 = vcombine.low %v3961_v40, %v3964_v15 }
 0x20e   :  { %v1247_v1 = vpop.f32.mrf.mxu1  ;;  %v1198_v9 = vpop.f32.mrf.mxu0 }
 0x210   :  { %v1249_v10 = vpop.f32.mrf.mxu1  ;;  %v1202_v21 = vpop.f32.mrf.mxu0 }
 0x211   :  { %4033 = vrot.lane.b32.xlu0 %v5304_v38, %s5484_s23 }
 0x212   :  { %v1251_v22 = vpop.f32.mrf.mxu1  ;;  %v1204_v29 = vpop.f32.mrf.mxu0 }
 0x214   :  { %v1255_v25 = vpop.f32.mrf.mxu1  ;;  %v1206_v27 = vpop.f32.mrf.mxu0 }
 0x216   :  { %v1257_v34 = vpop.f32.mrf.mxu1  ;;  %v1208_v35 = vpop.f32.mrf.mxu0 }
 0x218   :  { %v1259_v39 = vpop.f32.mrf.mxu1 }
 0x21a   :  { %v1261_v14 = vpop.f32.mrf.mxu1 }
 0x24c   :  { %v1462_v40 = vpop.f32.mrf.mxu0 }
 0x24e   :  { %v1464_v15 = vpop.f32.mrf.mxu0 }
 0x250   :  { %v1466_v38 = vpop.f32.mrf.mxu0  ;;  %v1515_v50 = vpop.f32.mrf.mxu1 }
 0x252   :  { %v1468_v32 = vpop.f32.mrf.mxu0  ;;  %v1517_v53 = vpop.f32.mrf.mxu1 }
 0x254   :  { %v1472_v6 = vpop.f32.mrf.mxu0  ;;  %v1519_v7 = vpop.f32.mrf.mxu1 }
 0x256   :  { %v1474_v11 = vpop.f32.mrf.mxu0  ;;  %v6164_v13 = vpop.f32.mrf.mxu1 }
 0x258   :  { %v6166_v12 = vpop.f32.mrf.mxu0  ;;  %v6168_v33 = vpop.f32.mrf.mxu1 }
 0x25a   :  { %v6170_v31 = vpop.f32.mrf.mxu0  ;;  %v6172_v47 = vpop.f32.mrf.mxu1 }
 0x25c   :  { %v6174_v23 = vpop.f32.mrf.mxu1  ;;  %v1728_v46 = vpop.f32.mrf.mxu0 }
 0x25e   :  { %v6176_v26 = vpop.f32.mrf.mxu1  ;;  %v1730_v28 = vpop.f32.mrf.mxu0 }
 0x25f   :  { %7450 = vst [vmem:[#allocation26_spill] sm:$0xff] %v6176_v26 }
 0x260   :  { %v6178_v44 = vpop.f32.mrf.mxu0  ;;  %v6180_v20 = vpop.f32.mrf.mxu1 }
 0x261   :  { %7451 = vst [vmem:[#allocation27_spill] sm:$0xff] %v6178_v44  ;;  %7452 = vst [vmem:[#allocation28_spill] sm:$0xff] %v6180_v20  ;;  %v1269_v44 = vadd.f32 %v1198_v9, %v6100_v51  ;;  %v1277_v51 = vadd.f32 %v1208_v35, %v6118_v4 }
 0x262   :  { %v6182_v58 = vpop.f32.mrf.mxu0  ;;  %v6184_v17 = vpop.f32.mrf.mxu1 }
 0x263   :  { %7453 = vst [vmem:[#allocation29_spill] sm:$0xff] %v6182_v58  ;;  %7454 = vst [vmem:[#allocation30_spill] sm:$0xff] %v6184_v17 }
 0x264   :  { %v6186_v5 = vpop.f32.mrf.mxu0  ;;  %v6188_v16 = vpop.f32.mrf.mxu1 }
 0x265   :  { %7455 = vst [vmem:[#allocation31_spill] sm:$0xff] %v6186_v5  ;;  %7456 = vst [vmem:[#allocation32_spill] sm:$0xff] %v6188_v16 }
 0x266   :  { %v6190_v8 = vpop.f32.mrf.mxu0  ;;  %v6192_v61 = vpop.f32.mrf.mxu1 }
 0x267   :  { %7457 = vst [vmem:[#allocation33_spill] sm:$0xff] %v6190_v8  ;;  %7458 = vst [vmem:[#allocation34_spill] sm:$0xff] %v6192_v61 }
 0x268   :  { %v6194_v37 = vpop.f32.mrf.mxu0  ;;  %v6196_v43 = vpop.f32.mrf.mxu1 }
 0x269   :  { %7459 = vst [vmem:[#allocation35_spill] sm:$0xff] %v6194_v37  ;;  %7460 = vst [vmem:[#allocation36_spill] sm:$0xff] %v6196_v43  ;;  %v1264_v37 = vadd.f32 %v1192_v59, %v6088_v36  ;;  %v1265_v43 = vadd.f32 %v1194_v19, %v6090_v42  ;;  %v1270_v36 = vadd.f32 %v1249_v10, %v6106_v57 }
 0x26a   :  { %v6198_v41 = vpop.f32.mrf.mxu0  ;;  %v6200_v54 = vpop.f32.mrf.mxu1  ;;  %v1273_v42 = vadd.f32 %v1204_v29, %v6110_v62  ;;  %v1271_v59 = vadd.f32 %v1251_v22, %v6112_v63  ;;  %v1279_v57 = vadd.f32 %v1261_v14, %v6140_v30  ;;  %v1539_v10 = vadd.f32 %v1468_v32, %v1269_v44 }
 0x26b   :  { %7461 = vst [vmem:[#allocation37_spill] sm:$0xff] %v6198_v41  ;;  %7462 = vst [vmem:[#allocation38_spill] sm:$0xff] %v6200_v54  ;;  %v1535_v62 = vadd.f32 %v1464_v15, %v1265_v43  ;;  %v1540_v22 = vadd.f32 %v1519_v7, %v1270_v36  ;;  %v7468_v7 = vld [vmem:[#allocation28_spill] sm:$0xff] }
 0x26c   :  { %v6202_v45 = vpop.f32.mrf.mxu1  ;;  %v1998_v58 = vpop.f32.mrf.mxu0  ;;  %v1543_v4 = vadd.f32 %v1474_v11, %v1273_v42  ;;  %v7467_v11 = vld [vmem:[#allocation27_spill] sm:$0xff]  ;;  %v7473_v15 = vld [vmem:[#allocation8_spill] sm:$0xff] }
 0x26d   :  { %7463 = vst [vmem:[#allocation39_spill] sm:$0xff] %v6202_v45  ;;  %v1268_v45 = vadd.f32 %v1196_v0, %v6096_v48  ;;  %v1276_v48 = vadd.f32 %v1206_v27, %v6114_v2  ;;  %v1801_v43 = vadd.f32 %v1730_v28, %v1535_v62  ;;  %v7469_v28 = vld [vmem:[#allocation26_spill] sm:$0xff]  ;;  %v7474_v32 = vld [vmem:[#allocation32_spill] sm:$0xff] }
 0x26e   :  { %v6204_v17 = vpop.f32.mrf.mxu1  ;;  %v2000_v5 = vpop.f32.mrf.mxu0  ;;  %v7476_v42 = vld [vmem:[#allocation34_spill] sm:$0xff] }
 0x26f   :  { %7464 = vst [vmem:[#allocation40_spill] sm:$0xff] %v6204_v17  ;;  %v1266_v17 = vadd.f32 %v1245_v60, %v6098_v49  ;;  %v1274_v49 = vadd.f32 %v1255_v25, %v6116_v3  ;;  %v1534_v60 = vadd.f32 %v1462_v40, %v1264_v37  ;;  %v1546_v30 = vadd.f32 %v6166_v12, %v1276_v48 }
 0x270   :  { %v2002_v26 = vpop.f32.mrf.mxu0  ;;  %v2051_v16 = vpop.f32.mrf.mxu1  ;;  %v7477_v48 = vld [vmem:[#allocation35_spill] sm:$0xff] }
 0x271   :  { %v1536_v9 = vadd.f32 %v1515_v50, %v1266_v17  ;;  %v1800_v2 = vadd.f32 %v1728_v46, %v1534_v60  ;;  %v1544_v25 = vadd.f32 %v6168_v33, %v1274_v49  ;;  %v2071_v46 = vadd.f32 %v2000_v5, %v1801_v43  ;;  %v7470_v33 = vld [vmem:[#allocation29_spill] sm:$0xff] }
 0x272   :  { %v6206_v20 = vpop.f32.mrf.mxu0  ;;  %v6208_v8 = vpop.f32.mrf.mxu1  ;;  %v1805_v27 = vadd.f32 %v7470_v33, %v1539_v10  ;;  %v1806_v5 = vadd.f32 %v7474_v32, %v1540_v22  ;;  %v1812_v49 = vadd.f32 %v7477_v48, %v1546_v30  ;;  %v7482_v43 = vld [vmem:[#allocation9_spill] sm:$0xff] }
 0x273   :  { %7465 = vst [vmem:[#allocation41_spill] sm:$0xff] %v6206_v20  ;;  %7466 = vst [vmem:[#allocation42_spill] sm:$0xff] %v6208_v8  ;;  %v1267_v20 = vadd.f32 %v1247_v1, %v6102_v52  ;;  %v1272_v8 = vadd.f32 %v1202_v21, %v6104_v56  ;;  %v1275_v52 = vadd.f32 %v1257_v34, %v6120_v18 }
 0x274   :  { %v6213_v61 = vpop.f32.mrf.mxu0  ;;  %v6215_v54 = vpop.f32.mrf.mxu1  ;;  %v1278_v56 = vadd.f32 %v1259_v39, %v6128_v24  ;;  %v1538_v1 = vadd.f32 %v1466_v38, %v1268_v45  ;;  %v1541_v24 = vadd.f32 %v6164_v13, %v1271_v59  ;;  %v2070_v29 = vadd.f32 %v1998_v58, %v1800_v2 }
 0x275   :  { %v1537_v21 = vadd.f32 %v1517_v53, %v1267_v20  ;;  %v1542_v3 = vadd.f32 %v1472_v6, %v1272_v8  ;;  %v1547_v45 = vadd.f32 %v6170_v31, %v1277_v51  ;;  %v1545_v17 = vadd.f32 %v6172_v47, %v1275_v52  ;;  %v7471_v31 = vld [vmem:[#allocation30_spill] sm:$0xff]  ;;  %v7472_v47 = vld [vmem:[#allocation31_spill] sm:$0xff]  ;;  %v7475_v53 = vld [vmem:[#allocation33_spill] sm:$0xff] }
 0x276   :  { %v6225_v19 = vpop.f32.mrf.mxu0  ;;  %v6227_v41 = vpop.f32.mrf.mxu1  ;;  %v6249_v6 = vadd.f32 %v6174_v23, %v1278_v56  ;;  %v1804_v20 = vadd.f32 %v7467_v11, %v1538_v1  ;;  %v1802_v13 = vadd.f32 %v7468_v7, %v1536_v9  ;;  %v6256_v58 = vadd.f32 %v7469_v28, %v1279_v57  ;;  %v7480_v9 = vld [vmem:[#allocation37_spill] sm:$0xff]  ;;  %v7483_v11 = vld [vmem:[#allocation38_spill] sm:$0xff] }
 0x277   :  { %v1803_v34 = vadd.f32 %v7471_v31, %v1537_v21  ;;  %v1808_v35 = vadd.f32 %v7472_v47, %v1542_v3  ;;  %v1809_v36 = vadd.f32 %v7475_v53, %v1543_v4  ;;  %v1807_v59 = vadd.f32 %v7476_v42, %v1541_v24 }
 0x278   :  { %v6235_v0 = vpop.f32.mrf.mxu0  ;;  %v6237_v63 = vpop.f32.mrf.mxu1  ;;  %v2074_v40 = vadd.f32 %v2002_v26, %v1804_v20  ;;  %v2072_v14 = vadd.f32 %v2051_v16, %v1802_v13  ;;  %v7479_v16 = vld [vmem:[#allocation36_spill] sm:$0xff]  ;;  %v1813_v10 = vadd.f32 %v7480_v9, %v1547_v45  ;;  %v1811_v20 = vadd.f32 %v7483_v11, %v1545_v17 }
 0x279   :  { %v1810_v1 = vadd.f32 %v7479_v16, %v1544_v25  ;;  %v2078_v7 = vadd.f32 %v6213_v61, %v1808_v35  ;;  %v2076_v13 = vadd.f32 %v6215_v54, %v1806_v5  ;;  %v2077_v28 = vadd.f32 %v6227_v41, %v1807_v59  ;;  %v7484_v41 = vld [vmem:[#allocation7_spill] sm:$0xff] }
 0x27a   :  { %v6239_v37 = vpop.f32.mrf.mxu0  ;;  %v6241_v18 = vpop.f32.mrf.mxu1  ;;  %v7478_v52 = vld [vmem:[#allocation41_spill] sm:$0xff]  ;;  %v7481_v2 = vld [vmem:[#allocation42_spill] sm:$0xff]  ;;  %v2082_v31 = vadd.f32 %v6235_v0, %v1812_v49 }
 0x27b   :  { %v2075_v56 = vadd.f32 %v7478_v52, %v1805_v27  ;;  %v2073_v21 = vadd.f32 %v7481_v2, %v1803_v34  ;;  %v2080_v48 = vadd.f32 %v6237_v63, %v1810_v1  ;;  %v2083_v49 = vadd.f32 %v6239_v37, %v1813_v10  ;;  %v7486_v63 = vld [vmem:[#allocation21_spill] sm:$0xff]  ;;  %v7487_v1 = vld [vmem:[#allocation6_spill] sm:$0xff] }
 0x27c   :  { %v6251_v8 = vpop.f32.mrf.mxu1  ;;  %v2264_v44 = vpop.f32.mrf.mxu0 }
 0x27d   :  { %v2336_v12 = vadd.f32 %v2264_v44, %v2070_v29 }
 0x27e   :  { %v6261_v23 = vpop.f32.mrf.mxu1  ;;  %v2266_v39 = vpop.f32.mrf.mxu0 }
 0x27f   :  { %v2376_v38 = vadd.f32 %v7473_v15, %v2336_v12  ;;  %v2337_v50 = vadd.f32 %v2266_v39, %v2071_v46  ;;  %v2079_v12 = vadd.f32 %v6225_v19, %v1809_v36 }
 0x280   :  { %v2268_v51 = vpop.f32.mrf.mxu0  ;;  %v2317_v60 = vpop.f32.mrf.mxu1 }
 0x281   :  { %v2377_v57 = vadd.f32 %v7473_v15, %v2337_v50  ;;  %v2340_v62 = vadd.f32 %v2268_v51, %v2074_v40  ;;  %v2338_v26 = vadd.f32 %v2317_v60, %v2072_v14  ;;  %v2392_v3 = vmax.f32 %v2376_v38, 0.0 }
 0x282   :  { %v2270_v22 = vpop.f32.mrf.mxu0  ;;  %v2319_v4 = vpop.f32.mrf.mxu1 }
 0x283   :  { %v2393_v24 = vmax.f32 %v2377_v57, 0.0  ;;  %v2380_v30 = vadd.f32 %v7482_v43, %v2340_v62  ;;  %v2378_v29 = vadd.f32 %v7473_v15, %v2338_v26  ;;  %v2341_v44 = vadd.f32 %v2270_v22, %v2075_v56 }
 0x284   :  { %v2339_v25 = vadd.f32 %v2319_v4, %v2073_v21  ;;  %v2274_v46 = vpop.f32.mrf.mxu0  ;;  %v2321_v45 = vpop.f32.mrf.mxu1  ;;  %v2081_v57 = vadd.f32 %v6241_v18, %v1811_v20  ;;  %v7488_v18 = vld [vmem:[#allocation40_spill] sm:$0xff] }
 0x285   :  { %v6280_v33 = vpack.c.bf16 %v2393_v24, %v2392_v3  ;;  %v2381_v27 = vadd.f32 %v7482_v43, %v2341_v44  ;;  %v2344_v17 = vadd.f32 %v2274_v46, %v2078_v7  ;;  %v2342_v47 = vadd.f32 %v2321_v45, %v2076_v13  ;;  %v7490_v13 = vld [vmem:[#allocation10_spill] sm:$0xff] }
 0x286   :  { %v2379_v34 = vadd.f32 %v7473_v15, %v2339_v25  ;;  %v2276_v61 = vpop.f32.mrf.mxu0  ;;  %v2323_v35 = vpop.f32.mrf.mxu1  ;;  %v2396_v54 = vmax.f32 %v2380_v30, 0.0  ;;  %v2394_v39 = vmax.f32 %v2378_v29, 0.0  ;;  %v7485_v15 = vld [vmem:[#allocation39_spill] sm:$0xff]  ;;  %v1815_v21 = vadd.f32 %v7488_v18, %v6256_v58 }
 0x287   :  { %2456 = vst [vmem:[#allocation3 + $0x4] sm:$0xff] %v6280_v33  ;;  %v2397_v40 = vmax.f32 %v2381_v27, 0.0  ;;  %v2345_v19 = vadd.f32 %v2276_v61, %v2079_v12  ;;  %v6287_v38 = vadd.f32 %v7484_v41, %v2344_v17  ;;  %v2382_v50 = vadd.f32 %v7482_v43, %v2342_v47 }
 0x288   :  { %v2395_v14 = vmax.f32 %v2379_v34, 0.0  ;;  %v2343_v32 = vadd.f32 %v2323_v35, %v2077_v28  ;;  %v2278_v0 = vpop.f32.mrf.mxu0  ;;  %v2327_v5 = vpop.f32.mrf.mxu1  ;;  %v1814_v53 = vadd.f32 %v7485_v15, %v6249_v6  ;;  %v7489_v44 = vrot.slane %v6076_v55, 4 }
 0x289   :  { %v6292_v36 = vpack.c.bf16 %v2397_v40, %v2396_v54  ;;  %v6295_v42 = vadd.f32 %v7484_v41, %v2345_v19  ;;  %v2348_v59 = vadd.f32 %v2278_v0, %v2082_v31  ;;  %v7404_v6 = vmax.f32 %v6287_v38, 0.0  ;;  %v7493_v19 = vld [vmem:[#allocation11_spill] sm:$0xff] }
 0x28a   :  { %v6299_v51 = vpack.c.bf16 %v2395_v14, %v2394_v39  ;;  %v2383_v60 = vadd.f32 %v7482_v43, %v2343_v32  ;;  %v2280_v52 = vpop.f32.mrf.mxu0  ;;  %v2329_v56 = vpop.f32.mrf.mxu1  ;;  %v2398_v62 = vmax.f32 %v2382_v50, 0.0  ;;  %v2346_v10 = vadd.f32 %v2327_v5, %v2080_v48 }
 0x28b   :  { %2458 = vst [vmem:[#allocation3 + $0x1c] sm:$0xff] %v6292_v36  ;;  %v7402_v26 = vmax.f32 %v6295_v42, 0.0  ;;  %v6312_v9 = vadd.f32 %v7487_v1, %v2348_v59  ;;  %v2349_v22 = vadd.f32 %v2280_v52, %v2083_v49  ;;  %v2347_v4 = vadd.f32 %v2329_v56, %v2081_v57  ;;  %v7498_v59 = vld [vmem:[#allocation13_spill] sm:$0xff]  ;;  %v6399_v49 = vpop.permute.xlu0 %4188 }
 0x28c   :  { %2457 = vst [vmem:[#allocation3 + $0xc] sm:$0xff] %v6299_v51  ;;  %v6309_v37 = vmul.bf16 %v6299_v51, %v7486_v63  ;;  %v2399_v16 = vmax.f32 %v2383_v60, 0.0  ;;  %v2331_v2 = vpop.f32.mrf.mxu1  ;;  %v2084_v24 = vadd.f32 %v6251_v8, %v1814_v53  ;;  %v6326_v30 = vadd.f32 %v7484_v41, %v2346_v10 }
 0x28d   :  { %v6320_v3 = vpack.c.bf16 %v7402_v26, %v7404_v6  ;;  %v6332_v58 = vsel %vm203_vm0, %v7489_v44, %v6076_v55  ;;  %v2085_v11 = vadd.f32 %v6261_v23, %v1815_v21  ;;  %v6337_v20 = vadd.f32 %v7487_v1, %v2349_v22 }
 0x28e   :  { %v6323_v43 = vpack.c.bf16 %v2399_v16, %v2398_v62  ;;  %v2333_v29 = vpop.f32.mrf.mxu1  ;;  %v6340_v8 = vadd.f32 %v7484_v41, %v2347_v4  ;;  %v6342_v7 = vld [vmem:[#allocation3] sm:$0xff]  ;;  %v6345_v25 = vrot.slane %v7490_v13, 4  ;;  %v7403_v46 = vmax.f32 %v6312_v9, 0.0  ;;  %v7499_v62 = vld [vmem:[#allocation14_spill] sm:$0xff]  ;;  %v7501_v4 = vld [vmem:[#allocation17_spill] sm:$0xff] }
 0x28f   :  { %2460 = vst [vmem:[#allocation3 + $0x34] sm:$0xff] %v6320_v3  ;;  %v2350_v45 = vadd.f32 %v2331_v2, %v2084_v24  ;;  %v7400_v23 = vmax.f32 %v6326_v30, 0.0  ;;  %v7401_v12 = vmax.f32 %v6337_v20, 0.0  ;;  %v2351_v27 = vadd.f32 %v2333_v29, %v2085_v11  ;;  %v7494_v41 = vld [vmem:[#allocation12_spill] sm:$0xff]  ;;  %v4187_v2 = vpop.permute.xlu1 %4186 }
 0x290   :  { %7491 = vst [vmem:[#allocation27_spill] sm:$0xff] %v6345_v25  ;;  %2459 = vst [vmem:[#allocation3 + $0x24] sm:$0xff] %v6323_v43  ;;  %v7398_v28 = vmax.f32 %v6340_v8, 0.0  ;;  %v2603_v17 = vmul.bf16 %v6332_v58, %v6342_v7  ;;  %v7492_v39 = vmov %v7489_v44  ;;  %v2530_v14 = vrot.slane %v7493_v19, 4  ;;  %v7503_v44 = vld [vmem:[#allocation18_spill] sm:$0xff] }
 0x291   :  { %v6353_v31 = vadd.f32 %v7487_v1, %v2350_v45  ;;  %v6363_v47 = vpack.c.bf16 %v7401_v12, %v7403_v46  ;;  %v6372_v35 = vadd.f32 %v7487_v1, %v2351_v27  ;;  %v2598_v40 = vsel %vm2533_vm10, %v7492_v39, %v6345_v25  ;;  %v7507_v39 = vld [vmem:[#allocation15_spill] sm:$0xff] }
 0x292   :  { %v6355_v34 = vld [vmem:[#allocation3 + $0x18] sm:$0xff]  ;;  %v6369_v61 = vpack.c.bf16 %v7398_v28, %v7400_v23  ;;  %v6382_v50 = vrot.slane %v7494_v41, 4  ;;  %v6392_v55 = vsel %vm203_vm0, %v2598_v40, %v7490_v13  ;;  %v6396_v53 = vsel %vm141_vm1, %v2530_v14, %v7493_v19 }
 0x293   :  { %v2606_v54 = vmul.bf16 %v6332_v58, %v6355_v34  ;;  %2462 = vst [vmem:[#allocation3 + $0x4c] sm:$0xff] %v6363_v47  ;;  %v7399_v32 = vmax.f32 %v6353_v31, 0.0  ;;  %v7397_v0 = vmax.f32 %v6372_v35, 0.0  ;;  %v6388_v15 = vld [vmem:[#allocation3 + $0x8] sm:$0xff]  ;;  %7496 = vst [vmem:[#allocation26_spill] sm:$0xff] %v6392_v55  ;;  %v3017_v48 = vrot.slane %v7498_v59, 4  ;;  %v4444_v26 = vpop.permute.xlu1 %4443 }
 0x294   :  { %7495 = vst [vmem:[#allocation28_spill] sm:$0xff] %v6382_v50  ;;  %2461 = vst [vmem:[#allocation3 + $0x3c] sm:$0xff] %v6369_v61  ;;  %v2534_v57 = vsel %vm2533_vm10, %v2530_v14, %v6382_v50  ;;  %v6415_v16 = vrot.slane %v7499_v62, 4  ;;  %v6419_v1 = vmul.bf16 %v6392_v55, %v6388_v15  ;;  %v6426_v21 = vld [vmem:[#allocation3 + $0x10] sm:$0xf]  ;;  %v2542_v22 = vmul.bf16 %v6396_v53, %v6355_v34 }
 0x295   :  { %v5190_v5 = vcombine.high %v2603_v17, %v2606_v54  ;;  %7497 = vst [vmem:[#allocation29_spill] sm:$0xff] %v6396_v53  ;;  %v6405_v60 = vpack.c.bf16 %v7397_v0, %v7399_v32  ;;  %v5189_v18 = vcombine.low %v2603_v17, %v2606_v54  ;;  %v7502_v24 = vrot.slane %v7501_v4, 4 }
 0x296   :  { %7500 = vst [vmem:[#allocation30_spill] sm:$0xff] %v6415_v16  ;;  %v7504_v11 = vrot.slane %v7503_v44, 4  ;;  %v6446_v17 = vsel %vm141_vm1, %v2534_v57, %v7494_v41  ;;  %v6450_v54 = vsel %vm632_vm2, %v3017_v48, %v7498_v59  ;;  %v3262_v40 = vrot.slane %v7507_v39, 4 }
 0x297   :  { %2667 = vrot.lane.b32.xlu0 %v5190_v5, %s5486_s11  ;;  %v6408_v52 = vld [vmem:[#allocation3 + $0x20] sm:$0xff]  ;;  %v6410_v56 = vld [vmem:[#allocation3 + $0x28] sm:$0xf]  ;;  %2463 = vst [vmem:[#allocation3 + $0x54] sm:$0xff] %v6405_v60  ;;  %v3690_v29 = vsel %vm961_vm7, %v7502_v24, %v7501_v4  ;;  %7505 = vst [vmem:[#allocation31_spill] sm:$0xff] %v6446_v17  ;;  %v2539_v19 = vmul.bf16 %v6396_v53, %v6342_v7  ;;  %v3020_v14 = vsel %vm2533_vm10, %v3017_v48, %v6415_v16  ;;  %v4446_v48 = vpop.permute.xlu0 %4445 }
 0x298   :  { %v6423_v10 = vmul.bf16 %v6392_v55, %v6408_v52  ;;  %v6438_v13 = vsel %vm689_vm9, %v7504_v11, %v7503_v44  ;;  %v2608_v27 = vmul.bf16 %v6345_v25, %v6410_v56  ;;  %7506 = vst [vmem:[#allocation8_spill] sm:$0xff] %v6450_v54  ;;  %v7508_v5 = vld [vmem:[#allocation16_spill] sm:$0xff]  ;;  %v2605_v59 = vmul.bf16 %v6345_v25, %v6426_v21 }
 0x299   :  { %v6459_v4 = vrot.slane %v7508_v5, 4  ;;  %v6463_v41 = vmul.bf16 %v6292_v36, %v6438_v13  ;;  %v6469_v57 = vmul.bf16 %v6280_v33, %v3690_v29  ;;  %v5203_v24 = vcombine.high %v2539_v19, %v2542_v22 }
 0x29a   :  { %v5191_v45 = vcombine.low %v6419_v1, %v6423_v10  ;;  %v6476_v44 = vmul.bf16 %v6292_v36, %v3690_v29  ;;  %v5193_v11 = vcombine.low %v2605_v59, %v2608_v27  ;;  %v6480_v0 = vmul.bf16 %v6446_v17, %v6408_v52 }
 0x29b   :  { %2665 = vrot.lane.b32.xlu0 %v5189_v18, %s5486_s11  ;;  %v6473_v18 = vmul.bf16 %v6280_v33, %v6438_v13  ;;  %v4190_v23 = vrot.slane %v4187_v2, 4  ;;  %v6491_v12 = vrot.slane %v6399_v49, 4  ;;  %v6498_v46 = vrot.slane %v4446_v48, 4 }
 0x29c   :  { %2669 = vrot.lane.b32.xlu1 %v5191_v45, %s5486_s11  ;;  %v7509_v45 = vld [vmem:[#allocation20_spill] sm:$0xff]  ;;  %v6503_v6 = vmul.bf16 %v6446_v17, %v6388_v15  ;;  %v5202_v55 = vcombine.low %v2539_v19, %v2542_v22  ;;  %v3028_v27 = vmul.bf16 %v6450_v54, %v6355_v34  ;;  %v6513_v59 = vsel %vm632_vm2, %v3020_v14, %v7499_v62 }
 0x29d   :  { %v6484_v28 = vmul.bf16 %v6299_v51, %v7509_v45  ;;  %v6488_v32 = vmul.bf16 %v6323_v43, %v7509_v45  ;;  %7510 = vst [vmem:[#allocation32_spill] sm:$0xff] %v6491_v12  ;;  %7511 = vst [vmem:[#allocation33_spill] sm:$0xff] %v6498_v46  ;;  %v4447_v53 = vrot.slane %v4444_v26, 4  ;;  %v2544_v17 = vmul.bf16 %v6382_v50, %v6410_v56 }
 0x29e   :  { %7512 = vst [vmem:[#allocation34_spill] sm:$0xff] %v6503_v6  ;;  %7513 = vst [vmem:[#allocation35_spill] sm:$0xff] %v6513_v59  ;;  %v6521_v25 = vsel %vm904_vm3, %v3262_v40, %v7507_v39  ;;  %v3265_v22 = vsel %vm2533_vm10, %v3262_v40, %v6459_v4  ;;  %v3025_v62 = vmul.bf16 %v6450_v54, %v6342_v7 }
 0x29f   :  { %2840 = vrot.lane.b32.xlu0 %v5203_v24, %s5488_s17  ;;  %v4192_v14 = vsel %vm260_vm4, %v4190_v23, %v4187_v2  ;;  %v4193_v24 = vsel %vm2533_vm10, %v4190_v23, %v6491_v12  ;;  %v4450_v39 = vsel %vm2533_vm10, %v4447_v53, %v6498_v46  ;;  %v2541_v40 = vmul.bf16 %v6382_v50, %v6426_v21 }
 0x2a0   :  { %2673 = vrot.lane.b32.xlu1 %v5193_v11, %s5486_s11  ;;  %v5204_v11 = vcombine.low %v6503_v6, %v6480_v0  ;;  %v6540_v54 = vmul.bf16 %v6323_v43, %v7486_v63  ;;  %v6543_v19 = vmul.bf16 %v6320_v3, %v3690_v29  ;;  %v6546_v2 = vmul.bf16 %v6363_v47, %v3690_v29 }
 0x2a1   :  { %v6550_v23 = vsel %vm904_vm3, %v3265_v22, %v7508_v5  ;;  %v5206_v46 = vcombine.low %v2541_v40, %v2544_v17  ;;  %v6555_v12 = vmul.bf16 %v6513_v59, %v6408_v52  ;;  %v4194_v50 = vsel %vm260_vm4, %v4193_v24, %v6399_v49 }
 0x2a2   :  { %v6573_v49 = vmul.bf16 %v6513_v59, %v6388_v15  ;;  %v5223_v17 = vcombine.low %v3025_v62, %v3028_v27  ;;  %v3273_v24 = vmul.bf16 %v6521_v25, %v6355_v34  ;;  %v6579_v22 = vmul.bf16 %v6320_v3, %v6438_v13 }
 0x2a3   :  { %2838 = vrot.lane.b32.xlu0 %v5202_v55, %s5488_s17  ;;  %v5224_v55 = vcombine.high %v3025_v62, %v3028_v27  ;;  %v6583_v40 = vmul.bf16 %v6363_v47, %v6438_v13  ;;  %v3030_v27 = vmul.bf16 %v6415_v16, %v6410_v56  ;;  %v3270_v13 = vmul.bf16 %v6521_v25, %v6342_v7 }
 0x2a4   :  { %2842 = vrot.lane.b32.xlu1 %v5204_v11, %s5488_s17  ;;  %v4449_v11 = vsel %vm437_vm8, %v4447_v53, %v4444_v26  ;;  %v6567_v26 = vmul.bf16 %v6280_v33, %v4192_v14  ;;  %v4451_v53 = vsel %vm437_vm8, %v4450_v39, %v4446_v48  ;;  %v6591_v39 = vmul.bf16 %v6323_v43, %v4194_v50 }
 0x2a5   :  { %v5225_v34 = vcombine.low %v6573_v49, %v6555_v12  ;;  %v6607_v5 = vmul.bf16 %v6299_v51, %v4194_v50  ;;  %v6610_v6 = vmul.bf16 %v6280_v33, %v4449_v11  ;;  %v3027_v7 = vmul.bf16 %v6415_v16, %v6426_v21 }
 0x2a6   :  { %v6619_v62 = vmul.bf16 %v6320_v3, %v4192_v14  ;;  %v5241_v48 = vcombine.high %v3270_v13, %v3273_v24  ;;  %v6626_v29 = vmul.bf16 %v6550_v23, %v6408_v52  ;;  %v6629_v33 = vmul.bf16 %v6323_v43, %v4451_v53 }
 0x2a7   :  { %3089 = vrot.lane.b32.xlu0 %v5224_v55, %s5489_s26  ;;  %v6622_v55 = vmul.bf16 %v6320_v3, %v4449_v11  ;;  %v6637_v59 = vmul.bf16 %v6363_v47, %v4449_v11  ;;  %v6642_v3 = vmul.bf16 %v6550_v23, %v6388_v15  ;;  %v3275_v43 = vmul.bf16 %v6459_v4, %v6410_v56 }
 0x2a8   :  { %2846 = vrot.lane.b32.xlu1 %v5206_v46, %s5488_s17  ;;  %v6588_v46 = vmul.bf16 %v6292_v36, %v4192_v14  ;;  %v6659_v15 = vmul.bf16 %v6405_v60, %v7509_v45 }
 0x2a9   :  { %v5242_v56 = vcombine.low %v6642_v3, %v6626_v29 }
 0x2aa   :  { %v5313_v16 = vcombine.high %v6567_v26, %v6588_v46 }
 0x2ab   :  { %3087 = vrot.lane.b32.xlu0 %v5223_v17, %s5489_s26  ;;  %v6613_v17 = vmul.bf16 %v6292_v36, %v4449_v11  ;;  %v5227_v36 = vcombine.low %v3027_v7, %v3030_v27  ;;  %v6655_v11 = vmul.bf16 %v6369_v61, %v7509_v45  ;;  %v6675_v45 = vmul.bf16 %v6405_v60, %v7486_v63 }
 0x2ac   :  { %3091 = vrot.lane.b32.xlu1 %v5225_v34, %s5489_s26  ;;  %v6632_v34 = vmul.bf16 %v6363_v47, %v4192_v14  ;;  %v6671_v47 = vmul.bf16 %v6369_v61, %v7486_v63  ;;  %v6683_v27 = vmul.bf16 %v6369_v61, %v4451_v53  ;;  %v3272_v7 = vmul.bf16 %v6459_v4, %v6426_v21  ;;  %v2470_v63 = vld [vmem:[#allocation3 + $0x30] sm:$0xff] }
 0x2ad   :  { %v7518_v21 = vmax.f32 %v6337_v20, 0.0  ;;  %v2609_v20 = vmul.bf16 %v6332_v58, %v2470_v63 }
 0x2ae   :  { %v5244_v52 = vcombine.low %v3272_v7, %v3275_v43  ;;  %v7514_v7 = vcombine.high %v6469_v57, %v6476_v44  ;;  %v7516_v43 = vmax.f32 %v6312_v9, 0.0 }
 0x2af   :  { %3334 = vrot.lane.b32.xlu0 %v5241_v48, %s5487_s16  ;;  %v5240_v48 = vcombine.low %v3270_v13, %v3273_v24  ;;  %v6680_v13 = vmul.bf16 %v6299_v51, %v4451_v53  ;;  %v6695_v24 = vmul.bf16 %v6405_v60, %v4194_v50  ;;  %v7515_v51 = vmax.f32 %v6287_v38, 0.0 }
 0x2b0   :  { %3095 = vrot.lane.b32.xlu1 %v5227_v36, %s5489_s26  ;;  %v6689_v36 = vmul.bf16 %v6369_v61, %v4194_v50  ;;  %v2473_v61 = vld [vmem:[#allocation3 + $0x48] sm:$0xff]  ;;  %v7522_v38 = vmax.f32 %v6372_v35, 0.0  ;;  %v5192_v35 = vcombine.high %v6419_v1, %v6423_v10  ;;  %v5226_v1 = vcombine.high %v6573_v49, %v6555_v12  ;;  %v7529_v12 = vld [vmem:[#allocation26_spill] sm:$0xff] }
 0x2b3   :  { %3332 = vrot.lane.b32.xlu0 %v5240_v48, %s5487_s16  ;;  %v6731_v48 = vpack.c.bf16 %v7516_v43, %v7515_v51  ;;  %v2612_v51 = vmul.bf16 %v6332_v58, %v2473_v61  ;;  %v7527_v43 = vld [vmem:[#allocation34_spill] sm:$0xff] }
 0x2b4   :  { %3336 = vrot.lane.b32.xlu1 %v5242_v56, %s5487_s16  ;;  %v6706_v56 = vmul.bf16 %v6405_v60, %v4451_v53  ;;  %v7519_v60 = vmax.f32 %v6326_v30, 0.0  ;;  %v7520_v53 = vmax.f32 %v6353_v31, 0.0  ;;  %v7524_v30 = vcombine.low %v6484_v28, %v6488_v32 }
 0x2b5   :  { %v5195_v31 = vcombine.high %v2609_v20, %v2612_v51 }
 0x2b6   :  { %v6743_v14 = vpack.c.bf16 %v7520_v53, %v7519_v60  ;;  %v5205_v60 = vcombine.high %v7527_v43, %v6480_v0  ;;  %v5243_v0 = vcombine.high %v6642_v3, %v6626_v29  ;;  %v3276_v29 = vmul.bf16 %v6521_v25, %v2470_v63 }
 0x2b7   :  { %3760 = vrot.lane.b32.xlu0 %v7514_v7, %s5485_s24  ;;  %v7517_v7 = vmax.f32 %v6295_v42, 0.0  ;;  %v7523_v42 = vcombine.low %v6469_v57, %v6476_v44  ;;  %v5194_v57 = vcombine.low %v2609_v20, %v2612_v51  ;;  %v7526_v44 = vld [vmem:[#allocation29_spill] sm:$0xff] }
 0x2b8   :  { %3340 = vrot.lane.b32.xlu1 %v5244_v52, %s5487_s16  ;;  %v7521_v52 = vmax.f32 %v6340_v8, 0.0  ;;  %v7525_v8 = vcombine.high %v6473_v18, %v6463_v41  ;;  %v2545_v58 = vmul.bf16 %v7526_v44, %v2470_v63 }
 0x2b9   :  { %v6737_v50 = vpack.c.bf16 %v7518_v21, %v7517_v7  ;;  %v2548_v21 = vmul.bf16 %v7526_v44, %v2473_v61  ;;  %v7528_v7 = vld [vmem:[#allocation8_spill] sm:$0xff]  ;;  %v2475_v44 = vld [vmem:[#allocation3 + $0x58] sm:$0xf] }
 0x2ba   :  { %v6749_v9 = vpack.c.bf16 %v7522_v38, %v7521_v52  ;;  %v3034_v52 = vmul.bf16 %v7528_v7, %v2473_v61  ;;  %v3031_v38 = vmul.bf16 %v7528_v7, %v2470_v63  ;;  %v7533_v63 = vld [vmem:[#allocation31_spill] sm:$0xff]  ;;  %v7535_v7 = vcombine.low %v6543_v19, %v6546_v2 }
 0x2bb   :  { %3758 = vrot.lane.b32.xlu0 %v7523_v42, %s5485_s24  ;;  %v5208_v53 = vcombine.high %v2545_v58, %v2548_v21  ;;  %v5207_v10 = vcombine.low %v2545_v58, %v2548_v21  ;;  %v2474_v42 = vld [vmem:[#allocation3 + $0x50] sm:$0xff]  ;;  %v2472_v21 = vld [vmem:[#allocation3 + $0x40] sm:$0xf] }
 0x2bc   :  { %3762 = vrot.lane.b32.xlu1 %v7524_v30, %s5485_s24  ;;  %v5229_v51 = vcombine.high %v3031_v38, %v3034_v52  ;;  %v2471_v30 = vld [vmem:[#allocation3 + $0x38] sm:$0xff]  ;;  %v2613_v49 = vmul.bf16 %v7529_v12, %v2474_v42  ;;  %v5228_v20 = vcombine.low %v3031_v38, %v3034_v52  ;;  %v7536_v52 = vld [vmem:[#allocation28_spill] sm:$0xff] }
 0x2bd   :  { %v2550_v38 = vmul.bf16 %v7536_v52, %v2475_v44 }
 0x2bf   :  { %4017 = vrot.lane.b32.xlu0 %v7525_v8, %s5484_s23  ;;  %v7530_v8 = vcombine.high %v6484_v28, %v6488_v32  ;;  %v7532_v28 = vcombine.high %v6309_v37, %v6540_v54 }
 0x2c0   :  { %2677 = vrot.lane.b32.xlu1 %v5195_v31, %s5486_s11  ;;  %v3279_v31 = vmul.bf16 %v6521_v25, %v2473_v61  ;;  %v7531_v61 = vld [vmem:[#allocation27_spill] sm:$0xff] }
 0x2c1   :  { %v2614_v58 = vmul.bf16 %v7531_v61, %v2475_v44  ;;  %v2611_v32 = vmul.bf16 %v7531_v61, %v2472_v21 }
 0x2c2   :  { %v5245_v43 = vcombine.low %v3276_v29, %v3279_v31 }
 0x2c3   :  { %2671 = vrot.lane.b32.xlu0 %v5192_v35, %s5486_s11  ;;  %v2610_v35 = vmul.bf16 %v7529_v12, %v2471_v30  ;;  %v5198_v25 = vcombine.low %v2611_v32, %v2614_v58  ;;  %v7538_v12 = vcombine.high %v6579_v22, %v6583_v40  ;;  %v3280_v58 = vmul.bf16 %v6550_v23, %v2474_v42  ;;  %v7544_v32 = vld [vmem:[#allocation19_spill] sm:$0xff] }
 0x2c4   :  { %2675 = vrot.lane.b32.xlu1 %v5194_v57, %s5486_s11  ;;  %v5246_v57 = vcombine.high %v3276_v29, %v3279_v31  ;;  %v7539_v31 = vld [vmem:[#allocation35_spill] sm:$0xff] }
 0x2c5   :  { %v5196_v3 = vcombine.low %v2610_v35, %v2613_v49 }
 0x2c7   :  { %2844 = vrot.lane.b32.xlu0 %v5205_v60, %s5488_s17  ;;  %v2549_v60 = vmul.bf16 %v7533_v63, %v2474_v42 }
 0x2c8   :  { %2850 = vrot.lane.b32.xlu1 %v5208_v53, %s5488_s17  ;;  %v2546_v53 = vmul.bf16 %v7533_v63, %v2471_v30  ;;  %v7545_v63 = vld [vmem:[#allocation25_spill] sm:$0xff] }
 0x2cb   :  { %3093 = vrot.lane.b32.xlu0 %v5226_v1, %s5489_s26  ;;  %v7534_v1 = vcombine.high %v6543_v19, %v6546_v2  ;;  %v3032_v19 = vmul.bf16 %v7539_v31, %v2471_v30  ;;  %v7540_v2 = vcombine.low %v6579_v22, %v6583_v40  ;;  %v7542_v22 = vcombine.low %v6309_v37, %v6540_v54 }
 0x2cc   :  { %2848 = vrot.lane.b32.xlu1 %v5207_v10, %s5488_s17  ;;  %v5209_v10 = vcombine.low %v2546_v53, %v2549_v60 }
 0x2cf   :  { %3338 = vrot.lane.b32.xlu0 %v5243_v0, %s5487_s16  ;;  %v7537_v0 = vcombine.low %v6473_v18, %v6463_v41  ;;  %v7541_v18 = vld [vmem:[#allocation30_spill] sm:$0xff] }
 0x2d0   :  { %3099 = vrot.lane.b32.xlu1 %v5229_v51, %s5489_s26  ;;  %v2547_v51 = vmul.bf16 %v7536_v52, %v2472_v21  ;;  %v3036_v29 = vmul.bf16 %v7541_v18, %v2475_v44 }
 0x2d3   :  { %3764 = vrot.lane.b32.xlu0 %v7530_v8, %s5485_s24  ;;  %v3035_v8 = vmul.bf16 %v7539_v31, %v2474_v42  ;;  %v3278_v42 = vmul.bf16 %v6459_v4, %v2472_v21 }
 0x2d4   :  { %3097 = vrot.lane.b32.xlu1 %v5228_v20, %s5489_s26  ;;  %v5211_v20 = vcombine.low %v2547_v51, %v2550_v38  ;;  %v6877_v51 = vpop.permute.xlu1 %3766 }
 0x2d5   :  { %v5230_v41 = vcombine.low %v3032_v19, %v3035_v8  ;;  %v5231_v52 = vcombine.high %v3032_v19, %v3035_v8 }
 0x2d7   :  { %2679 = vrot.lane.b32.xlu0 %v5196_v3, %s5486_s11  ;;  %v5197_v3 = vcombine.high %v2610_v35, %v2613_v49  ;;  %v3281_v49 = vmul.bf16 %v6459_v4, %v2475_v44  ;;  %v5210_v35 = vcombine.high %v2546_v53, %v2549_v60  ;;  %v6858_v53 = vpop.permute.xlu0 %3776 }
 0x2d8   :  { %3344 = vrot.lane.b32.xlu1 %v5246_v57, %s5487_s16  ;;  %v3033_v57 = vmul.bf16 %v7541_v18, %v2472_v21  ;;  %v7549_v21 = vcombine.high %v6619_v62, %v6632_v34  ;;  %v5470_v18 = vld [vmem:[#allocation3 + $0x2c] sm:$0xf] }
 0x2d9   :  { %v5249_v54 = vcombine.low %v3278_v42, %v3281_v49  ;;  %v7559_v42 = vcombine.high %v6622_v55, %v6637_v59 }
 0x2da   :  { %v5232_v61 = vcombine.low %v3033_v57, %v3036_v29  ;;  %v5471_v57 = vld [vmem:[#allocation3 + $0x44] sm:$0xf] }
 0x2db   :  { %4021 = vrot.lane.b32.xlu0 %v7532_v28, %s5484_s23  ;;  %v7543_v28 = vld [vmem:[#allocation24_spill] sm:$0xff]  ;;  %v6866_v4 = vpop.permute.xlu0 %4033 }
 0x2dc   :  { %3342 = vrot.lane.b32.xlu1 %v5245_v43, %s5487_s16  ;;  %v3277_v43 = vmul.bf16 %v6550_v23, %v2471_v30  ;;  %v7546_v23 = vld [vmem:[#allocation22_spill] sm:$0xff]  ;;  %v7547_v30 = vld [vmem:[#allocation32_spill] sm:$0xff] }
 0x2dd   :  { %v4203_v29 = vmul.bf16 %v5470_v18, %v7547_v30 }
 0x2de   :  { %v5247_v40 = vcombine.low %v3277_v43, %v3280_v58  ;;  %v5248_v38 = vcombine.high %v3277_v43, %v3280_v58  ;;  %v5472_v43 = vld [vmem:[#allocation3 + $0x5c] sm:$0xf] }
 0x2df   :  { %2683 = vrot.lane.b32.xlu0 %v5198_v25, %s5486_s11  ;;  %v3955_v25 = vmul.bf16 %v7544_v32, %v7543_v28 }
 0x2e0   :  { %3770 = vrot.lane.b32.xlu1 %v7534_v1, %s5485_s24  ;;  %v3958_v1 = vmul.bf16 %v7544_v32, %v7545_v63  ;;  %v7557_v32 = vcombine.high %v6655_v11, %v6659_v15 }
 0x2e2   :  { %v5299_v44 = vcombine.low %v3955_v25, %v3958_v1  ;;  %v7558_v1 = vcombine.low %v6689_v36, %v6695_v24 }
 0x2e3   :  { %2852 = vrot.lane.b32.xlu0 %v5209_v10, %s5488_s17  ;;  %v4206_v10 = vmul.bf16 %v7547_v30, %v7546_v23 }
 0x2e4   :  { %3768 = vrot.lane.b32.xlu1 %v7535_v7, %s5485_s24  ;;  %v7548_v7 = vld [vmem:[#allocation23_spill] sm:$0xff] }
 0x2e5   :  { %v4209_v37 = vmul.bf16 %v7547_v30, %v7548_v7  ;;  %v7561_v7 = vcombine.high %v6671_v47, %v6675_v45 }
 0x2e7   :  { %4015 = vrot.lane.b32.xlu0 %v7537_v0, %s5484_s23  ;;  %v5321_v60 = vcombine.low %v4206_v10, %v4209_v37  ;;  %v7550_v0 = vcombine.high %v6607_v5, %v6591_v39 }
 0x2e8   :  { %4027 = vrot.lane.b32.xlu1 %v7538_v12, %s5484_s23 }
 0x2eb   :  { %2856 = vrot.lane.b32.xlu0 %v5211_v20, %s5488_s17  ;;  %v7552_v20 = vcombine.low %v6619_v62, %v6632_v34  ;;  %v7554_v62 = vcombine.low %v6607_v5, %v6591_v39 }
 0x2ec   :  { %4025 = vrot.lane.b32.xlu1 %v7540_v2, %s5484_s23  ;;  %v5469_v2 = vld [vmem:[#allocation3 + $0x14] sm:$0xf] }
 0x2ef   :  { %3101 = vrot.lane.b32.xlu0 %v5230_v41, %s5489_s26  ;;  %v4200_v41 = vmul.bf16 %v5469_v2, %v7547_v30 }
 0x2f0   :  { %2681 = vrot.lane.b32.xlu1 %v5197_v3, %s5486_s11  ;;  %v7553_v3 = vcombine.low %v6567_v26, %v6588_v46  ;;  %v7556_v26 = vcombine.low %v6671_v47, %v6675_v45  ;;  %v7564_v47 = vcombine.high %v6680_v13, %v6629_v33 }
 0x2f1   :  { %v5316_v49 = vcombine.low %v4200_v41, %v4203_v29 }
 0x2f3   :  { %3105 = vrot.lane.b32.xlu0 %v5232_v61, %s5489_s26  ;;  %v7555_v61 = vld [vmem:[#allocation33_spill] sm:$0xff] }
 0x2f4   :  { %4019 = vrot.lane.b32.xlu1 %v7542_v22, %s5484_s23  ;;  %v4463_v58 = vmul.bf16 %v5471_v57, %v7555_v61  ;;  %v4466_v22 = vmul.bf16 %v5472_v43, %v7555_v61  ;;  %v4457_v29 = vmul.bf16 %v5469_v2, %v7555_v61  ;;  %v4984_v2 = vld [vmem:[%s7364_s7] sm:$0xff] }
 0x2f6   :  { %v5342_v5 = vcombine.low %v4463_v58, %v4466_v22 }
 0x2f7   :  { %3346 = vrot.lane.b32.xlu0 %v5247_v40, %s5487_s16 }
 0x2f8   :  { %2854 = vrot.lane.b32.xlu1 %v5210_v35, %s5488_s17 }
 0x2fb   :  { %3350 = vrot.lane.b32.xlu0 %v5249_v54, %s5487_s16 }
 0x2fc   :  { %4023 = vrot.lane.b32.xlu1 %v5299_v44, %s5484_s23  ;;  %v7562_v44 = vcombine.low %v6683_v27, %v6706_v56 }
 0x2ff   :  { %4278 = vrot.lane.b32.xlu0 %v5321_v60, %s5482_s21  ;;  %v7563_v60 = vcombine.low %v6622_v55, %v6637_v59  ;;  %v7565_v59 = vcombine.high %v6689_v36, %v6695_v24 }
 0x300   :  { %3103 = vrot.lane.b32.xlu1 %v5231_v52, %s5489_s26 }
 0x303   :  { %4262 = vrot.lane.b32.xlu0 %v5313_v16, %s5482_s21  ;;  %v7551_v16 = vcombine.low %v6655_v11, %v6659_v15  ;;  %v7560_v11 = vcombine.high %v6610_v6, %v6613_v17 }
 0x304   :  { %4272 = vrot.lane.b32.xlu1 %v7549_v21, %s5482_s21 }
 0x307   :  { %4266 = vrot.lane.b32.xlu0 %v7550_v0, %s5482_s21 }
 0x308   :  { %3348 = vrot.lane.b32.xlu1 %v5248_v38, %s5487_s16 }
 0x309   :  { %v6879_v12 = vpop.permute.xlu0 %2667 }
 0x30b   :  { %3772 = vrot.lane.b32.xlu0 %v7551_v16, %s5485_s24  ;;  %v7566_v16 = vcombine.low %v6610_v6, %v6613_v17  ;;  %v7568_v17 = vcombine.high %v6683_v27, %v6706_v56 }
 0x30c   :  { %4270 = vrot.lane.b32.xlu1 %v7552_v20, %s5482_s21  ;;  %v7567_v20 = vcombine.low %v6680_v13, %v6629_v33 }
 0x30d   :  { %v2666_v31 = vpop.permute.xlu0 %2665 }
 0x30e   :  { %v6891_v8 = vsel %vm260_vm4, %v2666_v31, %v6879_v12  ;;  %v6893_v19 = vpop.permute.xlu1 %2669  ;;  %v4985_v31 = vld [vmem:[%s7364_s7 + $0x8] sm:$0xff] }
 0x30f   :  { %4260 = vrot.lane.b32.xlu0 %v7553_v3, %s5482_s21  ;;  %v4460_v3 = vmul.bf16 %v5470_v18, %v7555_v61 }
 0x310   :  { %4264 = vrot.lane.b32.xlu1 %v7554_v62, %s5482_s21 }
 0x311   :  { %v2841_v34 = vpop.permute.xlu0 %2840  ;;  %v5337_v62 = vcombine.low %v4457_v29, %v4460_v3 }
 0x312   :  { %v6907_v40 = vpop.permute.xlu1 %2673 }
 0x313   :  { %4029 = vrot.lane.b32.xlu0 %v7556_v26, %s5484_s23 }
 0x314   :  { %4268 = vrot.lane.b32.xlu1 %v5316_v49, %s5482_s21 }
 0x315   :  { %v2839_v46 = vpop.permute.xlu0 %2838 }
 0x316   :  { %v6915_v39 = vsel %vm437_vm8, %v2839_v46, %v2841_v34  ;;  %v6917_v35 = vpop.permute.xlu1 %2842 }
 0x317   :  { %4535 = vrot.lane.b32.xlu0 %v5342_v5, %s5483_s22  ;;  %v6922_v28 = vsel %vm437_vm8, %v2841_v34, %v6917_v35 }
 0x318   :  { %3774 = vrot.lane.b32.xlu1 %v7557_v32, %s5485_s24 }
 0x319   :  { %v3090_v25 = vpop.permute.xlu0 %3089 }
 0x31a   :  { %v6928_v63 = vpop.permute.xlu1 %2846 }
 0x31b   :  { %4274 = vrot.lane.b32.xlu0 %v7558_v1, %s5482_s21 }
 0x31c   :  { %4529 = vrot.lane.b32.xlu1 %v7559_v42, %s5483_s22  ;;  %v2686_v42 = vsel %vm260_vm4, %v6879_v12, %v6893_v19 }
 0x31d   :  { %v3088_v23 = vpop.permute.xlu0 %3087 }
 0x31e   :  { %v6939_v30 = vsel %vm689_vm9, %v3088_v23, %v3090_v25  ;;  %v6941_v10 = vpop.permute.xlu1 %3091 }
 0x31f   :  { %4519 = vrot.lane.b32.xlu0 %v7560_v11, %s5483_s22  ;;  %v6949_v15 = vsel %vm689_vm9, %v3090_v25, %v6941_v10 }
 0x320   :  { %4031 = vrot.lane.b32.xlu1 %v7561_v7, %s5484_s23 }
 0x321   :  { %v3335_v37 = vpop.permute.xlu0 %3334 }
 0x322   :  { %v6955_v54 = vpop.permute.xlu1 %3095 }
 0x323   :  { %4531 = vrot.lane.b32.xlu0 %v7562_v44, %s5483_s22  ;;  %v7569_v44 = vmov 0  }
 0x324   :  { %4527 = vrot.lane.b32.xlu1 %v7563_v60, %s5483_s22 }
 0x325   :  { %v3333_v52 = vpop.permute.xlu0 %3332 }
 0x326   :  { %v6966_v21 = vsel %vm961_vm7, %v3333_v52, %v3335_v37  ;;  %v6968_v38 = vpop.permute.xlu1 %3336 }
 0x327   :  { %4523 = vrot.lane.b32.xlu0 %v7564_v47, %s5483_s22  ;;  %v6976_v45 = vsel %vm961_vm7, %v3335_v37, %v6968_v38 }
 0x328   :  { %4276 = vrot.lane.b32.xlu1 %v7565_v59, %s5482_s21 }
 0x329   :  { %v3761_v55 = vpop.permute.xlu0 %3760 }
 0x32a   :  { %v6982_v0 = vpop.permute.xlu1 %3340 }
 0x32b   :  { %4517 = vrot.lane.b32.xlu0 %v7566_v16, %s5483_s22 }
 0x32c   :  { %4521 = vrot.lane.b32.xlu1 %v7567_v20, %s5483_s22 }
 0x32d   :  { %v3759_v41 = vpop.permute.xlu0 %3758 }
 0x32e   :  { %v6996_v36 = vsel %vm904_vm3, %v3759_v41, %v3761_v55  ;;  %v3763_v24 = vpop.permute.xlu1 %3762 }
 0x32f   :  { %4993 = vperm.xlu0 %5384, %v4985_v31   ;;  %v7001_v6 = vsel %vm904_vm3, %v3761_v55, %v3763_v24  ;;  %v5455_v55 = vld [vmem:[%s7363_s4] sm:$0xff]  }
 0x330   :  { %4533 = vrot.lane.b32.xlu1 %v7568_v17, %s5483_s22 }
 0x331   :  { %v7007_v33 = vpop.permute.xlu0 %4017 }
 0x332   :  { %v2678_v13 = vpop.permute.xlu1 %2677 }
 0x334   :  { %4525 = vrot.lane.b32.xlu1 %v5337_v62, %s5483_s22  ;;  %v5456_v62 = vld [vmem:[%s7363_s4 + $0x10] sm:$0xff]  }
 0x335   :  { %v7010_v34 = vpop.permute.xlu0 %2671 }
 0x336   :  { %v2676_v18 = vpop.permute.xlu1 %2675  ;;  %v2688_v17 = vsel %vm260_vm4, %v7010_v34, %v6907_v40 }
 0x337   :  { %v2689_v1 = vsel %vm260_vm4, %v2676_v18, %v2678_v13 }
 0x338   :  { %4988 = vperm.xlu1 %5385, %v4984_v2   ;;  %v2687_v2 = vsel %vm260_vm4, %v6893_v19, %v7010_v34 }
 0x339   :  { %v7015_v57 = vpop.permute.xlu0 %2844 }
 0x33a   :  { %v2851_v61 = vpop.permute.xlu1 %2850 }
 0x33d   :  { %v7017_v58 = vpop.permute.xlu0 %3093 }
 0x33e   :  { %v2849_v27 = vpop.permute.xlu1 %2848 }
 0x33f   :  { %v2862_v47 = vsel %vm437_vm8, %v2849_v27, %v2851_v61 }
 0x341   :  { %v7019_v56 = vpop.permute.xlu0 %3338 }
 0x342   :  { %v3100_v43 = vpop.permute.xlu1 %3099 }
 0x345   :  { %v3765_v22 = vpop.permute.xlu0 %3764 }
 0x346   :  { %v7022_v49 = vsel %vm904_vm3, %v3763_v24, %v3765_v22  ;;  %v3098_v26 = vpop.permute.xlu1 %3097  ;;  %v7026_v46 = vsel %vm904_vm3, %v3765_v22, %v6877_v51  ;;  %v5454_v51 = vld [vmem:[%s7363_s4 + $0x8] sm:$0xff]   ;;  %v2860_v22 = vsel %vm437_vm8, %v6917_v35, %v7015_v57 }
 0x349   :  { %v2680_v5 = vpop.permute.xlu0 %2679 }
 0x34a   :  { %v3345_v32 = vpop.permute.xlu1 %3344  ;;  %v2690_v25 = vsel %vm260_vm4, %v2678_v13, %v2680_v5 }
 0x34b   :  { %2717 = vmatprep.subr.bf16.mxu0 %v2690_v25  ;;  %v3109_v25 = vsel %vm689_vm9, %v6941_v10, %v7017_v58 }
 0x34c   :  { %2718 = vmatpush1.bf16.msra.mxu0 %v2689_v1  ;;  %v5458_v1 = vld [vmem:[#allocation3 + $0x4] ss:$24 sps:$4 sm:$0xff]  }
 0x34d   :  { %v7033_v23 = vpop.permute.xlu0 %4021  ;;  %2719 = vmatprep.subr.bf16.mxu0 %v2686_v42 }
 0x34e   :  { %v3343_v11 = vpop.permute.xlu1 %3342 }
 0x350   :  { %2720 = vmatpush1.bf16.msra.mxu0 %v6891_v8 }
 0x351   :  { %v2684_v7 = vpop.permute.xlu0 %2683 }
 0x352   :  { %v7039_v37 = vpop.permute.xlu1 %3770 }
 0x353   :  { %5199 = vmatmul.mubr.msk.bf16.vlgmr.msra.gmra.mxu0 %vm2701_vm11, %v5454_v51 }
 0x354   :  { %2909 = vmatprep.mubr.bf16.mxu0 %v7569_v44 }
 0x355   :  { %v2853_v60 = vpop.permute.xlu0 %2852 }
 0x356   :  { %v7043_v12 = vpop.permute.xlu1 %3768  ;;  %v2863_v52 = vsel %vm437_vm8, %v2851_v61, %v2853_v60 }
 0x357   :  { %2889 = vmatprep.subr.bf16.mxu0 %v2863_v52  ;;  %v3782_v52 = vsel %vm904_vm3, %v7043_v12, %v7039_v37  ;;  %v5464_v12 = vld [vmem:[#allocation3 + $0x10] ss:$24 sps:$4 sm:$0xff]  }
 0x358   :  { %2890 = vmatpush1.bf16.msra.mxu0 %v2862_v47  ;;  %v3354_v47 = vsel %vm961_vm7, %v6968_v38, %v7019_v56 }
 0x359   :  { %v7047_v59 = vpop.permute.xlu0 %4015  ;;  %2891 = vmatprep.subr.bf16.mxu0 %v6922_v28  ;;  %v3111_v28 = vsel %vm689_vm9, %v3098_v26, %v3100_v43 }
 0x35a   :  { %v7050_v8 = vpop.permute.xlu1 %4027 }
 0x35c   :  { %2892 = vmatpush1.bf16.msra.mxu0 %v6915_v39 }
 0x35d   :  { %v2857_v16 = vpop.permute.xlu0 %2856 }
 0x35e   :  { %v7056_v20 = vpop.permute.xlu1 %4025 }
 0x35f   :  { %5212 = vmatmul.mubr.msk.bf16.vlgmr.msra.gmra.mxu0 %vm2701_vm11, %v5455_v55 }
 0x360   :  { %3158 = vmatprep.mubr.bf16.mxu0 %v7569_v44 }
 0x361   :  { %v3102_v31 = vpop.permute.xlu0 %3101 }
 0x362   :  { %v2682_v41 = vpop.permute.xlu1 %2681  ;;  %v3112_v24 = vsel %vm689_vm9, %v3100_v43, %v3102_v31  ;;  %v3356_v43 = vsel %vm961_vm7, %v3343_v11, %v3345_v32 }
 0x363   :  { %v2691_v29 = vsel %vm260_vm4, %v2680_v5, %v2682_v41  ;;  %v2692_v3 = vsel %vm260_vm4, %v2682_v41, %v2684_v7  ;;  %3138 = vmatprep.subr.bf16.mxu0 %v3112_v24  ;;  %v5466_v24 = vld [vmem:[%s7363_s4 + $0x30] sm:$0xff]  }
 0x364   :  { %2760 = vmatprep.subr.bf16.mxu1 %v2692_v3  ;;  %3139 = vmatpush1.bf16.msra.mxu0 %v3111_v28 }
 0x365   :  { %2761 = vmatpush1.bf16.msra.mxu1 %v2691_v29  ;;  %v3106_v39 = vpop.permute.xlu0 %3105  ;;  %3140 = vmatprep.subr.bf16.mxu0 %v6949_v15 }
 0x366   :  { %2762 = vmatprep.subr.bf16.mxu1 %v2688_v17  ;;  %v7068_v13 = vpop.permute.xlu1 %4019 }
 0x368   :  { %3141 = vmatpush1.bf16.msra.mxu0 %v6939_v30  ;;  %v2861_v30 = vsel %vm437_vm8, %v7015_v57, %v6928_v63  ;;  %v5457_v63 = vld [vmem:[%s7363_s4 + $0x18] sm:$0xff]   ;;  %v5460_v57 = vld [vmem:[#allocation3 + $0x8] ss:$24 sps:$4 sm:$0xff]  }
 0x369   :  { %2763 = vmatpush1.bf16.msra.mxu1 %v2687_v2  ;;  %v3347_v18 = vpop.permute.xlu0 %3346 }
 0x36a   :  { %v2855_v61 = vpop.permute.xlu1 %2854  ;;  %v3357_v40 = vsel %vm961_vm7, %v3345_v32, %v3347_v18 }
 0x36b   :  { %v2864_v15 = vsel %vm437_vm8, %v2853_v60, %v2855_v61  ;;  %v2865_v27 = vsel %vm437_vm8, %v2855_v61, %v2857_v16  ;;  %5233 = vmatmul.mubr.msk.bf16.vlgmr.msra.gmra.mxu0 %vm2701_vm11, %v5456_v62  ;;  %3383 = vmatprep.subr.bf16.mxu0 %v3357_v40  ;;  %v5462_v16 = vld [vmem:[#allocation3 + $0xc] ss:$24 sps:$4 sm:$0xff]  }
 0x36c   :  { %5200 = vmatmul.mubr.msk.bf16.vlgmr.msra.gmra.mxu1 %vm2701_vm11, %v5454_v51  ;;  %2932 = vmatprep.subr.bf16.mxu1 %v2865_v27 }
 0x36d   :  { %2933 = vmatpush1.bf16.msra.mxu1 %v2864_v15  ;;  %3384 = vmatpush1.bf16.msra.mxu0 %v3356_v43  ;;  %v3351_v19 = vpop.permute.xlu0 %3350  ;;  %v4037_v15 = vsel %vm632_vm2, %v7068_v13, %v7033_v23 }
 0x36e   :  { %2934 = vmatprep.subr.bf16.mxu1 %v2861_v30  ;;  %3385 = vmatprep.subr.bf16.mxu0 %v6976_v45  ;;  %v7087_v34 = vpop.permute.xlu1 %4023 }
 0x36f   :  { %2952 = vmatprep.mubr.bf16.mxu1 %v7569_v44  ;;  %3403 = vmatprep.mubr.bf16.mxu0 %v7569_v44 }
 0x371   :  { %2935 = vmatpush1.bf16.msra.mxu1 %v2860_v22  ;;  %3386 = vmatpush1.bf16.msra.mxu0 %v6966_v21  ;;  %v7095_v26 = vpop.permute.xlu0 %4278  ;;  %v3110_v21 = vsel %vm689_vm9, %v7017_v58, %v6955_v54  ;;  %v3355_v58 = vsel %vm961_vm7, %v7019_v56, %v6982_v0  ;;  %v4039_v56 = vsel %vm632_vm2, %v7056_v20, %v7050_v8 }
 0x372   :  { %3536 = vmatprep.subr.bf16.mxu0 %v6737_v50  ;;  %v3104_v45 = vpop.permute.xlu1 %3103  ;;  %v4035_v20 = vsel %vm632_vm2, %v7047_v59, %v7007_v33 }
 0x373   :  { %v3113_v5 = vsel %vm689_vm9, %v3102_v31, %v3104_v45  ;;  %v3114_v32 = vsel %vm689_vm9, %v3104_v45, %v3106_v39  ;;  %v5468_v45 = vld [vmem:[%s7363_s4 + $0x40] sm:$0xff]  }
 0x374   :  { %5213 = vmatmul.mubr.msk.bf16.vlgmr.msra.gmra.mxu1 %vm2701_vm11, %v5455_v55  ;;  %3181 = vmatprep.subr.bf16.mxu1 %v3114_v32  ;;  %v7570_v32 = vld [vmem:[#allocation4_spill] sm:$0xff] }
 0x375   :  { %5250 = vmatmul.mubr.msk.bf16.vlgmr.msra.gmra.mxu0 %vm2701_vm11, %v5457_v63  ;;  %3182 = vmatpush1.bf16.msra.mxu1 %v3113_v5  ;;  %v7105_v35 = vpop.permute.xlu0 %4262 }
 0x376   :  { %3537 = vmatpush1.bf16.msra.mxu0 %v6731_v48  ;;  %3183 = vmatprep.subr.bf16.mxu1 %v3110_v21  ;;  %v7111_v50 = vpop.permute.xlu1 %4272  ;;  %v5461_v48 = vld [vmem:[%s7363_s4 + $0x20] sm:$0xff]  }
 0x377   :  { %3538 = vmatprep.subr.bf16.mxu0 %v5460_v57  ;;  %3201 = vmatprep.mubr.bf16.mxu1 %v7569_v44 }
 0x378   :  { %3556 = vmatprep.mubr.bf16.mxu0 %v7569_v44 }
 0x379   :  { %3184 = vmatpush1.bf16.msra.mxu1 %v3109_v25  ;;  %v7118_v42 = vpop.permute.xlu0 %4266 }
 0x37a   :  { %3539 = vmatpush1.bf16.msra.mxu0 %v5458_v1  ;;  %v3349_v54 = vpop.permute.xlu1 %3348 }
 0x37b   :  { %v3358_v11 = vsel %vm961_vm7, %v3347_v18, %v3349_v54  ;;  %v3359_v51 = vsel %vm961_vm7, %v3349_v54, %v3351_v19  ;;  %v4038_v18 = vsel %vm632_vm2, %v7033_v23, %v7087_v34  ;;  %v4652_v54 = vld [vmem:[%s7365_s6] sm:$0xff] }
 0x37c   :  { %5234 = vmatmul.mubr.msk.bf16.vlgmr.msra.gmra.mxu1 %vm2701_vm11, %v5456_v62  ;;  %3426 = vmatprep.subr.bf16.mxu1 %v3359_v51 }
 0x37d   :  { %5263 = vmatmul.mubr.msk.bf16.vlgmr.msra.gmra.mxu0 %vm2701_vm11, %v5461_v48  ;;  %3427 = vmatpush1.bf16.msra.mxu1 %v3358_v11  ;;  %v3773_v10 = vpop.permute.xlu0 %3772  ;;  %v4653_v11 = vld [vmem:[%s7365_s6 + $0x8] sm:$0xff] }
 0x37e   :  { %3428 = vmatprep.subr.bf16.mxu1 %v3355_v58  ;;  %v4271_v7 = vpop.permute.xlu1 %4270  ;;  %v3783_v60 = vsel %vm904_vm3, %v7039_v37, %v3773_v10  ;;  %3446 = vmatprep.mubr.bf16.mxu1 %v7569_v44  ;;  %v5465_v37 = vld [vmem:[%s7363_s4 + $0x28] sm:$0xff]  }
 0x37f   :  { %3809 = vmatprep.subr.bf16.mxu0 %v3783_v60  ;;  %3829 = vmatprep.mubr.bf16.mxu0 %v7569_v44 }
 0x380   :  { %3810 = vmatpush1.bf16.msra.mxu0 %v3782_v52 }
 0x381   :  { %3429 = vmatpush1.bf16.msra.mxu1 %v3354_v47  ;;  %v4261_v0 = vpop.permute.xlu0 %4260  ;;  %3811 = vmatprep.subr.bf16.mxu0 %v7001_v6 }
 0x382   :  { %3579 = vmatprep.subr.bf16.mxu1 %v6749_v9  ;;  %v7142_v55 = vpop.permute.xlu1 %4264  ;;  %v4280_v62 = vsel %vm203_vm0, %v4261_v0, %v7105_v35 }
 0x384   :  { %5251 = vmatmul.mubr.msk.bf16.vlgmr.msra.gmra.mxu1 %vm2701_vm11, %v5457_v63  ;;  %3812 = vmatpush1.bf16.msra.mxu0 %v6996_v36 }
 0x385   :  { %3580 = vmatpush1.bf16.msra.mxu1 %v6743_v14  ;;  %v4030_v38 = vpop.permute.xlu0 %4029  ;;  %3599 = vmatprep.mubr.bf16.mxu1 %v7569_v44  ;;  %v4036_v14 = vsel %vm632_vm2, %v7007_v33, %v7068_v13  ;;  %v4284_v33 = vsel %vm203_vm0, %v4271_v7, %v7111_v50 }
 0x386   :  { %3581 = vmatprep.subr.bf16.mxu1 %v5464_v12  ;;  %v7151_v6 = vpop.permute.xlu1 %4268  ;;  %v4040_v9 = vsel %vm632_vm2, %v7050_v8, %v4030_v38 }
 0x387   :  { %5284 = vmatmul.mubr.msk.bf16.vlgmr.msra.gmra.mxu0 %vm2701_vm11, %v5465_v37  ;;  %4066 = vmatprep.subr.bf16.mxu0 %v4040_v9  ;;  %v4283_v23 = vsel %vm203_vm0, %v7118_v42, %v7151_v6 }
 0x388   :  { %4067 = vmatpush1.bf16.msra.mxu0 %v4039_v56  ;;  %4086 = vmatprep.mubr.bf16.mxu0 %v7569_v44 }
 0x389   :  { %3582 = vmatpush1.bf16.msra.mxu1 %v5462_v16  ;;  %v7163_v36 = vpop.permute.xlu0 %4535  ;;  %4068 = vmatprep.subr.bf16.mxu0 %v4036_v14 }
 0x38a   :  { %v3775_v31 = vpop.permute.xlu1 %3774 }
 0x38b   :  { %v3784_v41 = vsel %vm904_vm3, %v3773_v10, %v3775_v31  ;;  %v3785_v8 = vsel %vm904_vm3, %v3775_v31, %v6858_v53 }
 0x38c   :  { %5264 = vmatmul.mubr.msk.bf16.vlgmr.msra.gmra.mxu1 %vm2701_vm11, %v5461_v48  ;;  %3852 = vmatprep.subr.bf16.mxu1 %v3785_v8  ;;  %v7426_v48 = vmov 0.0  }
 0x38d   :  { %3853 = vmatpush1.bf16.msra.mxu1 %v3784_v41  ;;  %4069 = vmatpush1.bf16.msra.mxu0 %v4035_v20  ;;  %v4275_v28 = vpop.permute.xlu0 %4274 }
 0x38e   :  { %3854 = vmatprep.subr.bf16.mxu1 %v7026_v46  ;;  %v4530_v29 = vpop.permute.xlu1 %4529  ;;  %v4285_v53 = vsel %vm203_vm0, %v7111_v50, %v4275_v28  ;;  %3872 = vmatprep.mubr.bf16.mxu1 %v7569_v44  ;;  %v4281_v46 = vsel %vm203_vm0, %v7105_v35, %v7142_v55  ;;  %v5473_v50 = vld [vmem:[%s7360_s0] sm:$0xff] }
 0x38f   :  { %4311 = vmatprep.subr.bf16.mxu0 %v4285_v53 }
 0x390   :  { %5305 = vmatmul.mubr.msk.bf16.vlgmr.msra.gmra.mxu0 %vm2701_vm11, %v5466_v24 }
 0x391   :  { %3855 = vmatpush1.bf16.msra.mxu1 %v7022_v49  ;;  %4312 = vmatpush1.bf16.msra.mxu0 %v4284_v33  ;;  %v4520_v59 = vpop.permute.xlu0 %4519  ;;  %v5467_v49 = vld [vmem:[%s7363_s4 + $0x38] sm:$0xff]  }
 0x392   :  { %4313 = vmatprep.subr.bf16.mxu0 %v4281_v46  ;;  %v4032_v3 = vpop.permute.xlu1 %4031  ;;  %4331 = vmatprep.mubr.bf16.mxu0 %v7569_v44 }
 0x393   :  { %v4041_v39 = vsel %vm632_vm2, %v4030_v38, %v4032_v3  ;;  %v4042_v17 = vsel %vm632_vm2, %v4032_v3, %v6866_v4 }
 0x394   :  { %5285 = vmatmul.mubr.msk.bf16.vlgmr.msra.gmra.mxu1 %vm2701_vm11, %v5465_v37  ;;  %4109 = vmatprep.subr.bf16.mxu1 %v4042_v17 }
 0x395   :  { %4110 = vmatpush1.bf16.msra.mxu1 %v4041_v39  ;;  %4314 = vmatpush1.bf16.msra.mxu0 %v4280_v62  ;;  %v4532_v2 = vpop.permute.xlu0 %4531 }
 0x396   :  { %4111 = vmatprep.subr.bf16.mxu1 %v4038_v18  ;;  %v4528_v61 = vpop.permute.xlu1 %4527  ;;  %v4542_v4 = vsel %vm141_vm1, %v4530_v29, %v4532_v2  ;;  %4129 = vmatprep.mubr.bf16.mxu1 %v7569_v44 }
 0x397   :  { %v4541_v40 = vsel %vm141_vm1, %v4528_v61, %v4530_v29  ;;  %4568 = vmatprep.subr.bf16.mxu0 %v4542_v4 }
 0x398   :  { %5322 = vmatmul.mubr.msk.bf16.vlgmr.msra.gmra.mxu0 %vm2701_vm11, %v5467_v49 }
 0x399   :  { %4112 = vmatpush1.bf16.msra.mxu1 %v4037_v15  ;;  %4569 = vmatpush1.bf16.msra.mxu0 %v4541_v40  ;;  %v4524_v27 = vpop.permute.xlu0 %4523 }
 0x39a   :  { %v4277_v43 = vpop.permute.xlu1 %4276  ;;  %4588 = vmatprep.mubr.bf16.mxu0 %v7569_v44 }
 0x39b   :  { %v4286_v19 = vsel %vm203_vm0, %v4275_v28, %v4277_v43  ;;  %v4287_v30 = vsel %vm203_vm0, %v4277_v43, %v7095_v26  ;;  %v4282_v26 = vsel %vm203_vm0, %v7142_v55, %v7118_v42  ;;  %v7571_v42 = vld [vmem:[#allocation5_spill] sm:$0xff] }
 0x39c   :  { %5306 = vmatmul.mubr.msk.bf16.vlgmr.msra.gmra.mxu1 %vm2701_vm11, %v5466_v24  ;;  %4354 = vmatprep.subr.bf16.mxu1 %v4287_v30 }
 0x39d   :  { %4355 = vmatpush1.bf16.msra.mxu1 %v4286_v19  ;;  %v4518_v34 = vpop.permute.xlu0 %4517  ;;  %4374 = vmatprep.mubr.bf16.mxu1 %v7569_v44 }
 0x39e   :  { %v4537_v13 = vsel %vm141_vm1, %v4518_v34, %v4520_v59  ;;  %4356 = vmatprep.subr.bf16.mxu1 %v4283_v23  ;;  %v4522_v22 = vpop.permute.xlu1 %4521 }
 0x39f   :  { %v4538_v63 = vsel %vm141_vm1, %v4520_v59, %v4522_v22  ;;  %v4539_v1 = vsel %vm141_vm1, %v4522_v22, %v4524_v27 }
 0x3a0   :  { %4570 = vmatprep.subr.bf16.mxu0 %v4538_v63 }
 0x3a1   :  { %4357 = vmatpush1.bf16.msra.mxu1 %v4282_v26  ;;  %4571 = vmatpush1.bf16.msra.mxu0 %v4537_v13 }
 0x3a2   :  { %v4534_v5 = vpop.permute.xlu1 %4533  ;;  %5345 = vmatprep.subr.msk.mxu0 %vm2533_vm10, %v7570_v32 }
 0x3a3   :  { %v4543_v35 = vsel %vm141_vm1, %v4532_v2, %v4534_v5  ;;  %v4544_v21 = vsel %vm141_vm1, %v4534_v5, %v7163_v36 }
 0x3a4   :  { %5323 = vmatmul.mubr.msk.bf16.vlgmr.msra.gmra.mxu1 %vm2701_vm11, %v5467_v49  ;;  %5343 = vmatmul.mubr.msk.bf16.vlgmr.msra.gmra.mxu0 %vm2701_vm11, %v5468_v45 }
 0x3a5   :  { %4611 = vmatprep.subr.bf16.mxu1 %v4544_v21  ;;  %4631 = vmatprep.mubr.bf16.mxu1 %v7569_v44  ;;  %v5474_v44 = vld [vmem:[%s7360_s0 + $0x8] sm:$0xff] }
 0x3a6   :  { %4612 = vmatpush1.bf16.msra.mxu1 %v4543_v35  ;;  %v4526_v57 = vpop.permute.xlu1 %4525  ;;  %5346 = vmatpush1.msk.msra.mxu0 %vm2533_vm10, %v5473_v50 }
 0x3a7   :  { %v4540_v25 = vsel %vm141_vm1, %v4524_v27, %v4526_v57  ;;  %4733 = vmatprep.mubr.f32.mxu0 %v7426_v48 }
 0x3a8   :  { %4613 = vmatprep.subr.bf16.mxu1 %v4540_v25 }
 0x3aa   :  { %4614 = vmatpush1.bf16.msra.mxu1 %v4539_v1 }
 0x3ab   :  { %5349 = vmatprep.subr.msk.mxu1 %vm2533_vm10, %v7571_v42 }
 0x3ac   :  { %5347 = vmatmul.mubr.msk.f32.vlgmr.msra.gmra.mxu0 %vm265_vm6, %v4652_v54 }
 0x3ad   :  { %5344 = vmatmul.mubr.msk.bf16.vlgmr.msra.gmra.mxu1 %vm2701_vm11, %v5468_v45  ;;  %4739 = vmatprep.mubr.f32.mxu0 %v7426_v48 }
 0x3ae   :  { %5350 = vmatpush1.msk.msra.mxu1 %vm2533_vm10, %v5474_v44  ;;  %4810 = vmatprep.mubr.f32.mxu1 %v7426_v48 }
 0x3b0   :  { %5348 = vmatmul.mubr.msk.f32.gmra.mxu0 %vm265_vm6, %v4653_v11 }
 0x3b1   :  { %4894 = vmatprep.mubr.f32.mxu0 %v7426_v48 }
 0x3b5   :  { %5351 = vmatmul.mubr.msk.f32.vlgmr.msra.gmra.mxu1 %vm265_vm6, %v4652_v54 }
 0x3b6   :  { %4816 = vmatprep.mubr.f32.mxu1 %v7426_v48 }
 0x3b9   :  { %5352 = vmatmul.mubr.msk.f32.gmra.mxu1 %vm265_vm6, %v4653_v11 }
 0x3ba   :  { %4971 = vmatprep.mubr.f32.mxu1 %v7426_v48 }
 0x413   :  { %v2739_v51 = vpop.f32.mrf.mxu0 }
 0x415   :  { %v2741_v10 = vpop.f32.mrf.mxu0 }
 0x417   :  { %v2743_v58 = vpop.f32.mrf.mxu0 }
 0x419   :  { %v2745_v7 = vpop.f32.mrf.mxu0 }
 0x41f   :  { %v2911_v60 = vpop.f32.mrf.mxu0 }
 0x420   :  { %v2912_v25 = vadd.f32 %v2911_v60, %v2739_v51 }
 0x421   :  { %v2913_v52 = vpop.f32.mrf.mxu0 }
 0x422   :  { %v2914_v57 = vadd.f32 %v2913_v52, %v2741_v10 }
 0x423   :  { %v2915_v47 = vpop.f32.mrf.mxu0 }
 0x424   :  { %v2916_v1 = vadd.f32 %v2915_v47, %v2743_v58 }
 0x425   :  { %v2917_v0 = vpop.f32.mrf.mxu0 }
 0x426   :  { %v2918_v50 = vadd.f32 %v2917_v0, %v2745_v7 }
 0x42b   :  { %v3160_v55 = vpop.f32.mrf.mxu0 }
 0x42c   :  { %v7260_v37 = vpop.f32.mrf.mxu1 }
 0x42d   :  { %v3162_v12 = vpop.f32.mrf.mxu0 }
 0x42e   :  { %v7262_v38 = vpop.f32.mrf.mxu1 }
 0x42f   :  { %v3164_v6 = vpop.f32.mrf.mxu0 }
 0x430   :  { %v7264_v9 = vpop.f32.mrf.mxu1  ;;  %v3216_v11 = vadd.f32 %v3164_v6, %v2916_v1 }
 0x431   :  { %v3166_v56 = vpop.f32.mrf.mxu0 }
 0x432   :  { %v7266_v16 = vpop.f32.mrf.mxu1  ;;  %v3217_v54 = vadd.f32 %v3166_v56, %v2918_v50 }
 0x434   :  { %v7268_v14 = vpop.f32.mrf.mxu1 }
 0x435   :  { %v3405_v36 = vpop.f32.mrf.mxu0 }
 0x436   :  { %v7270_v31 = vpop.f32.mrf.mxu1 }
 0x437   :  { %v3407_v41 = vpop.f32.mrf.mxu0 }
 0x438   :  { %v7272_v8 = vpop.f32.mrf.mxu1 }
 0x439   :  { %v3409_v20 = vpop.f32.mrf.mxu0 }
 0x43a   :  { %v2960_v24 = vpop.f32.mrf.mxu1 }
 0x43b   :  { %v3411_v28 = vpop.f32.mrf.mxu0  ;;  %v2961_v52 = vadd.f32 %v2960_v24, %v7266_v16  ;;  %v2955_v16 = vadd.f32 %v7268_v14, %v7260_v37 }
 0x43c   :  { %v7274_v29 = vpop.f32.mrf.mxu1 }
 0x43d   :  { %v3558_v53 = vpop.f32.mrf.mxu0 }
 0x43e   :  { %v7276_v33 = vpop.f32.mrf.mxu1 }
 0x43f   :  { %v3560_v59 = vpop.f32.mrf.mxu0 }
 0x440   :  { %v7278_v46 = vpop.f32.mrf.mxu1 }
 0x441   :  { %v3562_v3 = vpop.f32.mrf.mxu0 }
 0x442   :  { %v3209_v39 = vpop.f32.mrf.mxu1 }
 0x443   :  { %v3564_v62 = vpop.f32.mrf.mxu0 }
 0x444   :  { %v7280_v17 = vpop.f32.mrf.mxu1 }
 0x445   :  { %7572 = vst [vmem:[#allocation41_spill] sm:$0xff] %v7280_v17 }
 0x446   :  { %v7282_v49 = vpop.f32.mrf.mxu1 }
 0x447   :  { %v3831_v2 = vpop.f32.mrf.mxu0 }
 0x448   :  { %v7284_v18 = vpop.f32.mrf.mxu1 }
 0x449   :  { %v3833_v61 = vpop.f32.mrf.mxu0 }
 0x44a   :  { %v3454_v4 = vpop.f32.mrf.mxu1 }
 0x44b   :  { %v3835_v40 = vpop.f32.mrf.mxu0 }
 0x44c   :  { %v7286_v15 = vpop.f32.mrf.mxu1 }
 0x44d   :  { %7573 = vst [vmem:[#allocation36_spill] sm:$0xff] %v7286_v15  ;;  %v3837_v27 = vpop.f32.mrf.mxu0  ;;  %v3461_v15 = vadd.f32 %v3409_v20, %v3216_v11 }
 0x44e   :  { %v7288_v43 = vpop.f32.mrf.mxu1 }
 0x44f   :  { %7574 = vst [vmem:[#allocation37_spill] sm:$0xff] %v7288_v43  ;;  %v3614_v10 = vadd.f32 %v3562_v3, %v3461_v15 }
 0x450   :  { %v7290_v19 = vpop.f32.mrf.mxu1  ;;  %v4088_v30 = vpop.f32.mrf.mxu0 }
 0x451   :  { %7575 = vst [vmem:[#allocation42_spill] sm:$0xff] %v7290_v19  ;;  %v3887_v0 = vadd.f32 %v3835_v40, %v3614_v10 }
 0x452   :  { %v7292_v34 = vpop.f32.mrf.mxu1  ;;  %v4090_v23 = vpop.f32.mrf.mxu0 }
 0x454   :  { %v7294_v13 = vpop.f32.mrf.mxu1  ;;  %v4092_v22 = vpop.f32.mrf.mxu0 }
 0x455   :  { %7576 = vst [vmem:[#allocation9_spill] sm:$0xff] %v7294_v13  ;;  %v3213_v13 = vadd.f32 %v3162_v12, %v2914_v57  ;;  %v4144_v3 = vadd.f32 %v4092_v22, %v3887_v0 }
 0x456   :  { %v7296_v63 = vpop.f32.mrf.mxu1  ;;  %v4094_v26 = vpop.f32.mrf.mxu0  ;;  %v7583_v22 = vld [vmem:[#allocation37_spill] sm:$0xff] }
 0x457   :  { %7577 = vst [vmem:[#allocation38_spill] sm:$0xff] %v7296_v63  ;;  %v3462_v63 = vadd.f32 %v3411_v28, %v3217_v54  ;;  %v3458_v19 = vadd.f32 %v3407_v41, %v3213_v13  ;;  %v3219_v41 = vadd.f32 %v3209_v39, %v2961_v52 }
 0x458   :  { %v7298_v45 = vpop.f32.mrf.mxu1  ;;  %v4333_v5 = vpop.f32.mrf.mxu0 }
 0x459   :  { %7578 = vst [vmem:[#allocation7_spill] sm:$0xff] %v7298_v45  ;;  %v3212_v45 = vadd.f32 %v3160_v55, %v2912_v25  ;;  %v3615_v17 = vadd.f32 %v3564_v62, %v3462_v63  ;;  %v3611_v58 = vadd.f32 %v3560_v59, %v3458_v19  ;;  %v2959_v55 = vadd.f32 %v7272_v8, %v7264_v9 }
 0x45a   :  { %v7300_v32 = vpop.f32.mrf.mxu1  ;;  %v4335_v35 = vpop.f32.mrf.mxu0  ;;  %v3464_v9 = vadd.f32 %v3454_v4, %v3219_v41 }
 0x45b   :  { %7579 = vst [vmem:[#allocation39_spill] sm:$0xff] %v7300_v32  ;;  %v3888_v60 = vadd.f32 %v3837_v27, %v3615_v17  ;;  %v3884_v56 = vadd.f32 %v3833_v61, %v3611_v58  ;;  %v3218_v24 = vadd.f32 %v7278_v46, %v2959_v55  ;;  %v7589_v58 = vmov 0.0  }
 0x45c   :  { %v7302_v21 = vpop.f32.mrf.mxu1  ;;  %v4337_v42 = vpop.f32.mrf.mxu0  ;;  %v3617_v37 = vadd.f32 %v7292_v34, %v3464_v9  ;;  %v7585_v34 = vld [vmem:[#allocation36_spill] sm:$0xff]  ;;  %v7588_v1 = vld [vmem:[#allocation9_spill] sm:$0xff] }
 0x45d   :  { %7580 = vst [vmem:[#allocation21_spill] sm:$0xff] %v7302_v21  ;;  %v3457_v21 = vadd.f32 %v3405_v36, %v3212_v45  ;;  %v4145_v20 = vadd.f32 %v4094_v26, %v3888_v60  ;;  %v2957_v36 = vadd.f32 %v7270_v31, %v7262_v38  ;;  %v4389_v61 = vadd.f32 %v4337_v42, %v4144_v3  ;;  %v4651_v60 = vld [vmem:[%s7366_s5 + $0x8] sm:$0xff] }
 0x45e   :  { %v7304_v44 = vpop.f32.mrf.mxu1  ;;  %v4339_v43 = vpop.f32.mrf.mxu0  ;;  %v3214_v38 = vadd.f32 %v7274_v29, %v2955_v16  ;;  %v3463_v31 = vadd.f32 %v7284_v18, %v3218_v24  ;;  %v7587_v57 = vld [vmem:[#allocation38_spill] sm:$0xff] }
 0x45f   :  { %v3610_v47 = vadd.f32 %v3558_v53, %v3457_v21  ;;  %v4141_v53 = vadd.f32 %v4090_v23, %v3884_v56  ;;  %v4390_v17 = vadd.f32 %v4339_v43, %v4145_v20  ;;  %v3215_v40 = vadd.f32 %v7276_v33, %v2957_v36  ;;  %v7581_v43 = vld [vmem:[#allocation41_spill] sm:$0xff]  ;;  %v7582_v33 = vld [vmem:[#allocation42_spill] sm:$0xff] }
 0x460   :  { %v7306_v48 = vpop.f32.mrf.mxu1  ;;  %v3459_v23 = vadd.f32 %v7581_v43, %v3214_v38  ;;  %v3616_v4 = vadd.f32 %v7582_v33, %v3463_v31 }
 0x461   :  { %v3883_v28 = vadd.f32 %v3831_v2, %v3610_v47  ;;  %v4386_v39 = vadd.f32 %v4335_v35, %v4141_v53  ;;  %v3460_v19 = vadd.f32 %v7282_v49, %v3215_v40  ;;  %v4650_v49 = vld [vmem:[%s7366_s5] sm:$0xff] }
 0x462   :  { %v4137_v32 = vpop.f32.mrf.mxu1  ;;  %v7584_v29 = vld [vmem:[#allocation39_spill] sm:$0xff]  ;;  %v3612_v45 = vadd.f32 %v7585_v34, %v3459_v23 }
 0x463   :  { %v4140_v8 = vadd.f32 %v4088_v30, %v3883_v28  ;;  %v3613_v63 = vadd.f32 %v7583_v22, %v3460_v19  ;;  %v3890_v26 = vadd.f32 %v7584_v29, %v3617_v37 }
 0x464   :  { %v7308_v7 = vpop.f32.mrf.mxu1  ;;  %v4590_v51 = vpop.f32.mrf.mxu0  ;;  %v3885_v42 = vadd.f32 %v7588_v1, %v3612_v45  ;;  %v7590_v52 = vld [vmem:[#allocation21_spill] sm:$0xff] }
 0x465   :  { %v4385_v14 = vadd.f32 %v4333_v5, %v4140_v8  ;;  %v7586_v5 = vld [vmem:[#allocation7_spill] sm:$0xff]  ;;  %v3886_v50 = vadd.f32 %v7587_v57, %v3613_v63  ;;  %v4147_v25 = vadd.f32 %v4137_v32, %v3890_v26 }
 0x466   :  { %v4378_v6 = vpop.f32.mrf.mxu1  ;;  %v4592_v12 = vpop.f32.mrf.mxu0  ;;  %v3889_v35 = vadd.f32 %v7586_v5, %v3616_v4  ;;  %v4142_v47 = vadd.f32 %v7590_v52, %v3885_v42 }
 0x467   :  { %v4643_v30 = vadd.f32 %v4592_v12, %v4386_v39  ;;  %v4642_v18 = vadd.f32 %v4590_v51, %v4385_v14  ;;  %v4143_v10 = vadd.f32 %v7304_v44, %v3886_v50  ;;  %v4994_v39 = vpop.permute.xlu0 %4993 }
 0x468   :  { %v4380_v62 = vpop.f32.mrf.mxu1  ;;  %v4594_v59 = vpop.f32.mrf.mxu0  ;;  %v4146_v54 = vadd.f32 %v7306_v48, %v3889_v35  ;;  %v4387_v48 = vadd.f32 %v7308_v7, %v4142_v47 }
 0x469   :  { %v4646_v46 = vadd.f32 %v4594_v59, %v4389_v61  ;;  %v4388_v12 = vadd.f32 %v4378_v6, %v4143_v10 }
 0x46a   :  { %v4382_v15 = vpop.f32.mrf.mxu1  ;;  %v4596_v27 = vpop.f32.mrf.mxu0  ;;  %v4391_v32 = vadd.f32 %v4380_v62, %v4146_v54 }
 0x46b   :  { %v4647_v2 = vadd.f32 %v4596_v27, %v4390_v17  ;;  %v4392_v51 = vadd.f32 %v4382_v15, %v4147_v25  ;;  %v4989_v17 = vpop.permute.xlu1 %4988 }
 0x46c   :  { %v4735_v36 = vpop.f32.mrf.mxu0 }
 0x46d   :  { %v4633_v13 = vpop.f32.mrf.mxu1  ;;  %4858 = vmatprep.subr.mxu0 %v4647_v2 }
 0x46e   :  { %4859 = vmatpush1.msra.mxu0 %v4646_v46  ;;  %v4644_v44 = vadd.f32 %v4633_v13, %v4387_v48  ;;  %v4737_v6 = vpop.f32.mrf.mxu0 }
 0x46f   :  { %v4635_v21 = vpop.f32.mrf.mxu1  ;;  %4860 = vmatprep.subr.mxu0 %v4643_v30 }
 0x470   :  { %4861 = vmatpush1.msra.mxu0 %v4642_v18  ;;  %v4645_v20 = vadd.f32 %v4635_v21, %v4388_v12  ;;  %v4741_v41 = vpop.f32.mrf.mxu0 }
 0x471   :  { %v4637_v11 = vpop.f32.mrf.mxu1  ;;  %5353 = vmatmul.mubr.msk.f32.vlgmr.msra.gmra.mxu0 %vm260_vm4, %v4650_v49 }
 0x472   :  { %4900 = vmatprep.mubr.f32.mxu0 %v7589_v58  ;;  %v4648_v56 = vadd.f32 %v4637_v11, %v4391_v32  ;;  %v4743_v7 = vpop.f32.mrf.mxu0 }
 0x473   :  { %v4639_v0 = vpop.f32.mrf.mxu1 }
 0x474   :  { %v4649_v55 = vadd.f32 %v4639_v0, %v4392_v51 }
 0x475   :  { %5354 = vmatmul.mubr.msk.f32.gmra.mxu0 %vm260_vm4, %v4651_v60  ;;  %v4812_v28 = vpop.f32.mrf.mxu1 }
 0x476   :  { %4935 = vmatprep.subr.mxu1 %v4649_v55 }
 0x477   :  { %4936 = vmatpush1.msra.mxu1 %v4648_v56  ;;  %v4814_v3 = vpop.f32.mrf.mxu1 }
 0x478   :  { %4937 = vmatprep.subr.mxu1 %v4645_v20 }
 0x479   :  { %4938 = vmatpush1.msra.mxu1 %v4644_v44  ;;  %v4818_v53 = vpop.f32.mrf.mxu1 }
 0x47a   :  { %5355 = vmatmul.mubr.msk.f32.vlgmr.msra.gmra.mxu1 %vm260_vm4, %v4650_v49 }
 0x47b   :  { %4977 = vmatprep.mubr.f32.mxu1 %v7589_v58  ;;  %v4820_v38 = vpop.f32.mrf.mxu1 }
 0x47e   :  { %5356 = vmatmul.mubr.msk.f32.gmra.mxu1 %vm260_vm4, %v4651_v60 }
 0x531   :  { %v4896_v62 = vpop.f32.mrf.mxu0 }
 0x532   :  { %v4897_v59 = vadd.f32 %v4896_v62, %v4735_v36 }
 0x533   :  { %v4898_v16 = vpop.f32.mrf.mxu0 }
 0x534   :  { %v4899_v24 = vadd.f32 %v4898_v16, %v4737_v6  ;;  %v4996_v9 = vadd.f32 %v4989_v17, %v4897_v59 }
 0x535   :  { %v4902_v40 = vpop.f32.mrf.mxu0 }
 0x536   :  { %v4997_v8 = vadd.f32 %v4989_v17, %v4899_v24  ;;  %v4903_v61 = vadd.f32 %v4902_v40, %v4741_v41 }
 0x537   :  { %v4904_v15 = vpop.f32.mrf.mxu0 }
 0x538   :  { %v5369_v27 = vpack.c.bf16 %v4997_v8, %v4996_v9  ;;  %v4905_v31 = vadd.f32 %v4904_v15, %v4743_v7  ;;  %v5000_v2 = vadd.f32 %v4994_v39, %v4903_v61 }
 0x53a   :  { %5028 = vst [vmem:[%s7367_s8] sm:$0xff] %v5369_v27  ;;  %v5001_v19 = vadd.f32 %v4994_v39, %v4905_v31  ;;  %v4973_v37 = vpop.f32.mrf.mxu1 }
 0x53b   :  { %v4974_v14 = vadd.f32 %v4973_v37, %v4812_v28 }
 0x53c   :  { %v5371_v46 = vpack.c.bf16 %v5001_v19, %v5000_v2  ;;  %v4975_v43 = vpop.f32.mrf.mxu1 }
 0x53d   :  { %v4976_v23 = vadd.f32 %v4975_v43, %v4814_v3  ;;  %v4998_v4 = vadd.f32 %v4989_v17, %v4974_v14 }
 0x53e   :  { %5030 = vst [vmem:[%s7367_s8 + $0x10] sm:$0xff] %v5371_v46  ;;  %v4979_v33 = vpop.f32.mrf.mxu1 }
 0x53f   :  { %v4999_v30 = vadd.f32 %v4989_v17, %v4976_v23  ;;  %v4980_v13 = vadd.f32 %v4979_v33, %v4818_v53 }
 0x540   :  { %v4981_v22 = vpop.f32.mrf.mxu1 }
 0x541   :  { %v5370_v63 = vpack.c.bf16 %v4999_v30, %v4998_v4  ;;  %v4982_v29 = vadd.f32 %v4981_v22, %v4820_v38  ;;  %v5002_v26 = vadd.f32 %v4994_v39, %v4980_v13 }
 0x543   :  { %5029 = vst [vmem:[%s7367_s8 + $0x8] sm:$0xff] %v5370_v63  ;;  %v5003_v18 = vadd.f32 %v4994_v39, %v4982_v29 }
 0x545   :  { %v5372_v49 = vpack.c.bf16 %v5003_v18, %v5002_v26 }
 0x547   :  { %5031 = vst [vmem:[%s7367_s8 + $0x18] sm:$0xff] %v5372_v49 }

</bundles_post_ra>
